<compile_context>
chip_gen: v5e
topology: v5e:2x2
jax: 0.10.0
libtpu: 0.0.40
codegen_flags: <defaults>
</compile_context>

<pallas_src>
import functools

import jax
import jax.numpy as jnp
from jax.experimental import pallas as pl
from jax.experimental.pallas import tpu as pltpu

_EPS = 1e-5          # InstanceNorm2d default eps
_NEG_SLOPE = 0.01    # LeakyReLU default negative_slope


# ----------------------------------------------------------------------------
# Pallas kernel: one batch element per grid step, full StackedConvLayers block.
# ----------------------------------------------------------------------------
def _stacked_conv_kernel(x2_ref, x1_ref, w1_ref, w2_ref, wr2_ref, wr1_ref,
                         br_ref, out_ref, xp_ref, y1p_ref, *, H, W):
    C2 = x2_ref.shape[-1]
    C1 = x1_ref.shape[-1]
    Cin = C2 + C1
    Cout = out_ref.shape[-1]
    f32 = jnp.float32
    bf16 = jnp.bfloat16

    # --- zero only the 1-pixel halo border of the padded scratches ----------
    # (interior is fully overwritten every step; per-step border zeroing keeps
    #  this correct under megacore "parallel" sharding of the batch axis).
    def zero_border(ref, C):
        ref[0:1, :, :] = jnp.zeros((1, W + 2, C), f32)
        ref[H + 1:H + 2, :, :] = jnp.zeros((1, W + 2, C), f32)
        ref[:, 0:1, :] = jnp.zeros((H + 2, 1, C), f32)
        ref[:, W + 1:W + 2, :] = jnp.zeros((H + 2, 1, C), f32)

    zero_border(xp_ref, Cin)
    zero_border(y1p_ref, Cout)

    x2 = x2_ref[...]                                   # (H, W, C2) bf16
    x1 = x1_ref[...]                                   # (H, W, C1) bf16

    # --- fused pad + channel concat([x2, x1u]) straight into the scratch ----
    xp_ref[1:H + 1, 1:W + 1, 0:C2] = x2.astype(f32)
    xp_ref[1:H + 1, 1:W + 1, C2:Cin] = x1.astype(f32)

    def im2col(src_ref, C):
        # src_ref: (H+2, W+2, C) zero-haloed. Build the (H*W, 9*C) patch
        # matrix so each conv is a single deep-K MXU matmul.
        cols = []
        for dh in range(3):
            for dw in range(3):
                cols.append(src_ref[dh:dh + H, dw:dw + W, :].reshape(H * W, C))
        return jnp.concatenate(cols, axis=-1)          # (H*W, 9*C) f32

    def inorm_lrelu(y):
        # InstanceNorm2d (affine=False): per-channel stats over H*W, one pass.
        m = jnp.mean(y, axis=0, keepdims=True)
        v = jnp.maximum(jnp.mean(y * y, axis=0, keepdims=True) - m * m, 0.0)
        y = (y - m) * jax.lax.rsqrt(v + _EPS)
        return jnp.maximum(y, _NEG_SLOPE * y)          # LeakyReLU

    # --- conv1 + dropout(identity) + norm + nonlin --------------------------
    # conv bias b1 elided: a per-channel constant cancels in InstanceNorm2d.
    p1 = im2col(xp_ref, Cin).astype(bf16)
    y1 = inorm_lrelu(jnp.dot(p1, w1_ref[...],
                             preferred_element_type=f32))   # (H*W, Cout) f32

    # stage intermediate (with zero halo) for the second 3x3 conv
    y1p_ref[1:H + 1, 1:W + 1, :] = y1.reshape(H, W, Cout)

    # --- conv2 + norm + nonlin (bias b2 elided, same cancellation) ----------
    p2 = im2col(y1p_ref, Cout).astype(bf16)
    y2 = inorm_lrelu(jnp.dot(p2, w2_ref[...], preferred_element_type=f32))

    # --- residual 1x1 conv directly from the bf16 input tiles (split weight)
    res = (jnp.dot(x2.reshape(H * W, C2), wr2_ref[...], preferred_element_type=f32)
           + jnp.dot(x1.reshape(H * W, C1), wr1_ref[...], preferred_element_type=f32)
           + br_ref[...])

    out_ref[...] = (y2 + res).reshape(H, W, Cout).astype(out_ref.dtype)


def stacked_conv_pallas(x2_nhwc, x1u_nhwc, params):
    """x2_nhwc: (N,H,W,C2), x1u_nhwc: (N,H,W,C1) -> (N,H,W,Cout) float32."""
    N, H, W, C2 = x2_nhwc.shape
    C1 = x1u_nhwc.shape[-1]
    Cin = C2 + C1
    Cout = params["w1"].shape[-1]

    # Weights flattened for the im2col matmul; bf16 is the native MXU input.
    w1f = params["w1"].reshape(9 * Cin, Cout).astype(jnp.bfloat16)
    w2f = params["w2"].reshape(9 * Cout, Cout).astype(jnp.bfloat16)
    wrf = params["wr"].reshape(Cin, Cout).astype(jnp.bfloat16)
    wr2f = wrf[:C2]                                   # residual weight, x2 part
    wr1f = wrf[C2:]                                   # residual weight, x1 part
    brr = params["br"].reshape(1, Cout).astype(jnp.float32)

    # Activations DMA'd as bf16 (halves HBM->VMEM input bytes).
    x2b = x2_nhwc.astype(jnp.bfloat16)
    x1b = x1u_nhwc.astype(jnp.bfloat16)

    kernel = functools.partial(_stacked_conv_kernel, H=H, W=W)

    grid_spec = pltpu.PrefetchScalarGridSpec(
        num_scalar_prefetch=0,
        grid=(N,),
        in_specs=[
            pl.BlockSpec((None, H, W, C2), lambda n: (n, 0, 0, 0)),
            pl.BlockSpec((None, H, W, C1), lambda n: (n, 0, 0, 0)),
            pl.BlockSpec((9 * Cin, Cout), lambda n: (0, 0)),
            pl.BlockSpec((9 * Cout, Cout), lambda n: (0, 0)),
            pl.BlockSpec((C2, Cout), lambda n: (0, 0)),
            pl.BlockSpec((C1, Cout), lambda n: (0, 0)),
            pl.BlockSpec((1, Cout), lambda n: (0, 0)),
        ],
        out_specs=pl.BlockSpec((None, H, W, Cout), lambda n: (n, 0, 0, 0)),
        scratch_shapes=[pltpu.VMEM((H + 2, W + 2, Cin), jnp.float32),
                        pltpu.VMEM((H + 2, W + 2, Cout), jnp.float32)],
    )

    return pl.pallas_call(
        kernel,
        out_shape=jax.ShapeDtypeStruct((N, H, W, Cout), jnp.float32),
        grid_spec=grid_spec,
        compiler_params=pltpu.CompilerParams(
            dimension_semantics=("parallel",)),       # batch steps independent
    )(x2b, x1b, w1f, w2f, wr2f, wr1f, brr)


# ----------------------------------------------------------------------------
# JAX glue: bilinear upsample (align_corners=True) + diff padding.
# ----------------------------------------------------------------------------
def _upsample_bilinear_align_corners_x2(x_nhwc):
    N, H, W, C = x_nhwc.shape
    Ho, Wo = 2 * H, 2 * W

    def coords(out_size, in_size):
        pos = jnp.arange(out_size, dtype=jnp.float32) * (
            (in_size - 1) / (out_size - 1) if out_size > 1 else 0.0)
        lo = jnp.floor(pos).astype(jnp.int32)
        hi = jnp.minimum(lo + 1, in_size - 1)
        return pos - lo.astype(jnp.float32), lo, hi

    fy, y0, y1 = coords(Ho, H)
    fx, x0, x1 = coords(Wo, W)

    top = x_nhwc[:, y0, :, :]
    bot = x_nhwc[:, y1, :, :]
    v = top * (1.0 - fy)[None, :, None, None] + bot * fy[None, :, None, None]
    left = v[:, :, x0, :]
    right = v[:, :, x1, :]
    return left * (1.0 - fx)[None, None, :, None] + right * fx[None, None, :, None]


def _pad_to_match(x1u, x2):
    diffY = x2.shape[1] - x1u.shape[1]
    diffX = x2.shape[2] - x1u.shape[2]
    return jnp.pad(x1u, ((0, 0),
                         (diffY // 2, diffY - diffY // 2),
                         (diffX // 2, diffX - diffX // 2),
                         (0, 0)))


def nnunet_up_block(x1_nchw, x2_nchw, params):
    """PyTorch-convention NCHW in/out."""
    x1 = jnp.transpose(x1_nchw, (0, 2, 3, 1))  # -> NHWC
    x2 = jnp.transpose(x2_nchw, (0, 2, 3, 1))

    x1u = _pad_to_match(_upsample_bilinear_align_corners_x2(x1), x2)
    # Channel concat [x2, x1u] is fused inside the Pallas kernel.
    y = stacked_conv_pallas(x2, x1u, params)
    return jnp.transpose(y, (0, 3, 1, 2))       # -> NCHW


# ----------------------------------------------------------------------------
# Deterministic parameter init (HWIO weights) + pure-JAX f32 reference.
# ----------------------------------------------------------------------------
def init_params(key, cin, cout):
    ks = jax.random.split(key, 6)
    return {
        "w1": 0.1 * jax.random.normal(ks[0], (3, 3, cin, cout), jnp.float32),
        "b1": 0.1 * jax.random.normal(ks[1], (cout,), jnp.float32),
        "w2": 0.1 * jax.random.normal(ks[2], (3, 3, cout, cout), jnp.float32),
        "b2": 0.1 * jax.random.normal(ks[3], (cout,), jnp.float32),
        "wr": 0.1 * jax.random.normal(ks[4], (1, 1, cin, cout), jnp.float32),
        "br": 0.1 * jax.random.normal(ks[5], (cout,), jnp.float32),
    }


def _ref_stacked_conv(x_nhwc, params):
    def conv(x, w, b):
        y = jax.lax.conv_general_dilated(
            x, w, (1, 1), "SAME", dimension_numbers=("NHWC", "HWIO", "NHWC"))
        return y + b.reshape(1, 1, 1, -1)

    def inorm_lrelu(y):
        m = jnp.mean(y, axis=(1, 2), keepdims=True)
        v = jnp.mean((y - m) ** 2, axis=(1, 2), keepdims=True)
        y = (y - m) * jax.lax.rsqrt(v + _EPS)
        return jnp.where(y >= 0, y, _NEG_SLOPE * y)

    res = conv(x_nhwc, params["wr"], params["br"])
    y = inorm_lrelu(conv(x_nhwc, params["w1"], params["b1"]))
    y = inorm_lrelu(conv(y, params["w2"], params["b2"]))
    return y + res


def _ref_up_block(x1_nchw, x2_nchw, params):
    x1 = jnp.transpose(x1_nchw, (0, 2, 3, 1))
    x2 = jnp.transpose(x2_nchw, (0, 2, 3, 1))
    x1u = _pad_to_match(_upsample_bilinear_align_corners_x2(x1), x2)
    x = jnp.concatenate([x2, x1u], axis=-1)
    return jnp.transpose(_ref_stacked_conv(x, params), (0, 3, 1, 2))


if __name__ == "__main__":
    key = jax.random.PRNGKey(0)
    k1, k2, kw = jax.random.split(key, 3)

    # x1 is the low-res feature map (upsampled), x2 is the skip connection.
    N, C1, H1, W1 = 2, 4, 8, 8
    C2, H2, W2 = 4, 16, 16
    in_channels = C1 + C2   # channels seen by the conv block after concat
    out_channels = 4

    x1 = jax.random.normal(k1, (N, C1, H1, W1), jnp.float32)
    x2 = jax.random.normal(k2, (N, C2, H2, W2), jnp.float32)
    params = init_params(kw, in_channels, out_channels)

    y = nnunet_up_block(x1, x2, params)
    jax.block_until_ready(y)
    assert y.shape == (N, out_channels, H2, W2), y.shape

    # Sanity check against a pure-f32 JAX reference. Tolerance is loose because
    # the kernel feeds bf16 operands to the MXU (f32 accumulation).
    y_ref = _ref_up_block(x1, x2, params)
    err = float(jnp.max(jnp.abs(y - y_ref)))
    assert err < 1e-1, f"max abs error vs reference: {err}"

    print("KERNEL_OK")
</pallas_src>

<mosaic_0001>
module attributes {stable_mosaic.version = 11 : i64} {
  func.func @_stacked_conv_kernel(%arg0: i32, %arg1: memref<1x16x16x4xbf16, #tpu.memory_space<vmem>>, %arg2: memref<1x16x16x4xbf16, #tpu.memory_space<vmem>>, %arg3: memref<72x4xbf16, #tpu.memory_space<vmem>>, %arg4: memref<36x4xbf16, #tpu.memory_space<vmem>>, %arg5: memref<4x4xbf16, #tpu.memory_space<vmem>>, %arg6: memref<4x4xbf16, #tpu.memory_space<vmem>>, %arg7: memref<1x4xf32, #tpu.memory_space<vmem>>, %arg8: memref<1x16x16x4xf32, #tpu.memory_space<vmem>>, %arg9: memref<18x18x8xf32, #tpu.memory_space<vmem>>, %arg10: memref<18x18x4xf32, #tpu.memory_space<vmem>>) attributes {dimension_semantics = [#tpu.dimension_semantics<parallel>], iteration_bounds = array<i64: 2>, scalar_prefetch = 0 : i64, scratch_operands = 2 : i64, tpu.core_type = #tpu.core_type<tc>, window_params = [{transform_indices = @transform_0, window_bounds = array<i64: 1, 16, 16, 4>}, {transform_indices = @transform_1, window_bounds = array<i64: 1, 16, 16, 4>}, {pipeline_mode = #tpu.pipeline_mode<synchronous>, transform_indices = @transform_2, window_bounds = array<i64: 72, 4>}, {pipeline_mode = #tpu.pipeline_mode<synchronous>, transform_indices = @transform_3, window_bounds = array<i64: 36, 4>}, {pipeline_mode = #tpu.pipeline_mode<synchronous>, transform_indices = @transform_4, window_bounds = array<i64: 4, 4>}, {pipeline_mode = #tpu.pipeline_mode<synchronous>, transform_indices = @transform_5, window_bounds = array<i64: 4, 4>}, {pipeline_mode = #tpu.pipeline_mode<synchronous>, transform_indices = @transform_6, window_bounds = array<i64: 1, 4>}, {transform_indices = @transform_7, window_bounds = array<i64: 1, 16, 16, 4>}]} {
    %cst = arith.constant 0.000000e+00 : f32
    %0 = vector.broadcast %cst : f32 to vector<1x18x8xf32>
    %c0 = arith.constant 0 : index
    %c0_0 = arith.constant 0 : index
    %c0_1 = arith.constant 0 : index
    %1 = vector.load %arg9[%c0, %c0_0, %c0_1] : memref<18x18x8xf32, #tpu.memory_space<vmem>>, vector<1x18x8xf32>
    tpu.vector_store %arg9[%c0, %c0_0, %c0_1], %0 {strides = array<i32>} : memref<18x18x8xf32, #tpu.memory_space<vmem>>, vector<1x18x8xf32>,
    %cst_2 = arith.constant 0.000000e+00 : f32
    %2 = vector.broadcast %cst_2 : f32 to vector<1x18x8xf32>
    %c17 = arith.constant 17 : index
    %c0_3 = arith.constant 0 : index
    %c0_4 = arith.constant 0 : index
    %3 = vector.load %arg9[%c17, %c0_3, %c0_4] : memref<18x18x8xf32, #tpu.memory_space<vmem>>, vector<1x18x8xf32>
    tpu.vector_store %arg9[%c17, %c0_3, %c0_4], %2 {strides = array<i32>} : memref<18x18x8xf32, #tpu.memory_space<vmem>>, vector<1x18x8xf32>,
    %cst_5 = arith.constant 0.000000e+00 : f32
    %4 = vector.broadcast %cst_5 : f32 to vector<18x1x8xf32>
    %c0_6 = arith.constant 0 : index
    %c0_7 = arith.constant 0 : index
    %c0_8 = arith.constant 0 : index
    %5 = vector.load %arg9[%c0_6, %c0_7, %c0_8] : memref<18x18x8xf32, #tpu.memory_space<vmem>>, vector<18x1x8xf32>
    tpu.vector_store %arg9[%c0_6, %c0_7, %c0_8], %4 {strides = array<i32>} : memref<18x18x8xf32, #tpu.memory_space<vmem>>, vector<18x1x8xf32>,
    %cst_9 = arith.constant 0.000000e+00 : f32
    %6 = vector.broadcast %cst_9 : f32 to vector<18x1x8xf32>
    %c0_10 = arith.constant 0 : index
    %c17_11 = arith.constant 17 : index
    %c0_12 = arith.constant 0 : index
    %7 = vector.load %arg9[%c0_10, %c17_11, %c0_12] : memref<18x18x8xf32, #tpu.memory_space<vmem>>, vector<18x1x8xf32>
    tpu.vector_store %arg9[%c0_10, %c17_11, %c0_12], %6 {strides = array<i32>} : memref<18x18x8xf32, #tpu.memory_space<vmem>>, vector<18x1x8xf32>,
    %cst_13 = arith.constant 0.000000e+00 : f32
    %8 = vector.broadcast %cst_13 : f32 to vector<1x18x4xf32>
    %c0_14 = arith.constant 0 : index
    %c0_15 = arith.constant 0 : index
    %c0_16 = arith.constant 0 : index
    %9 = vector.load %arg10[%c0_14, %c0_15, %c0_16] : memref<18x18x4xf32, #tpu.memory_space<vmem>>, vector<1x18x4xf32>
    tpu.vector_store %arg10[%c0_14, %c0_15, %c0_16], %8 {strides = array<i32>} : memref<18x18x4xf32, #tpu.memory_space<vmem>>, vector<1x18x4xf32>,
    %cst_17 = arith.constant 0.000000e+00 : f32
    %10 = vector.broadcast %cst_17 : f32 to vector<1x18x4xf32>
    %c17_18 = arith.constant 17 : index
    %c0_19 = arith.constant 0 : index
    %c0_20 = arith.constant 0 : index
    %11 = vector.load %arg10[%c17_18, %c0_19, %c0_20] : memref<18x18x4xf32, #tpu.memory_space<vmem>>, vector<1x18x4xf32>
    tpu.vector_store %arg10[%c17_18, %c0_19, %c0_20], %10 {strides = array<i32>} : memref<18x18x4xf32, #tpu.memory_space<vmem>>, vector<1x18x4xf32>,
    %cst_21 = arith.constant 0.000000e+00 : f32
    %12 = vector.broadcast %cst_21 : f32 to vector<18x1x4xf32>
    %c0_22 = arith.constant 0 : index
    %c0_23 = arith.constant 0 : index
    %c0_24 = arith.constant 0 : index
    %13 = vector.load %arg10[%c0_22, %c0_23, %c0_24] : memref<18x18x4xf32, #tpu.memory_space<vmem>>, vector<18x1x4xf32>
    tpu.vector_store %arg10[%c0_22, %c0_23, %c0_24], %12 {strides = array<i32>} : memref<18x18x4xf32, #tpu.memory_space<vmem>>, vector<18x1x4xf32>,
    %cst_25 = arith.constant 0.000000e+00 : f32
    %14 = vector.broadcast %cst_25 : f32 to vector<18x1x4xf32>
    %c0_26 = arith.constant 0 : index
    %c17_27 = arith.constant 17 : index
    %c0_28 = arith.constant 0 : index
    %15 = vector.load %arg10[%c0_26, %c17_27, %c0_28] : memref<18x18x4xf32, #tpu.memory_space<vmem>>, vector<18x1x4xf32>
    tpu.vector_store %arg10[%c0_26, %c17_27, %c0_28], %14 {strides = array<i32>} : memref<18x18x4xf32, #tpu.memory_space<vmem>>, vector<18x1x4xf32>,
    %c0_29 = arith.constant 0 : index
    %c0_30 = arith.constant 0 : index
    %c0_31 = arith.constant 0 : index
    %c0_32 = arith.constant 0 : index
    %16 = vector.load %arg1[%c0_29, %c0_30, %c0_31, %c0_32] : memref<1x16x16x4xbf16, #tpu.memory_space<vmem>>, vector<1x16x16x4xbf16>
    %17 = vector.shape_cast %16 : vector<1x16x16x4xbf16> to vector<16x16x4xbf16>
    %c0_33 = arith.constant 0 : index
    %c0_34 = arith.constant 0 : index
    %c0_35 = arith.constant 0 : index
    %c0_36 = arith.constant 0 : index
    %18 = vector.load %arg2[%c0_33, %c0_34, %c0_35, %c0_36] : memref<1x16x16x4xbf16, #tpu.memory_space<vmem>>, vector<1x16x16x4xbf16>
    %19 = vector.shape_cast %18 : vector<1x16x16x4xbf16> to vector<16x16x4xbf16>
    %20 = arith.extf %17 : vector<16x16x4xbf16> to vector<16x16x4xf32>
    %c1 = arith.constant 1 : index
    %c1_37 = arith.constant 1 : index
    %c0_38 = arith.constant 0 : index
    %21 = vector.load %arg9[%c1, %c1_37, %c0_38] : memref<18x18x8xf32, #tpu.memory_space<vmem>>, vector<16x16x4xf32>
    tpu.vector_store %arg9[%c1, %c1_37, %c0_38], %20 {strides = array<i32>} : memref<18x18x8xf32, #tpu.memory_space<vmem>>, vector<16x16x4xf32>,
    %22 = arith.extf %19 : vector<16x16x4xbf16> to vector<16x16x4xf32>
    %c1_39 = arith.constant 1 : index
    %c1_40 = arith.constant 1 : index
    %c4 = arith.constant 4 : index
    %23 = vector.load %arg9[%c1_39, %c1_40, %c4] : memref<18x18x8xf32, #tpu.memory_space<vmem>>, vector<16x16x4xf32>
    tpu.vector_store %arg9[%c1_39, %c1_40, %c4], %22 {strides = array<i32>} : memref<18x18x8xf32, #tpu.memory_space<vmem>>, vector<16x16x4xf32>,
    %c0_41 = arith.constant 0 : index
    %c0_42 = arith.constant 0 : index
    %c0_43 = arith.constant 0 : index
    %24 = vector.load %arg9[%c0_41, %c0_42, %c0_43] : memref<18x18x8xf32, #tpu.memory_space<vmem>>, vector<16x16x8xf32>
    %25 = vector.shape_cast %24 : vector<16x16x8xf32> to vector<256x8xf32>
    %c0_44 = arith.constant 0 : index
    %c1_45 = arith.constant 1 : index
    %c0_46 = arith.constant 0 : index
    %26 = vector.load %arg9[%c0_44, %c1_45, %c0_46] : memref<18x18x8xf32, #tpu.memory_space<vmem>>, vector<16x16x8xf32>
    %27 = vector.shape_cast %26 : vector<16x16x8xf32> to vector<256x8xf32>
    %c0_47 = arith.constant 0 : index
    %c2 = arith.constant 2 : index
    %c0_48 = arith.constant 0 : index
    %28 = vector.load %arg9[%c0_47, %c2, %c0_48] : memref<18x18x8xf32, #tpu.memory_space<vmem>>, vector<16x16x8xf32>
    %29 = vector.shape_cast %28 : vector<16x16x8xf32> to vector<256x8xf32>
    %c1_49 = arith.constant 1 : index
    %c0_50 = arith.constant 0 : index
    %c0_51 = arith.constant 0 : index
    %30 = vector.load %arg9[%c1_49, %c0_50, %c0_51] : memref<18x18x8xf32, #tpu.memory_space<vmem>>, vector<16x16x8xf32>
    %31 = vector.shape_cast %30 : vector<16x16x8xf32> to vector<256x8xf32>
    %c1_52 = arith.constant 1 : index
    %c1_53 = arith.constant 1 : index
    %c0_54 = arith.constant 0 : index
    %32 = vector.load %arg9[%c1_52, %c1_53, %c0_54] : memref<18x18x8xf32, #tpu.memory_space<vmem>>, vector<16x16x8xf32>
    %33 = vector.shape_cast %32 : vector<16x16x8xf32> to vector<256x8xf32>
    %c1_55 = arith.constant 1 : index
    %c2_56 = arith.constant 2 : index
    %c0_57 = arith.constant 0 : index
    %34 = vector.load %arg9[%c1_55, %c2_56, %c0_57] : memref<18x18x8xf32, #tpu.memory_space<vmem>>, vector<16x16x8xf32>
    %35 = vector.shape_cast %34 : vector<16x16x8xf32> to vector<256x8xf32>
    %c2_58 = arith.constant 2 : index
    %c0_59 = arith.constant 0 : index
    %c0_60 = arith.constant 0 : index
    %36 = vector.load %arg9[%c2_58, %c0_59, %c0_60] : memref<18x18x8xf32, #tpu.memory_space<vmem>>, vector<16x16x8xf32>
    %37 = vector.shape_cast %36 : vector<16x16x8xf32> to vector<256x8xf32>
    %c2_61 = arith.constant 2 : index
    %c1_62 = arith.constant 1 : index
    %c0_63 = arith.constant 0 : index
    %38 = vector.load %arg9[%c2_61, %c1_62, %c0_63] : memref<18x18x8xf32, #tpu.memory_space<vmem>>, vector<16x16x8xf32>
    %39 = vector.shape_cast %38 : vector<16x16x8xf32> to vector<256x8xf32>
    %c2_64 = arith.constant 2 : index
    %c2_65 = arith.constant 2 : index
    %c0_66 = arith.constant 0 : index
    %40 = vector.load %arg9[%c2_64, %c2_65, %c0_66] : memref<18x18x8xf32, #tpu.memory_space<vmem>>, vector<16x16x8xf32>
    %41 = vector.shape_cast %40 : vector<16x16x8xf32> to vector<256x8xf32>
    %42 = tpu.concatenate %25, %27, %29, %31, %33, %35, %37, %39, %41 in 1 : vector<256x8xf32>, vector<256x8xf32>, vector<256x8xf32>, vector<256x8xf32>, vector<256x8xf32>, vector<256x8xf32>, vector<256x8xf32>, vector<256x8xf32>, vector<256x8xf32> -> vector<256x72xf32>
    %43 = arith.truncf %42 : vector<256x72xf32> to vector<256x72xbf16>
    %c0_67 = arith.constant 0 : index
    %c0_68 = arith.constant 0 : index
    %44 = vector.load %arg3[%c0_67, %c0_68] : memref<72x4xbf16, #tpu.memory_space<vmem>>, vector<72x4xbf16>
    %cst_69 = arith.constant dense<0.000000e+00> : vector<256x4xf32>
    %45 = tpu.matmul %43, %44, %cst_69 {dimension_numbers = #tpu.dot_dimension_numbers<[1], [0], [0], [1], [0, 0, 1, 1], [], []>} : vector<256x72xbf16>, vector<72x4xbf16>, vector<256x4xf32> -> vector<256x4xf32>
    %cst_70 = arith.constant dense<0.000000e+00> : vector<4xf32>
    %46 = vector.multi_reduction <add>, %45, %cst_70 [0] : vector<256x4xf32> to vector<4xf32>
    %47 = vector.shape_cast %46 : vector<4xf32> to vector<1x4xf32>
    %cst_71 = arith.constant 2.560000e+02 : f32
    %48 = vector.broadcast %cst_71 : f32 to vector<1x4xf32>
    %49 = arith.divf %47, %48 : vector<1x4xf32>
    %50 = arith.mulf %45, %45 : vector<256x4xf32>
    %cst_72 = arith.constant dense<0.000000e+00> : vector<4xf32>
    %51 = vector.multi_reduction <add>, %50, %cst_72 [0] : vector<256x4xf32> to vector<4xf32>
    %52 = vector.shape_cast %51 : vector<4xf32> to vector<1x4xf32>
    %cst_73 = arith.constant 2.560000e+02 : f32
    %53 = vector.broadcast %cst_73 : f32 to vector<1x4xf32>
    %54 = arith.divf %52, %53 : vector<1x4xf32>
    %55 = arith.mulf %49, %49 : vector<1x4xf32>
    %56 = arith.subf %54, %55 : vector<1x4xf32>
    %cst_74 = arith.constant 0.000000e+00 : f32
    %57 = vector.broadcast %cst_74 : f32 to vector<1x4xf32>
    %58 = arith.maximumf %56, %57 : vector<1x4xf32>
    %59 = vector.broadcast %49 : vector<1x4xf32> to vector<256x4xf32>
    %60 = arith.subf %45, %59 : vector<256x4xf32>
    %cst_75 = arith.constant 9.99999974E-6 : f32
    %61 = vector.broadcast %cst_75 : f32 to vector<1x4xf32>
    %62 = arith.addf %58, %61 : vector<1x4xf32>
    %63 = math.rsqrt %62 : vector<1x4xf32>
    %64 = vector.broadcast %63 : vector<1x4xf32> to vector<256x4xf32>
    %65 = arith.mulf %60, %64 : vector<256x4xf32>
    %cst_76 = arith.constant 0.00999999977 : f32
    %66 = vector.broadcast %cst_76 : f32 to vector<256x4xf32>
    %67 = arith.mulf %66, %65 : vector<256x4xf32>
    %68 = arith.maximumf %65, %67 : vector<256x4xf32>
    %69 = vector.shape_cast %68 : vector<256x4xf32> to vector<16x16x4xf32>
    %c1_77 = arith.constant 1 : index
    %c1_78 = arith.constant 1 : index
    %c0_79 = arith.constant 0 : index
    %70 = vector.load %arg10[%c1_77, %c1_78, %c0_79] : memref<18x18x4xf32, #tpu.memory_space<vmem>>, vector<16x16x4xf32>
    tpu.vector_store %arg10[%c1_77, %c1_78, %c0_79], %69 {strides = array<i32>} : memref<18x18x4xf32, #tpu.memory_space<vmem>>, vector<16x16x4xf32>,
    %c0_80 = arith.constant 0 : index
    %c0_81 = arith.constant 0 : index
    %c0_82 = arith.constant 0 : index
    %71 = vector.load %arg10[%c0_80, %c0_81, %c0_82] : memref<18x18x4xf32, #tpu.memory_space<vmem>>, vector<16x16x4xf32>
    %72 = vector.shape_cast %71 : vector<16x16x4xf32> to vector<256x4xf32>
    %c0_83 = arith.constant 0 : index
    %c1_84 = arith.constant 1 : index
    %c0_85 = arith.constant 0 : index
    %73 = vector.load %arg10[%c0_83, %c1_84, %c0_85] : memref<18x18x4xf32, #tpu.memory_space<vmem>>, vector<16x16x4xf32>
    %74 = vector.shape_cast %73 : vector<16x16x4xf32> to vector<256x4xf32>
    %c0_86 = arith.constant 0 : index
    %c2_87 = arith.constant 2 : index
    %c0_88 = arith.constant 0 : index
    %75 = vector.load %arg10[%c0_86, %c2_87, %c0_88] : memref<18x18x4xf32, #tpu.memory_space<vmem>>, vector<16x16x4xf32>
    %76 = vector.shape_cast %75 : vector<16x16x4xf32> to vector<256x4xf32>
    %c1_89 = arith.constant 1 : index
    %c0_90 = arith.constant 0 : index
    %c0_91 = arith.constant 0 : index
    %77 = vector.load %arg10[%c1_89, %c0_90, %c0_91] : memref<18x18x4xf32, #tpu.memory_space<vmem>>, vector<16x16x4xf32>
    %78 = vector.shape_cast %77 : vector<16x16x4xf32> to vector<256x4xf32>
    %c1_92 = arith.constant 1 : index
    %c1_93 = arith.constant 1 : index
    %c0_94 = arith.constant 0 : index
    %79 = vector.load %arg10[%c1_92, %c1_93, %c0_94] : memref<18x18x4xf32, #tpu.memory_space<vmem>>, vector<16x16x4xf32>
    %80 = vector.shape_cast %79 : vector<16x16x4xf32> to vector<256x4xf32>
    %c1_95 = arith.constant 1 : index
    %c2_96 = arith.constant 2 : index
    %c0_97 = arith.constant 0 : index
    %81 = vector.load %arg10[%c1_95, %c2_96, %c0_97] : memref<18x18x4xf32, #tpu.memory_space<vmem>>, vector<16x16x4xf32>
    %82 = vector.shape_cast %81 : vector<16x16x4xf32> to vector<256x4xf32>
    %c2_98 = arith.constant 2 : index
    %c0_99 = arith.constant 0 : index
    %c0_100 = arith.constant 0 : index
    %83 = vector.load %arg10[%c2_98, %c0_99, %c0_100] : memref<18x18x4xf32, #tpu.memory_space<vmem>>, vector<16x16x4xf32>
    %84 = vector.shape_cast %83 : vector<16x16x4xf32> to vector<256x4xf32>
    %c2_101 = arith.constant 2 : index
    %c1_102 = arith.constant 1 : index
    %c0_103 = arith.constant 0 : index
    %85 = vector.load %arg10[%c2_101, %c1_102, %c0_103] : memref<18x18x4xf32, #tpu.memory_space<vmem>>, vector<16x16x4xf32>
    %86 = vector.shape_cast %85 : vector<16x16x4xf32> to vector<256x4xf32>
    %c2_104 = arith.constant 2 : index
    %c2_105 = arith.constant 2 : index
    %c0_106 = arith.constant 0 : index
    %87 = vector.load %arg10[%c2_104, %c2_105, %c0_106] : memref<18x18x4xf32, #tpu.memory_space<vmem>>, vector<16x16x4xf32>
    %88 = vector.shape_cast %87 : vector<16x16x4xf32> to vector<256x4xf32>
    %89 = tpu.concatenate %72, %74, %76, %78, %80, %82, %84, %86, %88 in 1 : vector<256x4xf32>, vector<256x4xf32>, vector<256x4xf32>, vector<256x4xf32>, vector<256x4xf32>, vector<256x4xf32>, vector<256x4xf32>, vector<256x4xf32>, vector<256x4xf32> -> vector<256x36xf32>
    %90 = arith.truncf %89 : vector<256x36xf32> to vector<256x36xbf16>
    %c0_107 = arith.constant 0 : index
    %c0_108 = arith.constant 0 : index
    %91 = vector.load %arg4[%c0_107, %c0_108] : memref<36x4xbf16, #tpu.memory_space<vmem>>, vector<36x4xbf16>
    %cst_109 = arith.constant dense<0.000000e+00> : vector<256x4xf32>
    %92 = tpu.matmul %90, %91, %cst_109 {dimension_numbers = #tpu.dot_dimension_numbers<[1], [0], [0], [1], [0, 0, 1, 1], [], []>} : vector<256x36xbf16>, vector<36x4xbf16>, vector<256x4xf32> -> vector<256x4xf32>
    %cst_110 = arith.constant dense<0.000000e+00> : vector<4xf32>
    %93 = vector.multi_reduction <add>, %92, %cst_110 [0] : vector<256x4xf32> to vector<4xf32>
    %94 = vector.shape_cast %93 : vector<4xf32> to vector<1x4xf32>
    %cst_111 = arith.constant 2.560000e+02 : f32
    %95 = vector.broadcast %cst_111 : f32 to vector<1x4xf32>
    %96 = arith.divf %94, %95 : vector<1x4xf32>
    %97 = arith.mulf %92, %92 : vector<256x4xf32>
    %cst_112 = arith.constant dense<0.000000e+00> : vector<4xf32>
    %98 = vector.multi_reduction <add>, %97, %cst_112 [0] : vector<256x4xf32> to vector<4xf32>
    %99 = vector.shape_cast %98 : vector<4xf32> to vector<1x4xf32>
    %cst_113 = arith.constant 2.560000e+02 : f32
    %100 = vector.broadcast %cst_113 : f32 to vector<1x4xf32>
    %101 = arith.divf %99, %100 : vector<1x4xf32>
    %102 = arith.mulf %96, %96 : vector<1x4xf32>
    %103 = arith.subf %101, %102 : vector<1x4xf32>
    %cst_114 = arith.constant 0.000000e+00 : f32
    %104 = vector.broadcast %cst_114 : f32 to vector<1x4xf32>
    %105 = arith.maximumf %103, %104 : vector<1x4xf32>
    %106 = vector.broadcast %96 : vector<1x4xf32> to vector<256x4xf32>
    %107 = arith.subf %92, %106 : vector<256x4xf32>
    %cst_115 = arith.constant 9.99999974E-6 : f32
    %108 = vector.broadcast %cst_115 : f32 to vector<1x4xf32>
    %109 = arith.addf %105, %108 : vector<1x4xf32>
    %110 = math.rsqrt %109 : vector<1x4xf32>
    %111 = vector.broadcast %110 : vector<1x4xf32> to vector<256x4xf32>
    %112 = arith.mulf %107, %111 : vector<256x4xf32>
    %cst_116 = arith.constant 0.00999999977 : f32
    %113 = vector.broadcast %cst_116 : f32 to vector<256x4xf32>
    %114 = arith.mulf %113, %112 : vector<256x4xf32>
    %115 = arith.maximumf %112, %114 : vector<256x4xf32>
    %116 = vector.shape_cast %17 : vector<16x16x4xbf16> to vector<256x4xbf16>
    %c0_117 = arith.constant 0 : index
    %c0_118 = arith.constant 0 : index
    %117 = vector.load %arg5[%c0_117, %c0_118] : memref<4x4xbf16, #tpu.memory_space<vmem>>, vector<4x4xbf16>
    %cst_119 = arith.constant dense<0.000000e+00> : vector<256x4xf32>
    %118 = tpu.matmul %116, %117, %cst_119 {dimension_numbers = #tpu.dot_dimension_numbers<[1], [0], [0], [1], [0, 0, 1, 1], [], []>} : vector<256x4xbf16>, vector<4x4xbf16>, vector<256x4xf32> -> vector<256x4xf32>
    %119 = vector.shape_cast %19 : vector<16x16x4xbf16> to vector<256x4xbf16>
    %c0_120 = arith.constant 0 : index
    %c0_121 = arith.constant 0 : index
    %120 = vector.load %arg6[%c0_120, %c0_121] : memref<4x4xbf16, #tpu.memory_space<vmem>>, vector<4x4xbf16>
    %cst_122 = arith.constant dense<0.000000e+00> : vector<256x4xf32>
    %121 = tpu.matmul %119, %120, %cst_122 {dimension_numbers = #tpu.dot_dimension_numbers<[1], [0], [0], [1], [0, 0, 1, 1], [], []>} : vector<256x4xbf16>, vector<4x4xbf16>, vector<256x4xf32> -> vector<256x4xf32>
    %122 = arith.addf %118, %121 : vector<256x4xf32>
    %c0_123 = arith.constant 0 : index
    %c0_124 = arith.constant 0 : index
    %123 = vector.load %arg7[%c0_123, %c0_124] : memref<1x4xf32, #tpu.memory_space<vmem>>, vector<1x4xf32>
    %124 = vector.broadcast %123 : vector<1x4xf32> to vector<256x4xf32>
    %125 = arith.addf %122, %124 : vector<256x4xf32>
    %126 = arith.addf %115, %125 : vector<256x4xf32>
    %127 = vector.shape_cast %126 : vector<256x4xf32> to vector<16x16x4xf32>
    %c0_125 = arith.constant 0 : index
    %c0_126 = arith.constant 0 : index
    %c0_127 = arith.constant 0 : index
    %c0_128 = arith.constant 0 : index
    %128 = vector.load %arg8[%c0_125, %c0_126, %c0_127, %c0_128] : memref<1x16x16x4xf32, #tpu.memory_space<vmem>>, vector<1x16x16x4xf32>
    %129 = vector.shape_cast %128 : vector<1x16x16x4xf32> to vector<16x16x4xf32>
    %130 = vector.shape_cast %127 : vector<16x16x4xf32> to vector<1x16x16x4xf32>
    tpu.vector_store %arg8[%c0_125, %c0_126, %c0_127, %c0_128], %130 {strides = array<i32>} : memref<1x16x16x4xf32, #tpu.memory_space<vmem>>, vector<1x16x16x4xf32>,
    return
  }
  func.func @transform_0(%arg0: i32) -> (i32, i32, i32, i32) {
    %c0_i32 = arith.constant 0 : i32
    %c0_i32_0 = arith.constant 0 : i32
    %c0_i32_1 = arith.constant 0 : i32
    %c0_i32_2 = arith.constant 0 : i32
    return %arg0, %c0_i32, %c0_i32_0, %c0_i32_1 : i32, i32, i32, i32
  }
  func.func @transform_1(%arg0: i32) -> (i32, i32, i32, i32) {
    %c0_i32 = arith.constant 0 : i32
    %c0_i32_0 = arith.constant 0 : i32
    %c0_i32_1 = arith.constant 0 : i32
    %c0_i32_2 = arith.constant 0 : i32
    return %arg0, %c0_i32, %c0_i32_0, %c0_i32_1 : i32, i32, i32, i32
  }
  func.func @transform_2(%arg0: i32) -> (i32, i32) {
    %c0_i32 = arith.constant 0 : i32
    %c0_i32_0 = arith.constant 0 : i32
    %c0_i32_1 = arith.constant 0 : i32
    return %c0_i32, %c0_i32_0 : i32, i32
  }
  func.func @transform_3(%arg0: i32) -> (i32, i32) {
    %c0_i32 = arith.constant 0 : i32
    %c0_i32_0 = arith.constant 0 : i32
    %c0_i32_1 = arith.constant 0 : i32
    return %c0_i32, %c0_i32_0 : i32, i32
  }
  func.func @transform_4(%arg0: i32) -> (i32, i32) {
    %c0_i32 = arith.constant 0 : i32
    %c0_i32_0 = arith.constant 0 : i32
    %c0_i32_1 = arith.constant 0 : i32
    return %c0_i32, %c0_i32_0 : i32, i32
  }
  func.func @transform_5(%arg0: i32) -> (i32, i32) {
    %c0_i32 = arith.constant 0 : i32
    %c0_i32_0 = arith.constant 0 : i32
    %c0_i32_1 = arith.constant 0 : i32
    return %c0_i32, %c0_i32_0 : i32, i32
  }
  func.func @transform_6(%arg0: i32) -> (i32, i32) {
    %c0_i32 = arith.constant 0 : i32
    %c0_i32_0 = arith.constant 0 : i32
    %c0_i32_1 = arith.constant 0 : i32
    return %c0_i32, %c0_i32_0 : i32, i32
  }
  func.func @transform_7(%arg0: i32) -> (i32, i32, i32, i32) {
    %c0_i32 = arith.constant 0 : i32
    %c0_i32_0 = arith.constant 0 : i32
    %c0_i32_1 = arith.constant 0 : i32
    %c0_i32_2 = arith.constant 0 : i32
    return %arg0, %c0_i32, %c0_i32_0, %c0_i32_1 : i32, i32, i32, i32
  }
}

</mosaic_0001>

<bundles_post_ra>
// kernel: tpu_custom_call.1
= control target key start
LH: loop header
LB: loop body
LE: loop exit
PB: predicated region body
PF: predicated region fallthrough
CT: control target
= control target key end

     0   :  { %s7254_s24 = smov 0   ;;  %s10806_s0 = inlined_call_operand.vmem [shape: bf16[2,16,16,4], index: 0, kind: input, shape index: {}]   ;;  %s10807_s1 = inlined_call_operand.vmem [shape: bf16[2,16,16,4], index: 1, kind: input, shape index: {}]   ;;  %s10808_s2 = inlined_call_operand.vmem [shape: bf16[72,4], index: 2, kind: input, shape index: {}]   ;;  %s10809_s3 = inlined_call_operand.vmem [shape: bf16[36,4], index: 3, kind: input, shape index: {}]   ;;  %s10810_s4 = inlined_call_operand.vmem [shape: bf16[4,4], index: 4, kind: input, shape index: {}]   ;;  %s10811_s5 = inlined_call_operand.vmem [shape: bf16[4,4], index: 5, kind: input, shape index: {}]   ;;  %s10812_s6 = inlined_call_operand.vmem [shape: f32[1,4], index: 6, kind: input, shape index: {}]   ;;  %s10813_s7 = inlined_call_operand.vmem [shape: f32[2,16,16,4], index: 7, kind: output, shape index: {}]  }
   0x1 LB: > { %s5511_s25 = sadd.s32 4294967295, %s7198_s24   ;;  %p5515_p0 = scmp.ge.s32.totalorder %s7198_s24, 1  ;;  %s7198_s24 = sphi %s7254_s24, %s17_s24  }
   0x2   : > { %p247_p1 = scmp.lt.s32.totalorder %s7198_s24, 3 }
   0x4   : > { %p248_p2 = pnand %p5515_p0, %p247_p1 }
   0x6   : > { %251 = sbr.rel (%p248_p2) target bundleno = 1674 (0x68a), region = 48 }
   0xb   : > { %p284_p3 = scmp.lt.s32.totalorder %s5511_s25, 1  ;;  %s7200_s30 = smov 4   ;;  %vm346_vm0 = vcmask 31744   ;;  %vm303_vm1 = vcmask 58368   ;;  %vm300_vm2 = vcmask 64512   ;;  %v10814_v63 = vmov 0.0  }
   0xc   : > { %304 = vst.msk [vmem:[#allocation2 + $0x10] sm:$0x3] %vm303_vm1, %v10814_v63  ;;  %vm309_vm3 = vcmask 57344   ;;  %s7202_s11 = smov 8   ;;  %s7203_s12 = smov 16   ;;  %vm681_vm4 = vcmask 64544  }
   0xd   : > { %s11128_s25 = smov (!%p284_p3, %s5511_s25), 1  ;;  %301 = vst.msk [vmem:[#allocation2] sm:$0xff] %vm300_vm2, %v10814_v63  ;;  %s7204_s13 = smov 24   ;;  %vm2391_vm5 = vcmask 1043456   ;;  %vm2059_vm6 = vcmask 130048   ;;  %vm2092_vm7 = vcmask 195584  }
   0xe   : > { %s5740_s26 = sshll.u32 %s11128_s25, 7  ;;  %302 = vst.msk [vmem:[#allocation2 + $0x8] sm:$0xff] %vm300_vm2, %v10814_v63  ;;  %s7205_s14 = smov 32   ;;  %vm2158_vm8 = vcmask 326656   ;;  %vm2125_vm9 = vcmask 261120   ;;  %vm2191_vm10 = vcmask 392192  }
   0xf   : > { %s7270_s29 = scalar_lea.vmem %s10807_s1, %s5740_s26  ;;  %s7307_s10 = scalar_lea.vmem %s10806_s0, %s5740_s26  ;;  %328 = vst.msk [vmem:[#allocation2 + $0x11] sm:$0x1] %vm309_vm3, %v10814_v63  ;;  %vm2224_vm11 = vcmask 457728   ;;  %vm2257_vm12 = vcmask 523264   ;;  %vm2342_vm13 = vcmask 588800   ;;  %vm349_vm15 = vcmask 25600  }
  0x10   : > { %v428_v0 = vld [vmem:[%s7270_s29 + $0x10] sm:$0xff]   ;;  %v424_v1 = vld [vmem:[%s7270_s29] sm:$0xff]   ;;  %v430_v7 = vld [vmem:[%s7270_s29 + $0x18] sm:$0xff]   ;;  %310 = vst.msk [vmem:[#allocation2] sm:$0x1] %vm309_vm3, %v10814_v63  ;;  %s7206_s15 = smov 40  }
  0x11   : > { %v525_v2 = vunpack.c.l.bf16 %v428_v0  ;;  %v526_v3 = vunpack.c.h.bf16 %v428_v0  ;;  %v521_v4 = vunpack.c.l.bf16 %v424_v1  ;;  %v522_v5 = vunpack.c.h.bf16 %v424_v1  ;;  %v432_v6 = vld [vmem:[%s7270_s29 + $0x20] sm:$0xff]   ;;  %v426_v8 = vld [vmem:[%s7270_s29 + $0x8] sm:$0xff]   ;;  %v436_v23 = vld [vmem:[%s7270_s29 + $0x30] sm:$0xff]   ;;  %306 = vst.msk [vmem:[#allocation2 + $0x198] sm:$0xff] %vm300_vm2, %v10814_v63  ;;  %s7207_s16 = smov 48   ;;  %s7208_s17 = smov 56  }
  0x12   : > { %v529_v11 = vunpack.c.l.bf16 %v432_v6  ;;  %v530_v12 = vunpack.c.h.bf16 %v432_v6  ;;  %v527_v13 = vunpack.c.l.bf16 %v430_v7  ;;  %v528_v14 = vunpack.c.h.bf16 %v430_v7  ;;  %v434_v17 = vld [vmem:[%s7270_s29 + $0x28] sm:$0xff]   ;;  %v438_v24 = vld [vmem:[%s7270_s29 + $0x38] sm:$0xff]   ;;  %v440_v30 = vld [vmem:[%s7270_s29 + $0x40] sm:$0xff]   ;;  %307 = vst.msk [vmem:[#allocation2 + $0x1a0] sm:$0xff] %vm300_vm2, %v10814_v63  ;;  %s7209_s18 = smov 64  }
  0x13   : > { %v5813_v9 = vpack.i.bf16 %v526_v3, %v525_v2  ;;  %v5803_v10 = vpack.i.bf16 %v522_v5, %v521_v4  ;;  %v523_v15 = vunpack.c.l.bf16 %v426_v8  ;;  %v524_v16 = vunpack.c.h.bf16 %v426_v8  ;;  %v442_v35 = vld [vmem:[%s7270_s29 + $0x48] sm:$0xff]   ;;  %v444_v36 = vld [vmem:[%s7270_s29 + $0x50] sm:$0xff]   ;;  %v446_v42 = vld [vmem:[%s7270_s29 + $0x58] sm:$0xff]   ;;  %308 = vst.msk [vmem:[#allocation2 + $0x1a8] sm:$0x3] %vm303_vm1, %v10814_v63 }
  0x14   : > { %v5823_v18 = vpack.i.bf16 %v530_v12, %v529_v11  ;;  %v531_v19 = vunpack.c.l.bf16 %v434_v17  ;;  %v532_v20 = vunpack.c.h.bf16 %v434_v17  ;;  %v5818_v21 = vpack.i.bf16 %v528_v14, %v527_v13  ;;  %v448_v47 = vld [vmem:[%s7270_s29 + $0x60] sm:$0xff]   ;;  %v450_v48 = vld [vmem:[%s7270_s29 + $0x68] sm:$0xff]   ;;  %v452_v54 = vld [vmem:[%s7270_s29 + $0x70] sm:$0xff]   ;;  %311 = vst.msk [vmem:[#allocation2 + $0x18] sm:$0x1] %vm309_vm3, %v10814_v63 }
  0x15   : > { %5814 = vrot.lane.b32.xlu1 %v5813_v9, %s7200_s30  ;;  %5804 = vrot.lane.b32.xlu0 %v5803_v10, %s7200_s30  ;;  %v5808_v22 = vpack.i.bf16 %v524_v16, %v523_v15  ;;  %v533_v26 = vunpack.c.l.bf16 %v436_v23  ;;  %v534_v27 = vunpack.c.h.bf16 %v436_v23  ;;  %v535_v28 = vunpack.c.l.bf16 %v438_v24  ;;  %v400_v60 = vld [vmem:[%s7307_s10 + $0x20] sm:$0xff]   ;;  %v396_v0 = vld [vmem:[%s7307_s10 + $0x10] sm:$0xff]   ;;  %312 = vst.msk [vmem:[#allocation2 + $0x30] sm:$0x1] %vm309_vm3, %v10814_v63 }
  0x16   : > { %5824 = vrot.lane.b32.xlu2 %v5823_v18, %s7200_s30  ;;  %v5828_v25 = vpack.i.bf16 %v532_v20, %v531_v19  ;;  %v536_v29 = vunpack.c.h.bf16 %v438_v24  ;;  %v537_v31 = vunpack.c.l.bf16 %v440_v30  ;;  %v538_v32 = vunpack.c.h.bf16 %v440_v30  ;;  %v392_v3 = vld [vmem:[%s7307_s10] sm:$0xff]   ;;  %v747_v8 = vld [vmem:[#allocation2 + $0x9] sm:$0xff]  ;;  %313 = vst.msk [vmem:[#allocation2 + $0x48] sm:$0x1] %vm309_vm3, %v10814_v63  ;;  %v454_v15 = vld [vmem:[%s7270_s29 + $0x78] sm:$0xff]  }
  0x17   : > { %v5833_v33 = vpack.i.bf16 %v534_v27, %v533_v26  ;;  %v539_v38 = vunpack.c.l.bf16 %v442_v35  ;;  %v540_v39 = vunpack.c.h.bf16 %v442_v35  ;;  %v541_v40 = vunpack.c.l.bf16 %v444_v36  ;;  %v778_v6 = vld [vmem:[#allocation2 + $0x2] sm:$0xff]  ;;  %v779_v9 = vld [vmem:[#allocation2 + $0xa] sm:$0xff]  ;;  %314 = vst.msk [vmem:[#allocation2 + $0x60] sm:$0x1] %vm309_vm3, %v10814_v63  ;;  %v398_v35 = vld [vmem:[%s7307_s10 + $0x18] sm:$0xff]  }
  0x18   : > { %v5838_v34 = vpack.i.bf16 %v536_v29, %v535_v28  ;;  %v5843_v37 = vpack.i.bf16 %v538_v32, %v537_v31  ;;  %v542_v41 = vunpack.c.h.bf16 %v444_v36  ;;  %v543_v43 = vunpack.c.l.bf16 %v446_v42  ;;  %v746_v7 = vld [vmem:[#allocation2 + $0x1] sm:$0xff]  ;;  %315 = vst.msk [vmem:[#allocation2 + $0x78] sm:$0x1] %vm309_vm3, %v10814_v63 }
  0x19   : > { %v544_v44 = vunpack.c.h.bf16 %v446_v42  ;;  %v5848_v45 = vpack.i.bf16 %v540_v39, %v539_v38  ;;  %v545_v50 = vunpack.c.l.bf16 %v448_v47  ;;  %v546_v51 = vunpack.c.h.bf16 %v448_v47  ;;  %316 = vst.msk [vmem:[#allocation2 + $0x90] sm:$0x1] %vm309_vm3, %v10814_v63  ;;  %v402_v30 = vld [vmem:[%s7307_s10 + $0x28] sm:$0xff]  }
  0x1a   : > { %v5853_v46 = vpack.i.bf16 %v542_v41, %v541_v40  ;;  %v547_v52 = vunpack.c.l.bf16 %v450_v48  ;;  %v548_v53 = vunpack.c.h.bf16 %v450_v48  ;;  %v549_v55 = vunpack.c.l.bf16 %v452_v54  ;;  %317 = vst.msk [vmem:[#allocation2 + $0xa8] sm:$0x1] %vm309_vm3, %v10814_v63  ;;  %v394_v42 = vld [vmem:[%s7307_s10 + $0x8] sm:$0xff]   ;;  %v408_v48 = vld [vmem:[%s7307_s10 + $0x40] sm:$0xff]  }
  0x1b   : > { %v5858_v49 = vpack.i.bf16 %v544_v44, %v543_v43  ;;  %v550_v56 = vunpack.c.h.bf16 %v452_v54  ;;  %v5863_v57 = vpack.i.bf16 %v546_v51, %v545_v50  ;;  %v464_v61 = vunpack.c.l.bf16 %v400_v60  ;;  %318 = vst.msk [vmem:[#allocation2 + $0xc0] sm:$0x1] %vm309_vm3, %v10814_v63 }
  0x1c   : > { %v5868_v58 = vpack.i.bf16 %v548_v53, %v547_v52  ;;  %v465_v62 = vunpack.c.h.bf16 %v400_v60  ;;  %v460_v1 = vunpack.c.l.bf16 %v396_v0  ;;  %v461_v2 = vunpack.c.h.bf16 %v396_v0  ;;  %319 = vst.msk [vmem:[#allocation2 + $0xd8] sm:$0x1] %vm309_vm3, %v10814_v63  ;;  %v404_v53 = vld [vmem:[%s7307_s10 + $0x30] sm:$0xff]   ;;  %v414_v0 = vld [vmem:[%s7307_s10 + $0x58] sm:$0xff]  }
  0x1d   : > { %5819 = vrot.lane.b32.xlu1 %v5818_v21, %s7200_s30  ;;  %5809 = vrot.lane.b32.xlu0 %v5808_v22, %s7200_s30  ;;  %v5873_v59 = vpack.i.bf16 %v550_v56, %v549_v55  ;;  %497 = vst.msk [vmem:[#allocation2 + $0x79] sm:$0xff] %vm346_vm0, %v464_v61  ;;  %v456_v4 = vunpack.c.l.bf16 %v392_v3  ;;  %v457_v5 = vunpack.c.h.bf16 %v392_v3  ;;  %v5883_v10 = vpack.i.bf16 %v747_v8, %v746_v7 }
  0x1e   : > { %5829 = vrot.lane.b32.xlu2 %v5828_v25, %s7200_s30  ;;  %498 = vst.msk [vmem:[#allocation2 + $0x81] sm:$0xff] %vm346_vm0, %v465_v62  ;;  %v5888_v11 = vpack.i.bf16 %v779_v9, %v778_v6  ;;  %v551_v16 = vunpack.c.l.bf16 %v454_v15  ;;  %v552_v17 = vunpack.c.h.bf16 %v454_v15  ;;  %v462_v39 = vunpack.c.l.bf16 %v398_v35  ;;  %v406_v9 = vld [vmem:[%s7307_s10 + $0x38] sm:$0xff]  }
  0x1f   : > { %493 = vst.msk [vmem:[#allocation2 + $0x49] sm:$0xff] %vm346_vm0, %v460_v1  ;;  %v463_v40 = vunpack.c.h.bf16 %v398_v35  ;;  %v472_v51 = vunpack.c.l.bf16 %v408_v48  ;;  %v473_v52 = vunpack.c.h.bf16 %v408_v48  ;;  %v468_v60 = vunpack.c.l.bf16 %v404_v53 }
  0x20   : > { %494 = vst.msk [vmem:[#allocation2 + $0x51] sm:$0xff] %vm346_vm0, %v461_v2  ;;  %v5878_v20 = vpack.i.bf16 %v552_v17, %v551_v16  ;;  %v469_v61 = vunpack.c.h.bf16 %v404_v53  ;;  %v478_v6 = vunpack.c.l.bf16 %v414_v0  ;;  %v479_v8 = vunpack.c.h.bf16 %v414_v0  ;;  %v410_v17 = vld [vmem:[%s7307_s10 + $0x48] sm:$0xff]  }
  0x21   : > { %489 = vst.msk [vmem:[#allocation2 + $0x19] sm:$0xff] %vm346_vm0, %v456_v4  ;;  %v470_v15 = vunpack.c.l.bf16 %v406_v9  ;;  %v471_v16 = vunpack.c.h.bf16 %v406_v9  ;;  %vm355_vm1 = vcmask 24576  }
  0x22   : > { %490 = vst.msk [vmem:[#allocation2 + $0x21] sm:$0xff] %vm346_vm0, %v457_v5 }
  0x23   : > { %320 = vst.msk [vmem:[#allocation2 + $0xf0] sm:$0x1] %vm309_vm3, %v10814_v63 }
  0x24   : > { %321 = vst.msk [vmem:[#allocation2 + $0x108] sm:$0x1] %vm309_vm3, %v10814_v63 }
  0x25   : > { %5834 = vrot.lane.b32.xlu0 %v5833_v33, %s7200_s30  ;;  %5839 = vrot.lane.b32.xlu1 %v5838_v34, %s7200_s30  ;;  %322 = vst.msk [vmem:[#allocation2 + $0x120] sm:$0x1] %vm309_vm3, %v10814_v63  ;;  %v466_v33 = vunpack.c.l.bf16 %v402_v30  ;;  %v467_v34 = vunpack.c.h.bf16 %v402_v30  ;;  %v420_v30 = vld [vmem:[%s7307_s10 + $0x70] sm:$0xff]  }
  0x26   : > { %5844 = vrot.lane.b32.xlu2 %v5843_v37, %s7200_s30  ;;  %323 = vst.msk [vmem:[#allocation2 + $0x138] sm:$0x1] %vm309_vm3, %v10814_v63 }
  0x27   : > { %324 = vst.msk [vmem:[#allocation2 + $0x150] sm:$0x1] %vm309_vm3, %v10814_v63 }
  0x28   : > { %325 = vst.msk [vmem:[#allocation2 + $0x168] sm:$0x1] %vm309_vm3, %v10814_v63 }
  0x29   : > { %326 = vst.msk [vmem:[#allocation2 + $0x180] sm:$0x1] %vm309_vm3, %v10814_v63 }
  0x2a   : > { %329 = vst.msk [vmem:[#allocation2 + $0x29] sm:$0x1] %vm309_vm3, %v10814_v63 }
  0x2b   : > { %330 = vst.msk [vmem:[#allocation2 + $0x41] sm:$0x1] %vm309_vm3, %v10814_v63 }
  0x2c   : > { %331 = vst.msk [vmem:[#allocation2 + $0x59] sm:$0x1] %vm309_vm3, %v10814_v63 }
  0x2d   : > { %5849 = vrot.lane.b32.xlu0 %v5848_v45, %s7200_s30  ;;  %5854 = vrot.lane.b32.xlu1 %v5853_v46, %s7200_s30  ;;  %332 = vst.msk [vmem:[#allocation2 + $0x71] sm:$0x1] %vm309_vm3, %v10814_v63  ;;  %v458_v45 = vunpack.c.l.bf16 %v394_v42  ;;  %v459_v46 = vunpack.c.h.bf16 %v394_v42 }
  0x2e   : > { %5859 = vrot.lane.b32.xlu2 %v5858_v49, %s7200_s30  ;;  %333 = vst.msk [vmem:[#allocation2 + $0x89] sm:$0x1] %vm309_vm3, %v10814_v63 }
  0x2f   : > { %334 = vst.msk [vmem:[#allocation2 + $0xa1] sm:$0x1] %vm309_vm3, %v10814_v63 }
  0x30   : > { %335 = vst.msk [vmem:[#allocation2 + $0xb9] sm:$0x1] %vm309_vm3, %v10814_v63 }
  0x31   : > { %336 = vst.msk [vmem:[#allocation2 + $0xd1] sm:$0x1] %vm309_vm3, %v10814_v63 }
  0x32   : > { %337 = vst.msk [vmem:[#allocation2 + $0xe9] sm:$0x1] %vm309_vm3, %v10814_v63 }
  0x33   : > { %338 = vst.msk [vmem:[#allocation2 + $0x101] sm:$0x1] %vm309_vm3, %v10814_v63 }
  0x34   : > { %339 = vst.msk [vmem:[#allocation2 + $0x119] sm:$0x1] %vm309_vm3, %v10814_v63 }
  0x35   : > { %5864 = vrot.lane.b32.xlu0 %v5863_v57, %s7200_s30  ;;  %5869 = vrot.lane.b32.xlu1 %v5868_v58, %s7200_s30  ;;  %340 = vst.msk [vmem:[#allocation2 + $0x131] sm:$0x1] %vm309_vm3, %v10814_v63 }
  0x36   : > { %5874 = vrot.lane.b32.xlu2 %v5873_v59, %s7200_s30  ;;  %341 = vst.msk [vmem:[#allocation2 + $0x149] sm:$0x1] %vm309_vm3, %v10814_v63 }
  0x37   : > { %342 = vst.msk [vmem:[#allocation2 + $0x161] sm:$0x1] %vm309_vm3, %v10814_v63 }
  0x38   : > { %343 = vst.msk [vmem:[#allocation2 + $0x179] sm:$0x1] %vm309_vm3, %v10814_v63 }
  0x39   : > { %344 = vst.msk [vmem:[#allocation2 + $0x191] sm:$0x1] %vm309_vm3, %v10814_v63 }
  0x3a   : > { %347 = vst.msk [vmem:[#allocation3] sm:$0xff] %vm346_vm0, %v10814_v63 }
  0x3b   : > { %348 = vst.msk [vmem:[#allocation3 + $0x8] sm:$0xff] %vm346_vm0, %v10814_v63 }
  0x3c   : > { %352 = vst.msk [vmem:[#allocation3 + $0x198] sm:$0xff] %vm346_vm0, %v10814_v63 }
  0x3d   : > { %5884 = vrot.lane.b32.xlu1 %v5883_v10, %s7202_s11  ;;  %5879 = vrot.lane.b32.xlu0 %v5878_v20, %s7200_s30  ;;  %353 = vst.msk [vmem:[#allocation3 + $0x1a0] sm:$0xff] %vm346_vm0, %v10814_v63 }
  0x3e   : > { %5889 = vrot.lane.b32.xlu2 %v5888_v11, %s7203_s12  ;;  %327 = vst.msk [vmem:[#allocation2 + $0x198] sm:$0x1] %vm309_vm3, %v10814_v63 }
  0x3f   : > { %345 = vst.msk [vmem:[#allocation2 + $0x1a9] sm:$0x1] %vm309_vm3, %v10814_v63 }
  0x40   : > { %499 = vst.msk [vmem:[#allocation2 + $0x91] sm:$0xff] %vm346_vm0, %v466_v33 }
  0x41   : > { %500 = vst.msk [vmem:[#allocation2 + $0x99] sm:$0xff] %vm346_vm0, %v467_v34 }
  0x42   : > { %495 = vst.msk [vmem:[#allocation2 + $0x61] sm:$0xff] %vm346_vm0, %v462_v39  ;;  %v485_v39 = vunpack.c.h.bf16 %v420_v30 }
  0x43   : > { %496 = vst.msk [vmem:[#allocation2 + $0x69] sm:$0xff] %vm346_vm0, %v463_v40 }
  0x44   : > { %491 = vst.msk [vmem:[#allocation2 + $0x31] sm:$0xff] %vm346_vm0, %v458_v45 }
  0x45   : > { %492 = vst.msk [vmem:[#allocation2 + $0x39] sm:$0xff] %vm346_vm0, %v459_v46 }
  0x46   : > { %505 = vst.msk [vmem:[#allocation2 + $0xd9] sm:$0xff] %vm346_vm0, %v472_v51 }
  0x47   : > { %506 = vst.msk [vmem:[#allocation2 + $0xe1] sm:$0xff] %vm346_vm0, %v473_v52 }
  0x48   : > { %501 = vst.msk [vmem:[#allocation2 + $0xa9] sm:$0xff] %vm346_vm0, %v468_v60  ;;  %v418_v60 = vld [vmem:[%s7307_s10 + $0x68] sm:$0xff]  }
  0x49   : > { %502 = vst.msk [vmem:[#allocation2 + $0xb1] sm:$0xff] %vm346_vm0, %v469_v61 }
  0x4a   : > { %511 = vst.msk [vmem:[#allocation2 + $0x121] sm:$0xff] %vm346_vm0, %v478_v6 }
  0x4b   : > { %512 = vst.msk [vmem:[#allocation2 + $0x129] sm:$0xff] %vm346_vm0, %v479_v8 }
  0x4c   : > { %503 = vst.msk [vmem:[#allocation2 + $0xc1] sm:$0xff] %vm346_vm0, %v470_v15 }
  0x4d   : > { %504 = vst.msk [vmem:[#allocation2 + $0xc9] sm:$0xff] %vm346_vm0, %v471_v16 }
  0x4e   : > { %518 = vst.msk [vmem:[#allocation2 + $0x171] sm:$0xff] %vm346_vm0, %v485_v39 }
  0x70   : > { %v5825_v12 = vpop.permute.xlu2 %5824 }
  0x71   : > { %v5827_v13 = vunpack.i.h.bf16 %v5825_v12  ;;  %v5826_v14 = vunpack.i.l.bf16 %v5825_v12 }
  0x73   : > { %690 = vst.msk [vmem:[#allocation2 + $0x79] sm:$0xff] %vm681_vm4, %v5826_v14 }
  0x74   : > { %691 = vst.msk [vmem:[#allocation2 + $0x81] sm:$0xff] %vm681_vm4, %v5827_v13 }
  0x78   : > { %v5830_v32 = vpop.permute.xlu2 %5829 }
  0x79   : > { %v5831_v36 = vunpack.i.l.bf16 %v5830_v32  ;;  %v5832_v37 = vunpack.i.h.bf16 %v5830_v32 }
  0x7b   : > { %692 = vst.msk [vmem:[#allocation2 + $0x91] sm:$0xff] %vm681_vm4, %v5831_v36 }
  0x7c   : > { %693 = vst.msk [vmem:[#allocation2 + $0x99] sm:$0xff] %vm681_vm4, %v5832_v37 }
  0x80   : > { %v5845_v47 = vpop.permute.xlu2 %5844 }
  0x81   : > { %v5846_v55 = vunpack.i.l.bf16 %v5845_v47  ;;  %v5847_v57 = vunpack.i.h.bf16 %v5845_v47 }
  0x82   : > { %v758_v54 = vld [vmem:[#allocation2 + $0x91] sm:$0xff] }
  0x83   : > { %v759_v56 = vld [vmem:[#allocation2 + $0x99] sm:$0xff]  ;;  %698 = vst.msk [vmem:[#allocation2 + $0xd9] sm:$0xff] %vm681_vm4, %v5846_v55 }
  0x84   : > { %v7445_v59 = vpack.i.bf16 %v759_v56, %v758_v54  ;;  %699 = vst.msk [vmem:[#allocation2 + $0xe1] sm:$0xff] %vm681_vm4, %v5847_v57  ;;  %v791_v39 = vld [vmem:[#allocation2 + $0x9a] sm:$0xff] }
  0x87   : > { %v5815_v18 = vpop.permute.xlu1 %5814  ;;  %v5805_v19 = vpop.permute.xlu0 %5804 }
  0x88   : > { %v5817_v21 = vunpack.i.h.bf16 %v5815_v18  ;;  %v5816_v22 = vunpack.i.l.bf16 %v5815_v18  ;;  %v5806_v23 = vunpack.i.l.bf16 %v5805_v19  ;;  %v5807_v24 = vunpack.i.h.bf16 %v5805_v19  ;;  %v5860_v5 = vpop.permute.xlu2 %5859 }
  0x89   : > { %v5861_v11 = vunpack.i.l.bf16 %v5860_v5  ;;  %v5862_v13 = vunpack.i.h.bf16 %v5860_v5  ;;  %v483_v5 = vunpack.c.h.bf16 %v418_v60 }
  0x8a   : > { %686 = vst.msk [vmem:[#allocation2 + $0x49] sm:$0xff] %vm681_vm4, %v5816_v22  ;;  %v764_v18 = vld [vmem:[#allocation2 + $0xd9] sm:$0xff] }
  0x8b   : > { %687 = vst.msk [vmem:[#allocation2 + $0x51] sm:$0xff] %vm681_vm4, %v5817_v21  ;;  %v765_v20 = vld [vmem:[#allocation2 + $0xe1] sm:$0xff] }
  0x8c   : > { %682 = vst.msk [vmem:[#allocation2 + $0x19] sm:$0xff] %vm681_vm4, %v5806_v23  ;;  %v7472_v23 = vpack.i.bf16 %v765_v20, %v764_v18 }
  0x8d   : > { %683 = vst.msk [vmem:[#allocation2 + $0x21] sm:$0xff] %vm681_vm4, %v5807_v24  ;;  %v474_v24 = vunpack.c.l.bf16 %v410_v17 }
  0x8e   : > { %704 = vst.msk [vmem:[#allocation2 + $0x121] sm:$0xff] %vm681_vm4, %v5861_v11 }
  0x8f   : > { %v5820_v38 = vpop.permute.xlu1 %5819  ;;  %v5810_v41 = vpop.permute.xlu0 %5809  ;;  %705 = vst.msk [vmem:[#allocation2 + $0x129] sm:$0xff] %vm681_vm4, %v5862_v13 }
  0x90   : > { %v5821_v43 = vunpack.i.l.bf16 %v5820_v38  ;;  %v5822_v44 = vunpack.i.h.bf16 %v5820_v38  ;;  %v5811_v49 = vunpack.i.l.bf16 %v5810_v41  ;;  %v5812_v50 = vunpack.i.h.bf16 %v5810_v41  ;;  %v5875_v37 = vpop.permute.xlu2 %5874  ;;  %507 = vst.msk [vmem:[#allocation2 + $0xf1] sm:$0xff] %vm346_vm0, %v474_v24  ;;  %v412_v41 = vld [vmem:[%s7307_s10 + $0x50] sm:$0xff]  }
  0x91   : > { %v752_v25 = vld [vmem:[#allocation2 + $0x49] sm:$0xff]  ;;  %v484_v38 = vunpack.c.l.bf16 %v420_v30  ;;  %v5877_v45 = vunpack.i.h.bf16 %v5875_v37  ;;  %v476_v47 = vunpack.c.l.bf16 %v412_v41  ;;  %v477_v48 = vunpack.c.h.bf16 %v412_v41  ;;  %516 = vst.msk [vmem:[#allocation2 + $0x159] sm:$0xff] %vm346_vm0, %v483_v5 }
  0x92   : > { %v753_v26 = vld [vmem:[#allocation2 + $0x51] sm:$0xff]  ;;  %688 = vst.msk [vmem:[#allocation2 + $0x61] sm:$0xff] %vm681_vm4, %v5821_v43  ;;  %v5876_v43 = vunpack.i.l.bf16 %v5875_v37 }
  0x93   : > { %v7404_v27 = vpack.i.bf16 %v753_v26, %v752_v25  ;;  %v748_v28 = vld [vmem:[#allocation2 + $0x19] sm:$0xff]  ;;  %689 = vst.msk [vmem:[#allocation2 + $0x69] sm:$0xff] %vm681_vm4, %v5822_v44  ;;  %v757_v26 = vld [vmem:[#allocation2 + $0x81] sm:$0xff] }
  0x94   : > { %v749_v29 = vld [vmem:[#allocation2 + $0x21] sm:$0xff]  ;;  %684 = vst.msk [vmem:[#allocation2 + $0x31] sm:$0xff] %vm681_vm4, %v5811_v49  ;;  %v756_v25 = vld [vmem:[#allocation2 + $0x79] sm:$0xff] }
  0x95   : > { %5904 = vrot.lane.b32.xlu1 %v7404_v27, %s7202_s11  ;;  %v7413_v31 = vpack.i.bf16 %v749_v29, %v748_v28  ;;  %685 = vst.msk [vmem:[#allocation2 + $0x39] sm:$0xff] %vm681_vm4, %v5812_v50  ;;  %v475_v28 = vunpack.c.h.bf16 %v410_v17  ;;  %v7481_v35 = vpack.i.bf16 %v757_v26, %v756_v25  ;;  %v770_v42 = vld [vmem:[#allocation2 + $0x121] sm:$0xff]  ;;  %v784_v26 = vld [vmem:[#allocation2 + $0x4a] sm:$0xff] }
  0x96   : > { %v771_v44 = vld [vmem:[#allocation2 + $0x129] sm:$0xff]  ;;  %517 = vst.msk [vmem:[#allocation2 + $0x169] sm:$0xff] %vm346_vm0, %v484_v38  ;;  %v416_v49 = vld [vmem:[%s7307_s10 + $0x60] sm:$0xff]   ;;  %v790_v38 = vld [vmem:[#allocation2 + $0x92] sm:$0xff] }
  0x97   : > { %5894 = vrot.lane.b32.xlu2 %v7413_v31, %s7202_s11  ;;  %v5835_v58 = vpop.permute.xlu0 %5834  ;;  %v5840_v14 = vpop.permute.xlu1 %5839  ;;  %508 = vst.msk [vmem:[#allocation2 + $0xf9] sm:$0xff] %vm346_vm0, %v475_v28  ;;  %v7494_v46 = vpack.i.bf16 %v771_v44, %v770_v42  ;;  %v480_v56 = vunpack.c.l.bf16 %v416_v49  ;;  %v481_v57 = vunpack.c.h.bf16 %v416_v49  ;;  %v788_v25 = vld [vmem:[#allocation2 + $0x7a] sm:$0xff]  ;;  %v785_v28 = vld [vmem:[#allocation2 + $0x52] sm:$0xff]  ;;  %v7556_v42 = vpack.i.bf16 %v791_v39, %v790_v38  ;;  %v797_v49 = vld [vmem:[#allocation2 + $0xe2] sm:$0xff] }
  0x98   : > { %v5836_v1 = vunpack.i.l.bf16 %v5835_v58  ;;  %v5837_v3 = vunpack.i.h.bf16 %v5835_v58  ;;  %v5841_v19 = vunpack.i.l.bf16 %v5840_v14  ;;  %v5842_v21 = vunpack.i.h.bf16 %v5840_v14  ;;  %710 = vst.msk [vmem:[#allocation2 + $0x169] sm:$0xff] %vm681_vm4, %v5876_v43  ;;  %v7624_v38 = vld [vmem:[#allocation2 + $0x20] sm:$0xff] }
  0x99   : > { %v754_v62 = vld [vmem:[#allocation2 + $0x61] sm:$0xff]  ;;  %711 = vst.msk [vmem:[#allocation2 + $0x171] sm:$0xff] %vm681_vm4, %v5877_v45  ;;  %v7544_v30 = vpack.i.bf16 %v785_v28, %v784_v26  ;;  %v7612_v26 = vld [vmem:[#allocation2 + $0x50] sm:$0xff] }
  0x9a   : > { %v755_v2 = vld [vmem:[#allocation2 + $0x69] sm:$0xff]  ;;  %694 = vst.msk [vmem:[#allocation2 + $0xa9] sm:$0xff] %vm681_vm4, %v5836_v1  ;;  %v819_v28 = vld [vmem:[#allocation2 + $0x80] sm:$0xff] }
  0x9b   : > { %v7454_v4 = vpack.i.bf16 %v755_v2, %v754_v62  ;;  %v750_v7 = vld [vmem:[#allocation2 + $0x31] sm:$0xff]  ;;  %695 = vst.msk [vmem:[#allocation2 + $0xb1] sm:$0xff] %vm681_vm4, %v5837_v3  ;;  %v482_v3 = vunpack.c.l.bf16 %v418_v60  ;;  %v786_v44 = vld [vmem:[#allocation2 + $0x62] sm:$0xff] }
  0x9c   : > { %v751_v10 = vld [vmem:[#allocation2 + $0x39] sm:$0xff]  ;;  %696 = vst.msk [vmem:[#allocation2 + $0xc1] sm:$0xff] %vm681_vm4, %v5841_v19  ;;  %v787_v45 = vld [vmem:[#allocation2 + $0x6a] sm:$0xff] }
  0x9d   : > { %5919 = vrot.lane.b32.xlu1 %v7445_v59, %s7202_s11  ;;  %v7463_v12 = vpack.i.bf16 %v751_v10, %v750_v7  ;;  %697 = vst.msk [vmem:[#allocation2 + $0xc9] sm:$0xff] %vm681_vm4, %v5842_v21  ;;  %v782_v15 = vld [vmem:[#allocation2 + $0x32] sm:$0xff]  ;;  %v783_v16 = vld [vmem:[#allocation2 + $0x3a] sm:$0xff]  ;;  %v803_v60 = vld [vmem:[#allocation2 + $0x12a] sm:$0xff] }
  0x9e   : > { %509 = vst.msk [vmem:[#allocation2 + $0x109] sm:$0xff] %vm346_vm0, %v476_v47  ;;  %v7534_v20 = vpack.i.bf16 %v783_v16, %v782_v15  ;;  %v7564_v47 = vpack.i.bf16 %v787_v45, %v786_v44 }
  0x9f   : > { %5909 = vrot.lane.b32.xlu2 %v7454_v4, %s7202_s11  ;;  %5899 = vrot.lane.b32.xlu0 %v7463_v12, %s7202_s11  ;;  %v5850_v22 = vpop.permute.xlu0 %5849  ;;  %v5855_v40 = vpop.permute.xlu1 %5854  ;;  %510 = vst.msk [vmem:[#allocation2 + $0x111] sm:$0xff] %vm346_vm0, %v477_v48  ;;  %v776_v6 = vld [vmem:[#allocation2 + $0x169] sm:$0xff]  ;;  %v796_v48 = vld [vmem:[#allocation2 + $0xda] sm:$0xff] }
  0xa0   : > { %v5851_v32 = vunpack.i.l.bf16 %v5850_v22  ;;  %v5852_v34 = vunpack.i.h.bf16 %v5850_v22  ;;  %v5856_v51 = vunpack.i.l.bf16 %v5855_v40  ;;  %v5857_v53 = vunpack.i.h.bf16 %v5855_v40  ;;  %513 = vst.msk [vmem:[#allocation2 + $0x139] sm:$0xff] %vm346_vm0, %v480_v56  ;;  %v777_v8 = vld [vmem:[#allocation2 + $0x171] sm:$0xff] }
  0xa1   : > { %v760_v29 = vld [vmem:[#allocation2 + $0xa9] sm:$0xff]  ;;  %514 = vst.msk [vmem:[#allocation2 + $0x141] sm:$0xff] %vm346_vm0, %v481_v57  ;;  %v7520_v10 = vpack.i.bf16 %v777_v8, %v776_v6 }
  0xa2   : > { %v761_v33 = vld [vmem:[#allocation2 + $0xb1] sm:$0xff]  ;;  %700 = vst.msk [vmem:[#allocation2 + $0xf1] sm:$0xff] %vm681_vm4, %v5851_v32 }
  0xa3   : > { %v7483_v36 = vpack.i.bf16 %v761_v33, %v760_v29  ;;  %701 = vst.msk [vmem:[#allocation2 + $0xf9] sm:$0xff] %vm681_vm4, %v5852_v34  ;;  %v762_v50 = vld [vmem:[#allocation2 + $0xc1] sm:$0xff]  ;;  %v808_v8 = vld [vmem:[#allocation2 + $0x16a] sm:$0xff] }
  0xa4   : > { %v763_v52 = vld [vmem:[#allocation2 + $0xc9] sm:$0xff]  ;;  %702 = vst.msk [vmem:[#allocation2 + $0x109] sm:$0xff] %vm681_vm4, %v5856_v51  ;;  %v780_v33 = vld [vmem:[#allocation2 + $0x1a] sm:$0xff] }
  0xa5   : > { %5934 = vrot.lane.b32.xlu1 %v7472_v23, %s7202_s11  ;;  %v7503_v55 = vpack.i.bf16 %v763_v52, %v762_v50  ;;  %703 = vst.msk [vmem:[#allocation2 + $0x111] sm:$0xff] %vm681_vm4, %v5857_v53  ;;  %v789_v29 = vld [vmem:[#allocation2 + $0x82] sm:$0xff]  ;;  %v795_v41 = vld [vmem:[#allocation2 + $0xca] sm:$0xff]  ;;  %v793_v53 = vld [vmem:[#allocation2 + $0xb2] sm:$0xff] }
  0xa6   : > { %515 = vst.msk [vmem:[#allocation2 + $0x151] sm:$0xff] %vm346_vm0, %v482_v3  ;;  %v7546_v32 = vpack.i.bf16 %v789_v29, %v788_v25  ;;  %v781_v34 = vld [vmem:[#allocation2 + $0x22] sm:$0xff]  ;;  %v792_v52 = vld [vmem:[#allocation2 + $0xaa] sm:$0xff] }
  0xa7   : > { %5914 = vrot.lane.b32.xlu0 %v7481_v35, %s7202_s11  ;;  %5924 = vrot.lane.b32.xlu2 %v7483_v36, %s7202_s11  ;;  %v5865_v54 = vpop.permute.xlu0 %5864  ;;  %v5870_v2 = vpop.permute.xlu1 %5869  ;;  %v7552_v37 = vpack.i.bf16 %v781_v34, %v780_v33  ;;  %v794_v40 = vld [vmem:[#allocation2 + $0xc2] sm:$0xff]  ;;  %v7576_v57 = vpack.i.bf16 %v793_v53, %v792_v52  ;;  %v7622_v34 = vld [vmem:[#allocation2 + $0x18] sm:$0xff]  ;;  %v839_v63 = vld [vmem:[#allocation2 + $0x170] sm:$0xff] }
  0xa8   : > { %v5866_v61 = vunpack.i.l.bf16 %v5865_v54  ;;  %v5867_v0 = vunpack.i.h.bf16 %v5865_v54  ;;  %v5871_v7 = vunpack.i.l.bf16 %v5870_v2  ;;  %v5872_v9 = vunpack.i.h.bf16 %v5870_v2  ;;  %v7610_v25 = vld [vmem:[#allocation2 + $0x48] sm:$0xff]  ;;  %v821_v52 = vld [vmem:[#allocation2 + $0x98] sm:$0xff]  ;;  %v824_v53 = vld [vmem:[#allocation2 + $0xc0] sm:$0xff] }
  0xa9   : > { %v766_v58 = vld [vmem:[#allocation2 + $0xf1] sm:$0xff]  ;;  %v7558_v43 = vpack.i.bf16 %v795_v41, %v794_v40  ;;  %v7568_v54 = vpack.i.bf16 %v797_v49, %v796_v48  ;;  %v7618_v29 = vpack.i.bf16 %v7612_v26, %v7610_v25  ;;  %v6043_v48 = vpack.i.bf16 %v7624_v38, %v7622_v34 }
  0xaa   : > { %v767_v62 = vld [vmem:[#allocation2 + $0xf9] sm:$0xff]  ;;  %706 = vst.msk [vmem:[#allocation2 + $0x139] sm:$0xff] %vm681_vm4, %v5866_v61  ;;  %v820_v49 = vld [vmem:[#allocation2 + $0x90] sm:$0xff] }
  0xab   : > { %v7512_v1 = vpack.i.bf16 %v767_v62, %v766_v58  ;;  %707 = vst.msk [vmem:[#allocation2 + $0x141] sm:$0xff] %vm681_vm4, %v5867_v0  ;;  %v768_v11 = vld [vmem:[#allocation2 + $0x109] sm:$0xff]  ;;  %v798_v0 = vld [vmem:[#allocation2 + $0xf2] sm:$0xff]  ;;  %v799_v2 = vld [vmem:[#allocation2 + $0xfa] sm:$0xff] }
  0xac   : > { %708 = vst.msk [vmem:[#allocation2 + $0x151] sm:$0xff] %vm681_vm4, %v5871_v7  ;;  %v769_v13 = vld [vmem:[#allocation2 + $0x111] sm:$0xff]  ;;  %v802_v58 = vld [vmem:[#allocation2 + $0x122] sm:$0xff]  ;;  %v7588_v6 = vpack.i.bf16 %v799_v2, %v798_v0 }
  0xad   : > { %5949 = vrot.lane.b32.xlu1 %v7494_v46, %s7202_s11  ;;  %709 = vst.msk [vmem:[#allocation2 + $0x159] sm:$0xff] %vm681_vm4, %v5872_v9  ;;  %v7528_v14 = vpack.i.bf16 %v769_v13, %v768_v11  ;;  %v800_v50 = vld [vmem:[#allocation2 + $0x10a] sm:$0xff]  ;;  %v801_v51 = vld [vmem:[#allocation2 + $0x112] sm:$0xff]  ;;  %v7580_v3 = vpack.i.bf16 %v803_v60, %v802_v58  ;;  %v7639_v60 = vpack.i.bf16 %v821_v52, %v820_v49 }
  0xae   : > { %v7570_v56 = vpack.i.bf16 %v801_v51, %v800_v50  ;;  %v7590_v7 = vld [vmem:[#allocation2 + $0x30] sm:$0xff]  ;;  %v7592_v11 = vld [vmem:[#allocation2 + $0x38] sm:$0xff]  ;;  %v825_v58 = vld [vmem:[#allocation2 + $0xc8] sm:$0xff] }
  0xaf   : > { %5929 = vrot.lane.b32.xlu0 %v7503_v55, %s7202_s11  ;;  %5939 = vrot.lane.b32.xlu2 %v7512_v1, %s7202_s11  ;;  %v809_v9 = vld [vmem:[#allocation2 + $0x172] sm:$0xff]  ;;  %v5880_v39 = vpop.permute.xlu0 %5879  ;;  %v7646_v0 = vld [vmem:[#allocation2 + $0x68] sm:$0xff]  ;;  %v7652_v2 = vpop.permute.xlu1 %5884 }
  0xb0   : > { %v7596_v16 = vpack.i.bf16 %v809_v9, %v808_v8  ;;  %v422_v40 = vld [vmem:[%s7307_s10 + $0x78] sm:$0xff]   ;;  %v5881_v41 = vunpack.i.l.bf16 %v5880_v39  ;;  %v5882_v51 = vunpack.i.h.bf16 %v5880_v39 }
  0xb1   : > { %v772_v17 = vld [vmem:[#allocation2 + $0x139] sm:$0xff]  ;;  %v486_v44 = vunpack.c.l.bf16 %v422_v40  ;;  %v487_v45 = vunpack.c.h.bf16 %v422_v40 }
  0xb2   : > { %v773_v18 = vld [vmem:[#allocation2 + $0x141] sm:$0xff]  ;;  %v826_v9 = vld [vmem:[#allocation2 + $0xd8] sm:$0xff] }
  0xb3   : > { %v7532_v19 = vpack.i.bf16 %v773_v18, %v772_v17  ;;  %v774_v21 = vld [vmem:[#allocation2 + $0x151] sm:$0xff]  ;;  %v804_v13 = vld [vmem:[#allocation2 + $0x13a] sm:$0xff]  ;;  %v805_v15 = vld [vmem:[#allocation2 + $0x142] sm:$0xff]  ;;  %v7600_v17 = vpack.i.bf16 %v7592_v11, %v7590_v7  ;;  %519 = vst.msk [vmem:[#allocation2 + $0x181] sm:$0xff] %vm346_vm0, %v486_v44 }
  0xb4   : > { %v775_v22 = vld [vmem:[#allocation2 + $0x159] sm:$0xff]  ;;  %v7606_v18 = vpack.i.bf16 %v805_v15, %v804_v13  ;;  %520 = vst.msk [vmem:[#allocation2 + $0x189] sm:$0xff] %vm346_vm0, %v487_v45  ;;  %v830_v15 = vld [vmem:[#allocation2 + $0x108] sm:$0xff]  ;;  %v823_v44 = vld [vmem:[#allocation2 + $0xb0] sm:$0xff] }
  0xb5   : > { %5964 = vrot.lane.b32.xlu1 %v7520_v10, %s7202_s11  ;;  %v7540_v24 = vpack.i.bf16 %v775_v22, %v774_v21  ;;  %v806_v61 = vld [vmem:[#allocation2 + $0x152] sm:$0xff]  ;;  %v807_v62 = vld [vmem:[#allocation2 + $0x15a] sm:$0xff]  ;;  %v7608_v21 = vpop.permute.xlu2 %5889  ;;  %712 = vst.msk [vmem:[#allocation2 + $0x181] sm:$0xff] %vm681_vm4, %v5881_v41  ;;  %v822_v41 = vld [vmem:[#allocation2 + $0xa8] sm:$0xff] }
  0xb6   : > { %v7582_v5 = vpack.i.bf16 %v807_v62, %v806_v61  ;;  %v818_v22 = vld [vmem:[#allocation2 + $0x78] sm:$0xff]  ;;  %v7641_v61 = vpack.i.bf16 %v825_v58, %v824_v53  ;;  %713 = vst.msk [vmem:[#allocation2 + $0x189] sm:$0xff] %vm681_vm4, %v5882_v51  ;;  %v7644_v62 = vld [vmem:[#allocation2 + $0x60] sm:$0xff]  ;;  %v7670_v45 = vpack.i.bf16 %v823_v44, %v822_v41  ;;  %v833_v51 = vld [vmem:[#allocation2 + $0x128] sm:$0xff] }
  0xb7   : > { %5944 = vrot.lane.b32.xlu0 %v7528_v14, %s7202_s11  ;;  %5954 = vrot.lane.b32.xlu2 %v7532_v19, %s7202_s11  ;;  %v7620_v33 = vpack.i.bf16 %v819_v28, %v818_v22  ;;  %v7656_v8 = vpack.i.bf16 %v7646_v0, %v7644_v62  ;;  %v827_v13 = vld [vmem:[#allocation2 + $0xe0] sm:$0xff]  ;;  %v831_v22 = vld [vmem:[#allocation2 + $0x110] sm:$0xff]  ;;  %v837_v53 = vld [vmem:[#allocation2 + $0x158] sm:$0xff] }
  0xb8   : > { %v7662_v39 = vpack.i.bf16 %v827_v13, %v826_v9  ;;  %v7664_v40 = vpack.i.bf16 %v831_v22, %v830_v15  ;;  %v836_v52 = vld [vmem:[#allocation2 + $0x150] sm:$0xff]  ;;  %v829_v22 = vld [vmem:[#allocation2 + $0xf8] sm:$0xff]  ;;  %v838_v44 = vld [vmem:[#allocation2 + $0x168] sm:$0xff] }
  0xb9   : > { %v7680_v13 = vpack.i.bf16 %v837_v53, %v836_v52  ;;  %v828_v15 = vld [vmem:[#allocation2 + $0xf0] sm:$0xff]  ;;  %v834_v52 = vld [vmem:[#allocation2 + $0x138] sm:$0xff]  ;;  %v835_v53 = vld [vmem:[#allocation2 + $0x140] sm:$0xff] }
  0xba   : > { %v7686_v41 = vpack.i.bf16 %v829_v22, %v828_v15  ;;  %v7700_v15 = vpack.i.bf16 %v835_v53, %v834_v52 }
  0xbd   : > { %5974 = vrot.lane.b32.xlu1 %v7534_v20, %s7203_s12 }
  0xbf   : > { %5959 = vrot.lane.b32.xlu0 %v7540_v24, %s7202_s11  ;;  %5979 = vrot.lane.b32.xlu2 %v7544_v30, %s7203_s12 }
  0xc5   : > { %5989 = vrot.lane.b32.xlu1 %v7546_v32, %s7203_s12 }
  0xc7   : > { %5969 = vrot.lane.b32.xlu0 %v7552_v37, %s7203_s12  ;;  %5994 = vrot.lane.b32.xlu2 %v7556_v42, %s7203_s12 }
  0xcd   : > { %6004 = vrot.lane.b32.xlu1 %v7558_v43, %s7203_s12 }
  0xcf   : > { %5984 = vrot.lane.b32.xlu0 %v7564_v47, %s7203_s12  ;;  %6009 = vrot.lane.b32.xlu2 %v7568_v54, %s7203_s12 }
  0xd5   : > { %6019 = vrot.lane.b32.xlu1 %v7570_v56, %s7203_s12 }
  0xd7   : > { %5999 = vrot.lane.b32.xlu0 %v7576_v57, %s7203_s12  ;;  %6024 = vrot.lane.b32.xlu2 %v7580_v3, %s7203_s12 }
  0xdd   : > { %6034 = vrot.lane.b32.xlu1 %v7582_v5, %s7203_s12 }
  0xdf   : > { %6014 = vrot.lane.b32.xlu0 %v7588_v6, %s7203_s12  ;;  %6039 = vrot.lane.b32.xlu2 %v7596_v16, %s7203_s12 }
  0xe5   : > { %6049 = vrot.lane.b32.xlu1 %v7600_v17, %s7204_s13 }
  0xe7   : > { %6029 = vrot.lane.b32.xlu0 %v7606_v18, %s7203_s12  ;;  %6054 = vrot.lane.b32.xlu2 %v7618_v29, %s7204_s13 }
  0xed   : > { %6064 = vrot.lane.b32.xlu1 %v7620_v33, %s7204_s13 }
  0xef   : > { %6044 = vrot.lane.b32.xlu0 %v6043_v48, %s7204_s13  ;;  %6069 = vrot.lane.b32.xlu2 %v7639_v60, %s7204_s13  ;;  %v832_v48 = vld [vmem:[#allocation2 + $0x120] sm:$0xff] }
  0xf0   : > { %v7676_v58 = vpack.i.bf16 %v833_v51, %v832_v48  ;;  %v7692_v51 = vpack.i.bf16 %v839_v63, %v838_v44  ;;  %v840_v63 = vld [vmem:[#allocation2 + $0x180] sm:$0xff]  ;;  %v841_v44 = vld [vmem:[#allocation2 + $0x188] sm:$0xff] }
  0xf1   : > { %v7633_v50 = vpop.permute.xlu2 %5894 }
  0xf5   : > { %6079 = vrot.lane.b32.xlu1 %v7641_v61, %s7204_s13 }
  0xf7   : > { %6059 = vrot.lane.b32.xlu0 %v7656_v8, %s7204_s13  ;;  %6084 = vrot.lane.b32.xlu2 %v7662_v39, %s7204_s13 }
  0xf9   : > { %v7660_v28 = vpop.permute.xlu2 %5909 }
  0xfd   : > { %6094 = vrot.lane.b32.xlu1 %v7664_v40, %s7204_s13 }
  0xff   : > { %6074 = vrot.lane.b32.xlu0 %v7670_v45, %s7204_s13  ;;  %6099 = vrot.lane.b32.xlu2 %v7676_v58, %s7204_s13 }
 0x101   : > { %v7678_v9 = vpop.permute.xlu2 %5924 }
 0x102   : > { %10911 = vst [vmem:[#allocation4_spill] sm:$0xff] %v7678_v9 }
 0x105   : > { %6109 = vrot.lane.b32.xlu1 %v7680_v13, %s7204_s13 }
 0x107   : > { %v7672_v49 = vpop.permute.xlu1 %5904  ;;  %6089 = vrot.lane.b32.xlu0 %v7686_v41, %s7204_s13  ;;  %6114 = vrot.lane.b32.xlu2 %v7692_v51, %s7204_s13 }
 0x109   : > { %v7696_v9 = vpop.permute.xlu2 %5939 }
 0x10a   : > { %10913 = vst [vmem:[#allocation6_spill] sm:$0xff] %v7696_v9  ;;  %v7712_v9 = vpack.i.bf16 %v841_v44, %v840_v63  ;;  %v873_v44 = vld [vmem:[#allocation2 + $0x189] sm:$0xff] }
 0x10d   : > { %6124 = vrot.lane.b32.xlu1 %v7413_v31, %s7205_s14 }
 0x10f   : > { %v7690_v48 = vpop.permute.xlu1 %5919  ;;  %6104 = vrot.lane.b32.xlu0 %v7700_v15, %s7204_s13  ;;  %6129 = vrot.lane.b32.xlu2 %v7463_v12, %s7205_s14 }
 0x110   : > { %10912 = vst [vmem:[#allocation5_spill] sm:$0xff] %v7690_v48 }
 0x111   : > { %v7702_v22 = vpop.permute.xlu0 %5899  ;;  %v7714_v31 = vpop.permute.xlu2 %5954 }
 0x112   : > { %10915 = vst [vmem:[#allocation8_spill] sm:$0xff] %v7714_v31 }
 0x115   : > { %6139 = vrot.lane.b32.xlu1 %v7454_v4, %s7205_s14 }
 0x117   : > { %v7706_v48 = vpop.permute.xlu1 %5934  ;;  %6119 = vrot.lane.b32.xlu0 %v7712_v9, %s7204_s13  ;;  %6144 = vrot.lane.b32.xlu2 %v7481_v35, %s7205_s14 }
 0x118   : > { %10914 = vst [vmem:[#allocation7_spill] sm:$0xff] %v7706_v48  ;;  %v964_v48 = vld [vmem:[#allocation2 + $0x159] sm:$0xff] }
 0x119   : > { %v7716_v52 = vpop.permute.xlu0 %5914  ;;  %v7726_v12 = vpop.permute.xlu2 %5979 }
 0x11d   : > { %6154 = vrot.lane.b32.xlu1 %v7483_v36, %s7205_s14 }
 0x11f   : > { %v7724_v53 = vpop.permute.xlu1 %5949  ;;  %6134 = vrot.lane.b32.xlu0 %v7404_v27, %s7205_s14  ;;  %6159 = vrot.lane.b32.xlu2 %v7503_v55, %s7205_s14 }
 0x120   : > { %10916 = vst [vmem:[#allocation9_spill] sm:$0xff] %v7724_v53 }
 0x121   : > { %v7730_v4 = vpop.permute.xlu0 %5929  ;;  %v7736_v63 = vpop.permute.xlu2 %5994 }
 0x122   : > { %10917 = vst [vmem:[#allocation10_spill] sm:$0xff] %v7730_v4  ;;  %v5891_v4 = vunpack.i.l.bf16 %v7608_v21 }
 0x125   : > { %6169 = vrot.lane.b32.xlu1 %v7512_v1, %s7205_s14  ;;  %v872_v1 = vld [vmem:[#allocation2 + $0x181] sm:$0xff] }
 0x127   : > { %v7738_v35 = vpop.permute.xlu1 %5964  ;;  %6149 = vrot.lane.b32.xlu0 %v7445_v59, %s7205_s14  ;;  %6174 = vrot.lane.b32.xlu2 %v7528_v14, %s7205_s14  ;;  %v7756_v59 = vpack.i.bf16 %v873_v44, %v872_v1  ;;  %v905_v44 = vld [vmem:[#allocation2 + $0x18a] sm:$0xff] }
 0x128   : > { %10918 = vst [vmem:[#allocation11_spill] sm:$0xff] %v7738_v35 }
 0x129   : > { %v7742_v36 = vpop.permute.xlu0 %5944  ;;  %v7748_v27 = vpop.permute.xlu2 %6009 }
 0x12a   : > { %10919 = vst [vmem:[#allocation12_spill] sm:$0xff] %v7742_v36  ;;  %v950_v36 = vld [vmem:[#allocation2 + $0xb1] sm:$0xff] }
 0x12b   : > { %10920 = vst [vmem:[#allocation13_spill] sm:$0xff] %v7748_v27  ;;  %v963_v27 = vld [vmem:[#allocation2 + $0x151] sm:$0xff] }
 0x12d   : > { %6184 = vrot.lane.b32.xlu1 %v7532_v19, %s7205_s14 }
 0x12f   : > { %v7750_v55 = vpop.permute.xlu1 %5974  ;;  %6164 = vrot.lane.b32.xlu0 %v7472_v23, %s7205_s14  ;;  %6189 = vrot.lane.b32.xlu2 %v7540_v24, %s7205_s14 }
 0x131   : > { %v7754_v35 = vpop.permute.xlu0 %5959  ;;  %v7762_v14 = vpop.permute.xlu2 %6024 }
 0x132   : > { %10921 = vst [vmem:[#allocation14_spill] sm:$0xff] %v7754_v35  ;;  %v942_v35 = vld [vmem:[#allocation2 + $0x51] sm:$0xff] }
 0x133   : > { %10922 = vst [vmem:[#allocation15_spill] sm:$0xff] %v7762_v14 }
 0x135   : > { %6199 = vrot.lane.b32.xlu1 %v7756_v59, %s7205_s14 }
 0x137   : > { %v7764_v19 = vpop.permute.xlu1 %5989  ;;  %6179 = vrot.lane.b32.xlu0 %v7494_v46, %s7205_s14  ;;  %6204 = vrot.lane.b32.xlu2 %v7552_v37, %s7206_s15 }
 0x139   : > { %v7768_v31 = vpop.permute.xlu0 %5969  ;;  %v7774_v23 = vpop.permute.xlu2 %6039 }
 0x13a   : > { %10923 = vst [vmem:[#allocation16_spill] sm:$0xff] %v7774_v23 }
 0x13d   : > { %6214 = vrot.lane.b32.xlu1 %v7544_v30, %s7206_s15 }
 0x13f   : > { %v7776_v24 = vpop.permute.xlu1 %6004  ;;  %6194 = vrot.lane.b32.xlu0 %v7520_v10, %s7205_s14  ;;  %6219 = vrot.lane.b32.xlu2 %v7564_v47, %s7206_s15 }
 0x140   : > { %10924 = vst [vmem:[#allocation17_spill] sm:$0xff] %v7776_v24  ;;  %v994_v24 = vld [vmem:[#allocation2 + $0x142] sm:$0xff] }
 0x141   : > { %v7780_v1 = vpop.permute.xlu0 %5984  ;;  %v7786_v46 = vpop.permute.xlu2 %6054 }
 0x145   : > { %6229 = vrot.lane.b32.xlu1 %v7556_v42, %s7206_s15 }
 0x147   : > { %v7788_v37 = vpop.permute.xlu1 %6019  ;;  %6209 = vrot.lane.b32.xlu0 %v7534_v20, %s7206_s15  ;;  %6234 = vrot.lane.b32.xlu2 %v7576_v57, %s7206_s15 }
 0x148   : > { %10925 = vst [vmem:[#allocation18_spill] sm:$0xff] %v7788_v37  ;;  %v973_v37 = vld [vmem:[#allocation2 + $0x4a] sm:$0xff] }
 0x149   : > { %v7792_v30 = vpop.permute.xlu0 %5999  ;;  %v7798_v10 = vpop.permute.xlu2 %6069 }
 0x14a   : > { %10926 = vst [vmem:[#allocation19_spill] sm:$0xff] %v7792_v30 }
 0x14d   : > { %6244 = vrot.lane.b32.xlu1 %v7568_v54, %s7206_s15 }
 0x14f   : > { %v7800_v47 = vpop.permute.xlu1 %6034  ;;  %6224 = vrot.lane.b32.xlu0 %v7546_v32, %s7206_s15  ;;  %6249 = vrot.lane.b32.xlu2 %v7588_v6, %s7206_s15 }
 0x150   : > { %10927 = vst [vmem:[#allocation20_spill] sm:$0xff] %v7800_v47 }
 0x151   : > { %v7804_v42 = vpop.permute.xlu0 %6014  ;;  %v7810_v20 = vpop.permute.xlu2 %6084 }
 0x152   : > { %10928 = vst [vmem:[#allocation21_spill] sm:$0xff] %v7804_v42  ;;  %v956_v42 = vld [vmem:[#allocation2 + $0xf9] sm:$0xff] }
 0x153   : > { %10929 = vst [vmem:[#allocation22_spill] sm:$0xff] %v7810_v20  ;;  %v993_v20 = vld [vmem:[#allocation2 + $0x13a] sm:$0xff] }
 0x155   : > { %6259 = vrot.lane.b32.xlu1 %v7580_v3, %s7206_s15  ;;  %v904_v3 = vld [vmem:[#allocation2 + $0x182] sm:$0xff] }
 0x156   : > { %v7828_v23 = vpack.i.bf16 %v905_v44, %v904_v3  ;;  %v940_v44 = vld [vmem:[#allocation2 + $0x39] sm:$0xff] }
 0x157   : > { %v7812_v57 = vpop.permute.xlu1 %6049  ;;  %6239 = vrot.lane.b32.xlu0 %v7558_v43, %s7206_s15  ;;  %6264 = vrot.lane.b32.xlu2 %v7606_v18, %s7206_s15 }
 0x159   : > { %v7816_v54 = vpop.permute.xlu0 %6029  ;;  %v7822_v32 = vpop.permute.xlu2 %6099 }
 0x15a   : > { %10930 = vst [vmem:[#allocation23_spill] sm:$0xff] %v7816_v54  ;;  %v972_v54 = vld [vmem:[#allocation2 + $0x3a] sm:$0xff] }
 0x15b   : > { %10931 = vst [vmem:[#allocation24_spill] sm:$0xff] %v7822_v32  ;;  %v946_v32 = vld [vmem:[#allocation2 + $0x81] sm:$0xff] }
 0x15d   : > { %6274 = vrot.lane.b32.xlu1 %v7596_v16, %s7206_s15 }
 0x15f   : > { %v7824_v6 = vpop.permute.xlu1 %6064  ;;  %6254 = vrot.lane.b32.xlu0 %v7570_v56, %s7206_s15  ;;  %6279 = vrot.lane.b32.xlu2 %v7828_v23, %s7206_s15 }
 0x161   : > { %v7830_v43 = vpop.permute.xlu0 %6044  ;;  %v7836_v16 = vpop.permute.xlu2 %6114 }
 0x162   : > { %10932 = vst [vmem:[#allocation25_spill] sm:$0xff] %v7836_v16  ;;  %v941_v16 = vld [vmem:[#allocation2 + $0x49] sm:$0xff] }
 0x165   : > { %6289 = vrot.lane.b32.xlu1 %v7618_v29, %s7207_s16 }
 0x167   : > { %v7838_v18 = vpop.permute.xlu1 %6079  ;;  %6269 = vrot.lane.b32.xlu0 %v7582_v5, %s7206_s15  ;;  %6294 = vrot.lane.b32.xlu2 %v7656_v8, %s7207_s16  ;;  %s7213_s15 = smov 28  }
 0x168   : > { %10933 = vst [vmem:[#allocation26_spill] sm:$0xff] %v7838_v18 }
 0x169   : > { %v7842_v47 = vpop.permute.xlu0 %6059  ;;  %v7850_v3 = vpop.permute.xlu2 %6129 }
 0x16d   : > { %6304 = vrot.lane.b32.xlu1 %v7639_v60, %s7207_s16 }
 0x16f   : > { %v7848_v56 = vpop.permute.xlu1 %6094  ;;  %6284 = vrot.lane.b32.xlu0 %v7600_v17, %s7207_s16  ;;  %6309 = vrot.lane.b32.xlu2 %v7670_v45, %s7207_s16 }
 0x170   : > { %10934 = vst [vmem:[#allocation27_spill] sm:$0xff] %v7848_v56  ;;  %v948_v56 = vld [vmem:[#allocation2 + $0x99] sm:$0xff] }
 0x171   : > { %v7854_v29 = vpop.permute.xlu0 %6074  ;;  %v7864_v60 = vpop.permute.xlu2 %6144 }
 0x175   : > { %6319 = vrot.lane.b32.xlu1 %v7662_v39, %s7207_s16 }
 0x177   : > { %v7860_v5 = vpop.permute.xlu1 %6109  ;;  %6299 = vrot.lane.b32.xlu0 %v7620_v33, %s7207_s16  ;;  %6324 = vrot.lane.b32.xlu2 %v7686_v41, %s7207_s16  ;;  %v939_v41 = vld [vmem:[#allocation2 + $0x31] sm:$0xff] }
 0x178   : > { %10935 = vst [vmem:[#allocation28_spill] sm:$0xff] %v7860_v5  ;;  %v971_v5 = vld [vmem:[#allocation2 + $0x32] sm:$0xff] }
 0x179   : > { %v7866_v8 = vpop.permute.xlu0 %6089  ;;  %v7878_v45 = vpop.permute.xlu2 %6159 }
 0x17a   : > { %10936 = vst [vmem:[#allocation29_spill] sm:$0xff] %v7866_v8  ;;  %v960_v8 = vld [vmem:[#allocation2 + $0x129] sm:$0xff] }
 0x17b   : > { %10938 = vst [vmem:[#allocation31_spill] sm:$0xff] %v7878_v45 }
 0x17d   : > { %6334 = vrot.lane.b32.xlu1 %v7676_v58, %s7207_s16 }
 0x17f   : > { %v7872_v17 = vpop.permute.xlu1 %6124  ;;  %6314 = vrot.lane.b32.xlu0 %v7641_v61, %s7207_s16  ;;  %6339 = vrot.lane.b32.xlu2 %v7700_v15, %s7207_s16  ;;  %v6363_v61 = vpack.i.bf16 %v940_v44, %v939_v41  ;;  %v6368_v41 = vpack.i.bf16 %v942_v35, %v941_v16 }
 0x180   : > { %v6127_v45 = vunpack.i.h.bf16 %v7872_v17 }
 0x181   : > { %v7876_v39 = vpop.permute.xlu0 %6104  ;;  %v7893_v15 = vpop.permute.xlu2 %6174 }
 0x182   : > { %10937 = vst [vmem:[#allocation30_spill] sm:$0xff] %v7876_v39  ;;  %v945_v39 = vld [vmem:[#allocation2 + $0x79] sm:$0xff] }
 0x183   : > { %10940 = vst [vmem:[#allocation33_spill] sm:$0xff] %v7893_v15  ;;  %v6383_v35 = vpack.i.bf16 %v946_v32, %v945_v39  ;;  %v952_v15 = vld [vmem:[#allocation2 + $0xc9] sm:$0xff] }
 0x185   : > { %6349 = vrot.lane.b32.xlu1 %v7692_v51, %s7207_s16 }
 0x187   : > { %v7884_v33 = vpop.permute.xlu1 %6139  ;;  %6329 = vrot.lane.b32.xlu0 %v7664_v40, %s7207_s16  ;;  %6354 = vrot.lane.b32.xlu2 %v7712_v9, %s7207_s16  ;;  %v937_v40 = vld [vmem:[#allocation2 + $0x198] sm:$0xff]  ;;  %v6378_v9 = vpack.i.bf16 %v972_v54, %v971_v5  ;;  %v943_v5 = vld [vmem:[#allocation2 + $0x61] sm:$0xff] }
 0x189   : > { %v7888_v58 = vpop.permute.xlu0 %6119  ;;  %v7905_v53 = vpop.permute.xlu2 %6189 }
 0x18a   : > { %10939 = vst [vmem:[#allocation32_spill] sm:$0xff] %v7888_v58  ;;  %v938_v58 = vld [vmem:[#allocation2 + $0x1a0] sm:$0xff] }
 0x18b   : > { %10942 = vst [vmem:[#allocation35_spill] sm:$0xff] %v7905_v53  ;;  %v949_v53 = vld [vmem:[#allocation2 + $0xa9] sm:$0xff] }
 0x18c   : > { %v6398_v32 = vpack.i.bf16 %v950_v36, %v949_v53 }
 0x18d   : > { %6364 = vrot.lane.b32.xlu1 %v6363_v61, %s7208_s17  ;;  %v6358_v61 = vpack.i.bf16 %v938_v58, %v937_v40 }
 0x18f   : > { %v7895_v51 = vpop.permute.xlu1 %6154  ;;  %6344 = vrot.lane.b32.xlu0 %v7680_v13, %s7207_s16  ;;  %6369 = vrot.lane.b32.xlu2 %v6368_v41, %s7208_s17  ;;  %v974_v13 = vld [vmem:[#allocation2 + $0x52] sm:$0xff]  ;;  %v944_v41 = vld [vmem:[#allocation2 + $0x69] sm:$0xff] }
 0x190   : > { %v6393_v54 = vpack.i.bf16 %v974_v13, %v973_v37  ;;  %v6373_v58 = vpack.i.bf16 %v944_v41, %v943_v5  ;;  %v947_v13 = vld [vmem:[#allocation2 + $0x91] sm:$0xff]  ;;  %v954_v41 = vld [vmem:[#allocation2 + $0xe1] sm:$0xff] }
 0x191   : > { %v7899_v44 = vpop.permute.xlu0 %6134 }
 0x195   : > { %6379 = vrot.lane.b32.xlu1 %v6378_v9, %s7209_s18  ;;  %v951_v9 = vld [vmem:[#allocation2 + $0xc1] sm:$0xff] }
 0x196   : > { %v6408_v37 = vpack.i.bf16 %v952_v15, %v951_v9  ;;  %v975_v9 = vld [vmem:[#allocation2 + $0x62] sm:$0xff] }
 0x197   : > { %v7903_v14 = vpop.permute.xlu1 %6169  ;;  %6359 = vrot.lane.b32.xlu0 %v6358_v61, %s7207_s16  ;;  %6384 = vrot.lane.b32.xlu2 %v6383_v35, %s7208_s17  ;;  %v7915_v61 = vpop.permute.xlu2 %6204  ;;  %v6388_v35 = vpack.i.bf16 %v948_v56, %v947_v13  ;;  %v957_v13 = vld [vmem:[#allocation2 + $0x109] sm:$0xff] }
 0x198   : > { %10941 = vst [vmem:[#allocation34_spill] sm:$0xff] %v7903_v14  ;;  %v976_v14 = vld [vmem:[#allocation2 + $0x6a] sm:$0xff]  ;;  %v6207_v18 = vunpack.i.h.bf16 %v7915_v61 }
 0x199   : > { %v7908_v16 = vpop.permute.xlu0 %6149  ;;  %v6403_v56 = vpack.i.bf16 %v976_v14, %v975_v9 }
 0x19d   : > { %6394 = vrot.lane.b32.xlu1 %v6393_v54, %s7209_s18  ;;  %v953_v54 = vld [vmem:[#allocation2 + $0xd9] sm:$0xff] }
 0x19f   : > { %v7912_v40 = vpop.permute.xlu1 %6184  ;;  %6374 = vrot.lane.b32.xlu0 %v6373_v58, %s7208_s17  ;;  %6399 = vrot.lane.b32.xlu2 %v6398_v32, %s7208_s17  ;;  %v6413_v58 = vpack.i.bf16 %v954_v41, %v953_v54  ;;  %v7926_v15 = vpop.permute.xlu2 %6219  ;;  %v978_v41 = vld [vmem:[#allocation2 + $0x82] sm:$0xff] }
 0x1a0   : > { %10943 = vst [vmem:[#allocation36_spill] sm:$0xff] %v7912_v40  ;;  %v955_v40 = vld [vmem:[#allocation2 + $0xf1] sm:$0xff] }
 0x1a1   : > { %v7917_v39 = vpop.permute.xlu0 %6164  ;;  %v6423_v36 = vpack.i.bf16 %v956_v42, %v955_v40  ;;  %v977_v40 = vld [vmem:[#allocation2 + $0x7a] sm:$0xff] }
 0x1a2   : > { %10944 = vst [vmem:[#allocation37_spill] sm:$0xff] %v7917_v39  ;;  %v6418_v14 = vpack.i.bf16 %v978_v41, %v977_v40  ;;  %v983_v41 = vld [vmem:[#allocation2 + $0xc2] sm:$0xff] }
 0x1a3   : > { %v965_v39 = vld [vmem:[#allocation2 + $0x169] sm:$0xff] }
 0x1a5   : > { %6409 = vrot.lane.b32.xlu1 %v6408_v37, %s7208_s17  ;;  %v959_v37 = vld [vmem:[#allocation2 + $0x121] sm:$0xff] }
 0x1a6   : > { %v6438_v42 = vpack.i.bf16 %v960_v8, %v959_v37  ;;  %v6453_v8 = vpack.i.bf16 %v964_v48, %v963_v27  ;;  %v979_v37 = vld [vmem:[#allocation2 + $0x92] sm:$0xff]  ;;  %v962_v48 = vld [vmem:[#allocation2 + $0x141] sm:$0xff] }
 0x1a7   : > { %v7921_v5 = vpop.permute.xlu1 %6199  ;;  %6389 = vrot.lane.b32.xlu0 %v6388_v35, %s7208_s17  ;;  %6414 = vrot.lane.b32.xlu2 %v6413_v58, %s7208_s17  ;;  %v7937_v58 = vpop.permute.xlu2 %6234 }
 0x1a8   : > { %10945 = vst [vmem:[#allocation38_spill] sm:$0xff] %v7921_v5  ;;  %v958_v5 = vld [vmem:[#allocation2 + $0x111] sm:$0xff] }
 0x1a9   : > { %v7924_v53 = vpop.permute.xlu0 %6179  ;;  %v6428_v35 = vpack.i.bf16 %v958_v5, %v957_v13  ;;  %v980_v13 = vld [vmem:[#allocation2 + $0x9a] sm:$0xff] }
 0x1aa   : > { %10946 = vst [vmem:[#allocation39_spill] sm:$0xff] %v7924_v53  ;;  %v982_v53 = vld [vmem:[#allocation2 + $0xb2] sm:$0xff] }
 0x1ad   : > { %6424 = vrot.lane.b32.xlu1 %v6423_v36, %s7208_s17  ;;  %v981_v36 = vld [vmem:[#allocation2 + $0xaa] sm:$0xff] }
 0x1ae   : > { %v6443_v5 = vpack.i.bf16 %v982_v53, %v981_v36  ;;  %v961_v36 = vld [vmem:[#allocation2 + $0x139] sm:$0xff] }
 0x1af   : > { %v7930_v32 = vpop.permute.xlu1 %6214  ;;  %6404 = vrot.lane.b32.xlu0 %v6403_v56, %s7209_s18  ;;  %6429 = vrot.lane.b32.xlu2 %v6428_v35, %s7208_s17  ;;  %v6433_v35 = vpack.i.bf16 %v980_v13, %v979_v37  ;;  %v7948_v40 = vpop.permute.xlu2 %6249  ;;  %v6448_v27 = vpack.i.bf16 %v962_v48, %v961_v36  ;;  %v986_v37 = vld [vmem:[#allocation2 + $0xe2] sm:$0xff]  ;;  %v987_v13 = vld [vmem:[#allocation2 + $0xf2] sm:$0xff]  ;;  %v989_v36 = vld [vmem:[#allocation2 + $0x10a] sm:$0xff] }
 0x1b0   : > { %10949 = vst [vmem:[#allocation42_spill] sm:$0xff] %v7948_v40  ;;  %v988_v40 = vld [vmem:[#allocation2 + $0xfa] sm:$0xff] }
 0x1b1   : > { %v7933_v54 = vpop.permute.xlu0 %6194 }
 0x1b2   : > { %10947 = vst [vmem:[#allocation40_spill] sm:$0xff] %v7933_v54  ;;  %v984_v54 = vld [vmem:[#allocation2 + $0xca] sm:$0xff] }
 0x1b5   : > { %6439 = vrot.lane.b32.xlu1 %v6438_v42, %s7208_s17 }
 0x1b7   : > { %v7939_v9 = vpop.permute.xlu1 %6229  ;;  %6419 = vrot.lane.b32.xlu0 %v6418_v14, %s7209_s18  ;;  %6444 = vrot.lane.b32.xlu2 %v6443_v5, %s7209_s18  ;;  %v6458_v14 = vpack.i.bf16 %v984_v54, %v983_v41  ;;  %v985_v5 = vld [vmem:[#allocation2 + $0xda] sm:$0xff] }
 0x1b8   : > { %v6473_v54 = vpack.i.bf16 %v986_v37, %v985_v5  ;;  %v970_v5 = vld [vmem:[#allocation2 + $0x1a1] sm:$0xff] }
 0x1b9   : > { %v7942_v56 = vpop.permute.xlu0 %6209 }
 0x1bd   : > { %6454 = vrot.lane.b32.xlu1 %v6453_v8, %s7208_s17 }
 0x1bf   : > { %v7946_v42 = vpop.permute.xlu1 %6244  ;;  %6434 = vrot.lane.b32.xlu0 %v6433_v35, %s7209_s18  ;;  %6459 = vrot.lane.b32.xlu2 %v6458_v14, %s7209_s18  ;;  %v7959_v35 = vpop.permute.xlu2 %6264  ;;  %v966_v14 = vld [vmem:[#allocation2 + $0x171] sm:$0xff] }
 0x1c0   : > { %10948 = vst [vmem:[#allocation41_spill] sm:$0xff] %v7946_v42  ;;  %v6483_v42 = vpack.i.bf16 %v988_v40, %v987_v13  ;;  %v6498_v40 = vpack.i.bf16 %v994_v24, %v993_v20  ;;  %v2314_v24 = vld [vmem:[%s10808_s2 + $0x20] sm:$0xf] }
 0x1c1   : > { %v7951_v53 = vpop.permute.xlu0 %6224  ;;  %10951 = vst [vmem:[#allocation44_spill] sm:$0xff] %v7959_v35  ;;  %v2332_v20 = vunpack.c.l.b16 %v2314_v24 }
 0x1c5   : > { %6469 = vrot.lane.b32.xlu1 %v7756_v59, %s7208_s17  ;;  %v6463_v59 = vpack.i.bf16 %v966_v14, %v965_v39  ;;  %v996_v14 = vld [vmem:[#allocation2 + $0x15a] sm:$0xff] }
 0x1c7   : > { %v7956_v8 = vpop.permute.xlu1 %6259  ;;  %6449 = vrot.lane.b32.xlu0 %v6448_v27, %s7208_s17  ;;  %6474 = vrot.lane.b32.xlu2 %v6473_v54, %s7209_s18  ;;  %v969_v27 = vld [vmem:[#allocation2 + $0x199] sm:$0xff]  ;;  %v7970_v13 = vpop.permute.xlu2 %6279 }
 0x1c8   : > { %10950 = vst [vmem:[#allocation43_spill] sm:$0xff] %v7956_v8  ;;  %v990_v8 = vld [vmem:[#allocation2 + $0x112] sm:$0xff]  ;;  %v6478_v39 = vpack.i.bf16 %v970_v5, %v969_v27  ;;  %v1001_v5 = vld [vmem:[#allocation2 + $0x19a] sm:$0xff] }
 0x1c9   : > { %v7961_v41 = vpop.permute.xlu0 %6239  ;;  %v6488_v37 = vpack.i.bf16 %v990_v8, %v989_v36  ;;  %10955 = vst [vmem:[#allocation48_spill] sm:$0xff] %v7970_v13  ;;  %v995_v54 = vld [vmem:[#allocation2 + $0x152] sm:$0xff]  ;;  %v991_v8 = vld [vmem:[#allocation2 + $0x122] sm:$0xff]  ;;  %v992_v36 = vld [vmem:[#allocation2 + $0x12a] sm:$0xff] }
 0x1ca   : > { %10952 = vst [vmem:[#allocation45_spill] sm:$0xff] %v7961_v41  ;;  %v6047_v41 = vunpack.i.h.bf16 %v7830_v43 }
 0x1cd   : > { %6484 = vrot.lane.b32.xlu1 %v6483_v42, %s7209_s18 }
 0x1cf   : > { %v7965_v48 = vpop.permute.xlu1 %6274  ;;  %6464 = vrot.lane.b32.xlu0 %v6463_v59, %s7208_s17  ;;  %6489 = vrot.lane.b32.xlu2 %v6488_v37, %s7209_s18  ;;  %v6503_v59 = vpack.i.bf16 %v996_v14, %v995_v54  ;;  %v7985_v27 = vpop.permute.xlu2 %6294  ;;  %v1002_v37 = vld [vmem:[#allocation2 + $0x1a2] sm:$0xff]  ;;  %v2337_v54 = vpack.c.b16 %v2332_v20, %v2332_v20  ;;  %v5777_v20 = vld [vmem:[%s10808_s2 + $0x10] sm:$0xff] }
 0x1d0   : > { %10953 = vst [vmem:[#allocation46_spill] sm:$0xff] %v7965_v48  ;;  %v6518_v14 = vpack.i.bf16 %v1002_v37, %v1001_v5 }
 0x1d1   : > { %v7968_v35 = vpop.permute.xlu0 %6254 }
 0x1d2   : > { %10954 = vst [vmem:[#allocation47_spill] sm:$0xff] %v7968_v35  ;;  %v998_v35 = vld [vmem:[#allocation2 + $0x172] sm:$0xff] }
 0x1d5   : > { %6499 = vrot.lane.b32.xlu1 %v6498_v40, %s7209_s18  ;;  %v6493_v40 = vpack.i.bf16 %v992_v36, %v991_v8 }
 0x1d7   : > { %v7974_v42 = vpop.permute.xlu1 %6289  ;;  %6479 = vrot.lane.b32.xlu0 %v6478_v39, %s7208_s17  ;;  %6504 = vrot.lane.b32.xlu2 %v6503_v59, %s7209_s18  ;;  %v997_v59 = vld [vmem:[#allocation2 + $0x16a] sm:$0xff]  ;;  %v7998_v24 = vpop.permute.xlu2 %6309 }
 0x1d8   : > { %v6508_v8 = vpack.i.bf16 %v998_v35, %v997_v59  ;;  %v5775_v35 = vld [vmem:[%s10808_s2] sm:$0xff]  ;;  %v5886_v59 = vunpack.i.l.bf16 %v7652_v2 }
 0x1d9   : > { %v7977_v48 = vpop.permute.xlu0 %6269 }
 0x1da   : > { %10956 = vst [vmem:[#allocation49_spill] sm:$0xff] %v7977_v48  ;;  %v2393_v48 = vsel %vm2391_vm5, %v2337_v54, 0 }
 0x1db   : > { %2398 = vmatpush.bf16.msra.mxu0 %v2393_v48  ;;  %v5776_v48 = vld [vmem:[%s10808_s2 + $0x8] sm:$0xff] }
 0x1dd   : > { %6514 = vrot.lane.b32.xlu1 %v7828_v23, %s7209_s18  ;;  %v5778_v23 = vld [vmem:[%s10808_s2 + $0x18] sm:$0xff] }
 0x1df   : > { %v7987_v39 = vpop.permute.xlu1 %6304  ;;  %6494 = vrot.lane.b32.xlu0 %v6493_v40, %s7209_s18  ;;  %6519 = vrot.lane.b32.xlu2 %v6518_v14, %s7209_s18  ;;  %v8014_v40 = vpop.permute.xlu2 %6324 }
 0x1e0   : > { %2399 = vmatpush.bf16.msra.mxu0 %v5778_v23  ;;  %10959 = vst [vmem:[#allocation52_spill] sm:$0xff] %v8014_v40 }
 0x1e1   : > { %v7990_v13 = vpop.permute.xlu0 %6284 }
 0x1e4   : > { %2400 = vmatpush.bf16.msra.mxu0 %v5777_v20  ;;  %v5887_v20 = vunpack.i.h.bf16 %v7652_v2 }
 0x1e7   : > { %v7996_v36 = vpop.permute.xlu1 %6319  ;;  %6509 = vrot.lane.b32.xlu0 %v6508_v8, %s7209_s18  ;;  %v714_v8 = vld [vmem:[#allocation2] sm:$0xff] }
 0x1e8   : > { %10957 = vst [vmem:[#allocation50_spill] sm:$0xff] %v7996_v36  ;;  %2401 = vmatpush.bf16.msra.mxu0 %v5776_v48  ;;  %v715_v48 = vld [vmem:[#allocation2 + $0x8] sm:$0xff]  ;;  %v5892_v36 = vunpack.i.h.bf16 %v7608_v21  ;;  %v2027_v40 = vsel %vm300_vm2, %v714_v8, %v5886_v59  ;;  %v6206_v59 = vunpack.i.l.bf16 %v7915_v61 }
 0x1e9   : > { %v8004_v5 = vpop.permute.xlu0 %6299  ;;  %v2060_v2 = vsel %vm2059_vm6, %v2027_v40, %v5891_v4 }
 0x1ec   : > { %2402 = vmatpush.bf16.msra.mxu0 %v5775_v35 }
 0x1ef   : > { %v8009_v37 = vpop.permute.xlu1 %6334 }
 0x1f0   : > { %10958 = vst [vmem:[#allocation51_spill] sm:$0xff] %v8009_v37  ;;  %v8024_v37 = vpop.permute.xlu2 %6339 }
 0x1f1   : > { %v8016_v54 = vpop.permute.xlu0 %6314  ;;  %10962 = vst [vmem:[#allocation55_spill] sm:$0xff] %v8024_v37  ;;  %v6126_v37 = vunpack.i.l.bf16 %v7872_v17 }
 0x1f7   : > { %v8018_v14 = vpop.permute.xlu1 %6349 }
 0x1f8   : > { %10960 = vst [vmem:[#allocation53_spill] sm:$0xff] %v8018_v14  ;;  %v2028_v14 = vsel %vm300_vm2, %v715_v48, %v5887_v20  ;;  %v6286_v48 = vunpack.i.l.bf16 %v7990_v13  ;;  %v8047_v61 = vpop.permute.xlu2 %6354 }
 0x1f9   : > { %v8021_v23 = vpop.permute.xlu0 %6329  ;;  %v2061_v21 = vsel %vm2059_vm6, %v2028_v14, %v5892_v36 }
 0x1fa   : > { %10961 = vst [vmem:[#allocation54_spill] sm:$0xff] %v8021_v23  ;;  %v6046_v23 = vunpack.i.l.bf16 %v7830_v43  ;;  %v2094_v20 = vsel %vm2092_vm7, %v2061_v21, %v6047_v41  ;;  %v6287_v43 = vunpack.i.h.bf16 %v7990_v13 }
 0x1fb   : > { %v2127_v17 = vsel %vm2125_vm9, %v2094_v20, %v6127_v45 }
 0x1fc   : > { %v2093_v4 = vsel %vm2092_vm7, %v2060_v2, %v6046_v23  ;;  %v2160_v14 = vsel %vm2158_vm8, %v2127_v17, %v6207_v18  ;;  %v6051_v17 = vunpack.i.l.bf16 %v7812_v57 }
 0x1fd   : > { %v2126_v36 = vsel %vm2125_vm9, %v2093_v4, %v6126_v37  ;;  %v2193_v23 = vsel %vm2191_vm10, %v2160_v14, %v6287_v43  ;;  %v5897_v4 = vunpack.i.h.bf16 %v7633_v50  ;;  %v5972_v43 = vunpack.i.h.bf16 %v7768_v31 }
 0x1ff   : > { %v6365_v35 = vpop.permute.xlu1 %6364 }
 0x200   : > { %v6367_v40 = vunpack.i.h.bf16 %v6365_v35  ;;  %v6366_v30 = vunpack.i.l.bf16 %v6365_v35  ;;  %v6370_v14 = vpop.permute.xlu2 %6369 }
 0x201   : > { %v8038_v8 = vpop.permute.xlu0 %6344 }
 0x202   : > { %10963 = vst [vmem:[#allocation56_spill] sm:$0xff] %v8038_v8  ;;  %v2159_v8 = vsel %vm2158_vm8, %v2126_v36, %v6206_v59  ;;  %v2226_v37 = vsel %vm2224_vm11, %v2193_v23, %v6367_v40  ;;  %v6132_v40 = vunpack.i.h.bf16 %v7850_v3  ;;  %v6131_v36 = vunpack.i.l.bf16 %v7850_v3 }
 0x203   : > { %v2192_v13 = vsel %vm2191_vm10, %v2159_v8, %v6286_v48  ;;  %v5896_v8 = vunpack.i.l.bf16 %v7633_v50  ;;  %v6052_v48 = vunpack.i.h.bf16 %v7812_v57  ;;  %v2030_v50 = vsel %vm300_vm2, %v7624_v38, %v5897_v4 }
 0x204   : > { %v2225_v35 = vsel %vm2224_vm11, %v2192_v13, %v6366_v30  ;;  %v5971_v30 = vunpack.i.l.bf16 %v7768_v31  ;;  %v6212_v13 = vunpack.i.h.bf16 %v7942_v56  ;;  %v6211_v23 = vunpack.i.l.bf16 %v7942_v56 }
 0x205   : > { %v2063_v57 = vsel %vm2059_vm6, %v2030_v50, %v5972_v43  ;;  %v6291_v3 = vunpack.i.l.bf16 %v7974_v42  ;;  %v5902_v50 = vunpack.i.h.bf16 %v7702_v22 }
 0x207   : > { %v6380_v41 = vpop.permute.xlu1 %6379 }
 0x208   : > { %v6382_v2 = vunpack.i.h.bf16 %v6380_v41  ;;  %v6381_v45 = vunpack.i.l.bf16 %v6380_v41  ;;  %v2029_v41 = vsel %vm300_vm2, %v7622_v34, %v5896_v8  ;;  %v2096_v34 = vsel %vm2092_vm7, %v2063_v57, %v6052_v48 }
 0x209   : > { %v8056_v59 = vpop.permute.xlu0 %6359  ;;  %v2129_v56 = vsel %vm2125_vm9, %v2096_v34, %v6132_v40  ;;  %v6056_v57 = vunpack.i.l.bf16 %v7786_v46  ;;  %v6217_v34 = vunpack.i.h.bf16 %v7930_v32 }
 0x20a   : > { %v2258_v18 = vsel %vm2257_vm12, %v2225_v35, %v6381_v45  ;;  %v2259_v21 = vsel %vm2257_vm12, %v2226_v37, %v6382_v2  ;;  %v2062_v2 = vsel %vm2059_vm6, %v2029_v41, %v5971_v30  ;;  %v6292_v45 = vunpack.i.h.bf16 %v7974_v42 }
 0x20b   : > { %v2290_v20 = vpack.c.bf16 %v2259_v21, %v2258_v18  ;;  %v2095_v35 = vsel %vm2092_vm7, %v2062_v2, %v6051_v17  ;;  %v6372_v37 = vunpack.i.h.bf16 %v6370_v14  ;;  %v6371_v18 = vunpack.i.l.bf16 %v6370_v14 }
 0x20c   : > { %v2128_v21 = vsel %vm2125_vm9, %v2095_v35, %v6131_v36  ;;  %v2162_v43 = vsel %vm2158_vm8, %v2129_v56, %v6212_v13  ;;  %v5977_v13 = vunpack.i.h.bf16 %v7750_v55  ;;  %v6057_v2 = vunpack.i.h.bf16 %v7786_v46 }
 0x20d   : > { %5538 = vmatmul.msk.bf16.vlgmr.msra.gmra.mxu0 %vm2342_vm13, %v2290_v20  ;;  %v2161_v8 = vsel %vm2158_vm8, %v2128_v21, %v6211_v23  ;;  %v2195_v42 = vsel %vm2191_vm10, %v2162_v43, %v6292_v45  ;;  %v5901_v23 = vunpack.i.l.bf16 %v7702_v22  ;;  %v6137_v45 = vunpack.i.h.bf16 %v7899_v44 }
 0x20e   : > { %v2194_v30 = vsel %vm2191_vm10, %v2161_v8, %v6291_v3  ;;  %v2228_v48 = vsel %vm2224_vm11, %v2195_v42, %v6372_v37  ;;  %v6136_v3 = vunpack.i.l.bf16 %v7899_v44  ;;  %v2032_v22 = vsel %vm300_vm2, %v7592_v11, %v5902_v50 }
 0x20f   : > { %v6395_v31 = vpop.permute.xlu1 %6394  ;;  %v2227_v17 = vsel %vm2224_vm11, %v2194_v30, %v6371_v18  ;;  %v2031_v35 = vsel %vm300_vm2, %v7590_v7, %v5901_v23  ;;  %v6216_v37 = vunpack.i.l.bf16 %v7930_v32  ;;  %v2065_v18 = vsel %vm2059_vm6, %v2032_v22, %v5977_v13 }
 0x210   : > { %v6397_v20 = vunpack.i.h.bf16 %v6395_v31  ;;  %v6396_v4 = vunpack.i.l.bf16 %v6395_v31  ;;  %v5976_v31 = vunpack.i.l.bf16 %v7750_v55  ;;  %v6297_v46 = vunpack.i.h.bf16 %v7985_v27 }
 0x211   : > { %v6375_v38 = vpop.permute.xlu0 %6374  ;;  %v6296_v21 = vunpack.i.l.bf16 %v7985_v27  ;;  %v2098_v44 = vsel %vm2092_vm7, %v2065_v18, %v6057_v2  ;;  %v5907_v23 = vunpack.i.h.bf16 %v7672_v49  ;;  %v5906_v13 = vunpack.i.l.bf16 %v7672_v49 }
 0x212   : > { %v2260_v14 = vsel %vm2257_vm12, %v2227_v17, %v6396_v4  ;;  %v2261_v36 = vsel %vm2257_vm12, %v2228_v48, %v6397_v20  ;;  %v2064_v55 = vsel %vm2059_vm6, %v2031_v35, %v5976_v31  ;;  %v6377_v7 = vunpack.i.h.bf16 %v6375_v38 }
 0x213   : > { %v2291_v40 = vpack.c.bf16 %v2261_v36, %v2260_v14  ;;  %v2097_v56 = vsel %vm2092_vm7, %v2064_v55, %v6056_v57  ;;  %v6376_v20 = vunpack.i.l.bf16 %v6375_v38  ;;  %v2131_v8 = vsel %vm2125_vm9, %v2098_v44, %v6137_v45 }
 0x214   : > { %v2130_v11 = vsel %vm2125_vm9, %v2097_v56, %v6136_v3  ;;  %v2164_v42 = vsel %vm2158_vm8, %v2131_v8, %v6217_v34  ;;  %v5982_v31 = vunpack.i.h.bf16 %v7726_v12  ;;  %v5981_v2 = vunpack.i.l.bf16 %v7726_v12 }
 0x215   : > { %v2163_v30 = vsel %vm2158_vm8, %v2130_v11, %v6216_v37  ;;  %v2197_v27 = vsel %vm2191_vm10, %v2164_v42, %v6297_v46  ;;  %v6062_v57 = vunpack.i.h.bf16 %v7842_v47  ;;  %v6061_v45 = vunpack.i.l.bf16 %v7842_v47 }
 0x216   : > { %v2196_v17 = vsel %vm2191_vm10, %v2163_v30, %v6296_v21  ;;  %v2230_v14 = vsel %vm2224_vm11, %v2197_v27, %v6377_v7  ;;  %v6142_v3 = vunpack.i.h.bf16 %v7884_v33  ;;  %v6141_v35 = vunpack.i.l.bf16 %v7884_v33 }
 0x217   : > { %v2229_v48 = vsel %vm2224_vm11, %v2196_v17, %v6376_v20  ;;  %v2033_v22 = vsel %vm300_vm2, %v7610_v25, %v5906_v13  ;;  %v2034_v49 = vsel %vm300_vm2, %v7612_v26, %v5907_v23  ;;  %v6222_v34 = vunpack.i.h.bf16 %v7926_v15 }
 0x218   : > { %v6221_v37 = vunpack.i.l.bf16 %v7926_v15  ;;  %v2067_v12 = vsel %vm2059_vm6, %v2034_v49, %v5982_v31  ;;  %v2066_v18 = vsel %vm2059_vm6, %v2033_v22, %v5981_v2  ;;  %v6302_v47 = vunpack.i.h.bf16 %v8004_v5 }
 0x219   : > { %v8089_v41 = vpop.permute.xlu0 %6389  ;;  %v6301_v46 = vunpack.i.l.bf16 %v8004_v5  ;;  %v2099_v33 = vsel %vm2092_vm7, %v2066_v18, %v6061_v45  ;;  %v2100_v25 = vsel %vm2092_vm7, %v2067_v12, %v6062_v57  ;;  %v5912_v27 = vunpack.i.h.bf16 %v7660_v28 }
 0x21a   : > { %v2132_v56 = vsel %vm2125_vm9, %v2099_v33, %v6141_v35  ;;  %v2133_v15 = vsel %vm2125_vm9, %v2100_v25, %v6142_v3  ;;  %v6147_v23 = vunpack.i.h.bf16 %v7864_v60  ;;  %v6146_v13 = vunpack.i.l.bf16 %v7864_v60 }
 0x21b   : > { %v2166_v11 = vsel %vm2158_vm8, %v2133_v15, %v6222_v34  ;;  %v2036_v31 = vsel %vm300_vm2, %v7646_v0, %v5912_v27  ;;  %v6227_v2 = vunpack.i.h.bf16 %v7951_v53  ;;  %v6226_v57 = vunpack.i.l.bf16 %v7951_v53 }
 0x21c   : > { %v2199_v8 = vsel %vm2191_vm10, %v2166_v11, %v6302_v47  ;;  %v6306_v35 = vunpack.i.l.bf16 %v7987_v39  ;;  %v6392_v22 = vunpack.i.h.bf16 %v8089_v41  ;;  %v5992_v15 = vunpack.i.h.bf16 %v7764_v19  ;;  %v8199_v11 = vpop.permute.xlu1 %6409 }
 0x21d   : > { %5539 = vmatmul.msk.bf16.gmra.mxu0 %vm2342_vm13, %v2291_v40  ;;  %v6385_v40 = vpop.permute.xlu2 %6384 }
 0x21e   : > { %v6387_v21 = vunpack.i.h.bf16 %v6385_v40  ;;  %v6386_v44 = vunpack.i.l.bf16 %v6385_v40  ;;  %v6067_v40 = vunpack.i.h.bf16 %v7824_v6 }
 0x221   : > { %v6405_v4 = vpop.permute.xlu0 %6404 }
 0x222   : > { %v6407_v32 = vunpack.i.h.bf16 %v6405_v4  ;;  %v6406_v43 = vunpack.i.l.bf16 %v6405_v4  ;;  %v2165_v4 = vsel %vm2158_vm8, %v2132_v56, %v6221_v37  ;;  %v5916_v56 = vunpack.i.l.bf16 %v7716_v52 }
 0x223   : > { %v2198_v5 = vsel %vm2191_vm10, %v2165_v4, %v6301_v46  ;;  %v6071_v4 = vunpack.i.l.bf16 %v7798_v10 }
 0x224   : > { %v2262_v38 = vsel %vm2257_vm12, %v2229_v48, %v6406_v43  ;;  %v2263_v36 = vsel %vm2257_vm12, %v2230_v14, %v6407_v32  ;;  %v2231_v32 = vsel %vm2224_vm11, %v2198_v5, %v6386_v44  ;;  %v2232_v43 = vsel %vm2224_vm11, %v2199_v8, %v6387_v21 }
 0x225   : > { %v2292_v50 = vpack.c.bf16 %v2263_v36, %v2262_v38  ;;  %v8143_v26 = vpop.permute.xlu2 %6399  ;;  %v5911_v48 = vunpack.i.l.bf16 %v7660_v28  ;;  %v5987_v38 = vunpack.i.h.bf16 %v7780_v1  ;;  %v5986_v36 = vunpack.i.l.bf16 %v7780_v1 }
 0x226   : > { %v5917_v44 = vunpack.i.h.bf16 %v7716_v52  ;;  %v6152_v5 = vunpack.i.h.bf16 %v7908_v16  ;;  %v6151_v8 = vunpack.i.l.bf16 %v7908_v16  ;;  %v7171_v52 = vld [vmem:[#allocation2 + $0x78] sm:$0xff] }
 0x227   : > { %v2035_v28 = vsel %vm300_vm2, %v7644_v62, %v5911_v48  ;;  %v2069_v3 = vsel %vm2059_vm6, %v2036_v31, %v5987_v38  ;;  %v6391_v62 = vunpack.i.l.bf16 %v8089_v41  ;;  %v6312_v48 = vunpack.i.h.bf16 %v7998_v24 }
 0x228   : > { %v2068_v1 = vsel %vm2059_vm6, %v2035_v28, %v5986_v36  ;;  %v2102_v0 = vsel %vm2092_vm7, %v2069_v3, %v6067_v40  ;;  %v6311_v38 = vunpack.i.l.bf16 %v7998_v24  ;;  %v6402_v40 = vunpack.i.h.bf16 %v8143_v26 }
 0x229   : > { %v6420_v55 = vpop.permute.xlu0 %6419  ;;  %v2135_v53 = vsel %vm2125_vm9, %v2102_v0, %v6147_v23 }
 0x22a   : > { %v6422_v7 = vunpack.i.h.bf16 %v6420_v55  ;;  %v6421_v20 = vunpack.i.l.bf16 %v6420_v55  ;;  %v2168_v12 = vsel %vm2158_vm8, %v2135_v53, %v6227_v2  ;;  %v6077_v53 = vunpack.i.h.bf16 %v7854_v29 }
 0x22c   : > { %v2264_v30 = vsel %vm2257_vm12, %v2231_v32, %v6421_v20  ;;  %v2265_v42 = vsel %vm2257_vm12, %v2232_v43, %v6422_v7  ;;  %v5991_v7 = vunpack.i.l.bf16 %v7764_v19  ;;  %v6072_v20 = vunpack.i.h.bf16 %v7798_v10  ;;  %v7170_v32 = vld [vmem:[#allocation2 + $0x80] sm:$0xff] }
 0x22d   : > { %5540 = vmatmul.msk.bf16.gmra.mxu0 %vm2342_vm13, %v2292_v50  ;;  %v2293_v17 = vpack.c.bf16 %v2265_v42, %v2264_v30  ;;  %v8157_v14 = vpop.permute.xlu2 %6414  ;;  %v6066_v50 = vunpack.i.l.bf16 %v7824_v6  ;;  %v6307_v6 = vunpack.i.h.bf16 %v7987_v39  ;;  %v2038_v43 = vsel %vm300_vm2, %v7170_v32, %v5917_v44 }
 0x22e   : > { %v2037_v30 = vsel %vm300_vm2, %v7171_v52, %v5916_v56  ;;  %v6232_v42 = vunpack.i.h.bf16 %v7939_v9  ;;  %v6231_v19 = vunpack.i.l.bf16 %v7939_v9  ;;  %v2071_v10 = vsel %vm2059_vm6, %v2038_v43, %v5992_v15 }
 0x22f   : > { %v2101_v60 = vsel %vm2092_vm7, %v2068_v1, %v6066_v50  ;;  %v2201_v18 = vsel %vm2191_vm10, %v2168_v12, %v6307_v6  ;;  %v2070_v27 = vsel %vm2059_vm6, %v2037_v30, %v5991_v7  ;;  %v2104_v16 = vsel %vm2092_vm7, %v2071_v10, %v6072_v20  ;;  %v8225_v6 = vpop.permute.xlu1 %6424  ;;  %v7172_v12 = vld [vmem:[#allocation2 + $0x98] sm:$0xff] }
 0x230   : > { %v2134_v49 = vsel %vm2125_vm9, %v2101_v60, %v6146_v13  ;;  %v2234_v41 = vsel %vm2224_vm11, %v2201_v18, %v6392_v22  ;;  %v2103_v36 = vsel %vm2092_vm7, %v2070_v27, %v6071_v4  ;;  %v6401_v50 = vunpack.i.l.bf16 %v8143_v26  ;;  %v7173_v18 = vld [vmem:[#allocation2 + $0x90] sm:$0xff]  ;;  %v10965_v27 = vld [vmem:[#allocation4_spill] sm:$0xff] }
 0x231   : > { %v6435_v45 = vpop.permute.xlu0 %6434  ;;  %v2167_v55 = vsel %vm2158_vm8, %v2134_v49, %v6226_v57  ;;  %v2136_v23 = vsel %vm2125_vm9, %v2103_v36, %v6151_v8  ;;  %v2137_v9 = vsel %vm2125_vm9, %v2104_v16, %v6152_v5  ;;  %v5996_v49 = vunpack.i.l.bf16 %v7736_v63  ;;  %v10966_v16 = vld [vmem:[#allocation19_spill] sm:$0xff] }
 0x232   : > { %v6437_v34 = vunpack.i.h.bf16 %v6435_v45  ;;  %v6436_v37 = vunpack.i.l.bf16 %v6435_v45  ;;  %v2200_v39 = vsel %vm2191_vm10, %v2167_v55, %v6306_v35  ;;  %v2169_v28 = vsel %vm2158_vm8, %v2136_v23, %v6231_v19  ;;  %v10964_v35 = vld [vmem:[#allocation5_spill] sm:$0xff] }
 0x233   : > { %v2233_v46 = vsel %vm2224_vm11, %v2200_v39, %v6391_v62  ;;  %v2170_v2 = vsel %vm2158_vm8, %v2137_v9, %v6232_v42  ;;  %v2202_v24 = vsel %vm2191_vm10, %v2169_v28, %v6311_v38  ;;  %v5922_v60 = vunpack.i.h.bf16 %v10964_v35 }
 0x234   : > { %v2266_v33 = vsel %vm2257_vm12, %v2233_v46, %v6436_v37  ;;  %v2267_v25 = vsel %vm2257_vm12, %v2234_v41, %v6437_v34  ;;  %v2203_v57 = vsel %vm2191_vm10, %v2170_v2, %v6312_v48  ;;  %v2235_v45 = vsel %vm2224_vm11, %v2202_v24, %v6401_v50  ;;  %v10967_v50 = vld [vmem:[#allocation26_spill] sm:$0xff] }
 0x235   : > { %v8186_v47 = vpop.permute.xlu2 %6429  ;;  %v2294_v21 = vpack.c.bf16 %v2267_v25, %v2266_v33  ;;  %v2236_v1 = vsel %vm2224_vm11, %v2203_v57, %v6402_v40  ;;  %v5921_v0 = vunpack.i.l.bf16 %v10964_v35  ;;  %v5997_v62 = vunpack.i.h.bf16 %v7736_v63  ;;  %v7174_v2 = vld [vmem:[#allocation2 + $0xb0] sm:$0xff]  ;;  %v7175_v57 = vld [vmem:[#allocation2 + $0xa8] sm:$0xff] }
 0x236   : > { %v6076_v34 = vunpack.i.l.bf16 %v7854_v29  ;;  %v6157_v37 = vunpack.i.h.bf16 %v7895_v51  ;;  %v6156_v55 = vunpack.i.l.bf16 %v7895_v51  ;;  %v2040_v39 = vsel %vm300_vm2, %v7172_v12, %v5922_v60 }
 0x237   : > { %v2039_v46 = vsel %vm300_vm2, %v7173_v18, %v5921_v0  ;;  %v6237_v41 = vunpack.i.h.bf16 %v7937_v58  ;;  %v6236_v63 = vunpack.i.l.bf16 %v7937_v58  ;;  %v2073_v33 = vsel %vm2059_vm6, %v2040_v39, %v5997_v62  ;;  %v8252_v8 = vpop.permute.xlu1 %6439 }
 0x238   : > { %v2072_v29 = vsel %vm2059_vm6, %v2039_v46, %v5996_v49  ;;  %v6317_v25 = vunpack.i.h.bf16 %v8016_v54  ;;  %v2106_v44 = vsel %vm2092_vm7, %v2073_v33, %v6077_v53  ;;  %v6412_v56 = vunpack.i.h.bf16 %v8199_v11 }
 0x239   : > { %v2105_v51 = vsel %vm2092_vm7, %v2072_v29, %v6076_v34  ;;  %v6411_v15 = vunpack.i.l.bf16 %v8199_v11  ;;  %v2139_v58 = vsel %vm2125_vm9, %v2106_v44, %v6157_v37  ;;  %v5927_v10 = vunpack.i.h.bf16 %v10965_v27 }
 0x23a   : > { %v2138_v20 = vsel %vm2125_vm9, %v2105_v51, %v6156_v55  ;;  %v2172_v5 = vsel %vm2158_vm8, %v2139_v58, %v6237_v41  ;;  %v5926_v48 = vunpack.i.l.bf16 %v10965_v27  ;;  %v6002_v36 = vunpack.i.h.bf16 %v10966_v16  ;;  %v10972_v58 = vld [vmem:[#allocation17_spill] sm:$0xff] }
 0x23b   : > { %v2171_v4 = vsel %vm2158_vm8, %v2138_v20, %v6236_v63  ;;  %v2205_v32 = vsel %vm2191_vm10, %v2172_v5, %v6317_v25  ;;  %v6001_v40 = vunpack.i.l.bf16 %v10966_v16  ;;  %v6082_v23 = vunpack.i.h.bf16 %v10967_v50 }
 0x23c   : > { %v2238_v11 = vsel %vm2224_vm11, %v2205_v32, %v6412_v56  ;;  %v6081_v9 = vunpack.i.l.bf16 %v10967_v50  ;;  %v2042_v24 = vsel %vm300_vm2, %v7174_v2, %v5927_v10  ;;  %v6417_v37 = vunpack.i.h.bf16 %v8157_v14  ;;  %v10975_v10 = vld [vmem:[#allocation41_spill] sm:$0xff] }
 0x23d   : > { %5541 = vmatmul.msk.bf16.gmra.mxu0 %vm2342_vm13, %v2293_v17  ;;  %v6445_v17 = vpop.permute.xlu2 %6444  ;;  %v2075_v0 = vsel %vm2059_vm6, %v2042_v24, %v6002_v36  ;;  %v6416_v55 = vunpack.i.l.bf16 %v8157_v14  ;;  %v6006_v5 = vunpack.i.l.bf16 %v10972_v58  ;;  %v6246_v16 = vunpack.i.l.bf16 %v10975_v10 }
 0x23e   : > { %v6447_v13 = vunpack.i.h.bf16 %v6445_v17  ;;  %v6446_v31 = vunpack.i.l.bf16 %v6445_v17  ;;  %v2108_v34 = vsel %vm2092_vm7, %v2075_v0, %v6082_v23  ;;  %v10976_v23 = vld [vmem:[#allocation52_spill] sm:$0xff]  ;;  %v6427_v2 = vunpack.i.h.bf16 %v8225_v6 }
 0x23f   : > { %v8262_v38 = vpop.permute.xlu1 %6454  ;;  %v6426_v24 = vunpack.i.l.bf16 %v8225_v6 }
 0x240   : > { %v2268_v26 = vsel %vm2257_vm12, %v2235_v45, %v6446_v31  ;;  %v2269_v3 = vsel %vm2257_vm12, %v2236_v1, %v6447_v13  ;;  %v10968_v13 = vld [vmem:[#allocation31_spill] sm:$0xff]  ;;  %v2041_v45 = vsel %vm300_vm2, %v7175_v57, %v5926_v48  ;;  %v10969_v1 = vld [vmem:[#allocation45_spill] sm:$0xff]  ;;  %v6247_v48 = vunpack.i.h.bf16 %v10975_v10  ;;  %v8316_v57 = vpop.permute.xlu0 %6449 }
 0x241   : > { %v2295_v22 = vpack.c.bf16 %v2269_v3, %v2268_v26  ;;  %v6162_v31 = vunpack.i.h.bf16 %v10968_v13  ;;  %v6161_v28 = vunpack.i.l.bf16 %v10968_v13  ;;  %v6242_v26 = vunpack.i.h.bf16 %v10969_v1 }
 0x242   : > { %v6241_v3 = vunpack.i.l.bf16 %v10969_v1  ;;  %v2074_v60 = vsel %vm2059_vm6, %v2041_v45, %v6001_v40  ;;  %v6326_v13 = vunpack.i.l.bf16 %v10976_v23  ;;  %v6431_v10 = vunpack.i.l.bf16 %v8186_v47 }
 0x243   : > { %v2107_v53 = vsel %vm2092_vm7, %v2074_v60, %v6081_v9  ;;  %v2141_v39 = vsel %vm2125_vm9, %v2108_v34, %v6162_v31  ;;  %v6327_v9 = vunpack.i.h.bf16 %v10976_v23 }
 0x244   : > { %v2140_v12 = vsel %vm2125_vm9, %v2107_v53, %v6161_v28  ;;  %v2174_v63 = vsel %vm2158_vm8, %v2141_v39, %v6242_v26 }
 0x245   : > { %v6460_v7 = vpop.permute.xlu2 %6459  ;;  %v2173_v41 = vsel %vm2158_vm8, %v2140_v12, %v6241_v3 }
 0x246   : > { %v6462_v43 = vunpack.i.h.bf16 %v6460_v7  ;;  %v6461_v52 = vunpack.i.l.bf16 %v6460_v7 }
 0x247   : > { %v8289_v25 = vpop.permute.xlu1 %6469 }
 0x248   : > { %v2271_v19 = vsel %vm2257_vm12, %v2238_v11, %v6462_v43 }
 0x24d   : > { %5542 = vmatmul.msk.bf16.gmra.mxu0 %vm2342_vm13, %v2294_v21  ;;  %v6316_v21 = vunpack.i.l.bf16 %v8016_v54  ;;  %v6475_v35 = vpop.permute.xlu2 %6474 }
 0x24e   : > { %v6477_v18 = vunpack.i.h.bf16 %v6475_v35  ;;  %v6476_v46 = vunpack.i.l.bf16 %v6475_v35 }
 0x24f   : > { %v2204_v54 = vsel %vm2191_vm10, %v2171_v4, %v6316_v21  ;;  %v6007_v4 = vunpack.i.h.bf16 %v10972_v58  ;;  %v6485_v36 = vpop.permute.xlu1 %6484  ;;  %v10981_v58 = vld [vmem:[#allocation42_spill] sm:$0xff] }
 0x250   : > { %v2237_v30 = vsel %vm2224_vm11, %v2204_v54, %v6411_v15  ;;  %v10971_v15 = vld [vmem:[#allocation10_spill] sm:$0xff]  ;;  %v6487_v26 = vunpack.i.h.bf16 %v6485_v36  ;;  %v6486_v3 = vunpack.i.l.bf16 %v6485_v36 }
 0x251   : > { %v2270_v42 = vsel %vm2257_vm12, %v2237_v30, %v6461_v52  ;;  %v5932_v7 = vunpack.i.h.bf16 %v10971_v15  ;;  %v5931_v20 = vunpack.i.l.bf16 %v10971_v15  ;;  %v10973_v54 = vld [vmem:[#allocation22_spill] sm:$0xff]  ;;  %v10974_v52 = vld [vmem:[#allocation37_spill] sm:$0xff] }
 0x252   : > { %v2296_v17 = vpack.c.bf16 %v2271_v19, %v2270_v42  ;;  %v6087_v32 = vunpack.i.h.bf16 %v10973_v54  ;;  %v6086_v43 = vunpack.i.l.bf16 %v10973_v54  ;;  %v6167_v30 = vunpack.i.h.bf16 %v10974_v52  ;;  %v7176_v42 = vld [vmem:[#allocation2 + $0xc8] sm:$0xff] }
 0x253   : > { %v6166_v11 = vunpack.i.l.bf16 %v10974_v52  ;;  %v2044_v19 = vsel %vm300_vm2, %v7176_v42, %v5932_v7  ;;  %v7179_v7 = vld [vmem:[#allocation2 + $0xd8] sm:$0xff]  ;;  %v10982_v52 = vld [vmem:[#allocation54_spill] sm:$0xff] }
 0x254   : > { %v2077_v50 = vsel %vm2059_vm6, %v2044_v19, %v6007_v4  ;;  %v6252_v4 = vunpack.i.h.bf16 %v10981_v58 }
 0x255   : > { %v2110_v31 = vsel %vm2092_vm7, %v2077_v50, %v6087_v32  ;;  %v6490_v54 = vpop.permute.xlu2 %6489 }
 0x256   : > { %v2143_v1 = vsel %vm2125_vm9, %v2110_v31, %v6167_v30  ;;  %v6332_v30 = vunpack.i.h.bf16 %v10982_v52  ;;  %v6492_v36 = vunpack.i.h.bf16 %v6490_v54 }
 0x257   : > { %v2176_v60 = vsel %vm2158_vm8, %v2143_v1, %v6247_v48 }
 0x25d   : > { %5543 = vmatmul.msk.bf16.gmra.mxu0 %vm2342_vm13, %v2295_v22  ;;  %v10970_v22 = vld [vmem:[#allocation50_spill] sm:$0xff] }
 0x25e   : > { %v6322_v62 = vunpack.i.h.bf16 %v10970_v22  ;;  %v6321_v49 = vunpack.i.l.bf16 %v10970_v22  ;;  %v2209_v22 = vsel %vm2191_vm10, %v2176_v60, %v6327_v9  ;;  %v10984_v60 = vld [vmem:[#allocation21_spill] sm:$0xff] }
 0x25f   : > { %v2242_v6 = vsel %vm2224_vm11, %v2209_v22, %v6427_v2  ;;  %v6016_v22 = vunpack.i.l.bf16 %v10984_v60 }
 0x260   : > { %v2206_v33 = vsel %vm2191_vm10, %v2173_v41, %v6321_v49  ;;  %v2207_v29 = vsel %vm2191_vm10, %v2174_v63, %v6322_v62  ;;  %v2275_v53 = vsel %vm2257_vm12, %v2242_v6, %v6487_v26  ;;  %v10983_v26 = vld [vmem:[#allocation6_spill] sm:$0xff] }
 0x261   : > { %v2239_v21 = vsel %vm2224_vm11, %v2206_v33, %v6416_v55  ;;  %v2240_v14 = vsel %vm2224_vm11, %v2207_v29, %v6417_v37  ;;  %v10977_v55 = vld [vmem:[#allocation7_spill] sm:$0xff]  ;;  %v10979_v33 = vld [vmem:[#allocation29_spill] sm:$0xff] }
 0x262   : > { %v2272_v51 = vsel %vm2257_vm12, %v2239_v21, %v6476_v46  ;;  %v2273_v44 = vsel %vm2257_vm12, %v2240_v14, %v6477_v18  ;;  %v5937_v12 = vunpack.i.h.bf16 %v10977_v55  ;;  %v5936_v39 = vunpack.i.l.bf16 %v10977_v55  ;;  %v8332_v18 = vpop.permute.xlu0 %6464  ;;  %v10978_v46 = vld [vmem:[#allocation13_spill] sm:$0xff]  ;;  %v10980_v14 = vld [vmem:[#allocation34_spill] sm:$0xff] }
 0x263   : > { %v2297_v56 = vpack.c.bf16 %v2273_v44, %v2272_v51  ;;  %v6012_v41 = vunpack.i.h.bf16 %v10978_v46  ;;  %v6011_v63 = vunpack.i.l.bf16 %v10978_v46  ;;  %v6092_v29 = vunpack.i.h.bf16 %v10979_v33  ;;  %v7181_v46 = vld [vmem:[#allocation2 + $0xf0] sm:$0xff] }
 0x264   : > { %v6091_v21 = vunpack.i.l.bf16 %v10979_v33  ;;  %v6172_v51 = vunpack.i.h.bf16 %v10980_v14  ;;  %v6171_v44 = vunpack.i.l.bf16 %v10980_v14 }
 0x26a   : > { %v8363_v2 = vpop.permute.xlu0 %6479 }
 0x26d   : > { %5544 = vmatmul.msk.bf16.gmra.mxu0 %vm2342_vm13, %v2296_v17  ;;  %v7177_v17 = vld [vmem:[#allocation2 + $0xc0] sm:$0xff] }
 0x26e   : > { %v2043_v27 = vsel %vm300_vm2, %v7177_v17, %v5931_v20  ;;  %v2045_v20 = vsel %vm300_vm2, %v7179_v7, %v5936_v39 }
 0x26f   : > { %v2076_v40 = vsel %vm2059_vm6, %v2043_v27, %v6006_v5  ;;  %v6251_v5 = vunpack.i.l.bf16 %v10981_v58  ;;  %v6432_v27 = vunpack.i.h.bf16 %v8186_v47 }
 0x270   : > { %v2109_v28 = vsel %vm2092_vm7, %v2076_v40, %v6086_v43  ;;  %v2078_v43 = vsel %vm2059_vm6, %v2045_v20, %v6011_v63  ;;  %v6491_v40 = vunpack.i.l.bf16 %v6490_v54  ;;  %v10987_v63 = vld [vmem:[#allocation47_spill] sm:$0xff] }
 0x271   : > { %v2142_v45 = vsel %vm2125_vm9, %v2109_v28, %v6166_v11  ;;  %v6331_v11 = vunpack.i.l.bf16 %v10982_v52  ;;  %v2111_v19 = vsel %vm2092_vm7, %v2078_v43, %v6091_v21  ;;  %v6257_v33 = vunpack.i.h.bf16 %v10987_v63 }
 0x272   : > { %v2175_v35 = vsel %vm2158_vm8, %v2142_v45, %v6246_v16  ;;  %v2144_v48 = vsel %vm2125_vm9, %v2111_v19, %v6171_v44  ;;  %v6495_v21 = vpop.permute.xlu0 %6494  ;;  %v10988_v44 = vld [vmem:[#allocation51_spill] sm:$0xff] }
 0x273   : > { %v2208_v0 = vsel %vm2191_vm10, %v2175_v35, %v6326_v13  ;;  %v2177_v50 = vsel %vm2158_vm8, %v2144_v48, %v6251_v5  ;;  %v5941_v35 = vunpack.i.l.bf16 %v10983_v26  ;;  %v6441_v5 = vunpack.i.l.bf16 %v8252_v8 }
 0x274   : > { %v2241_v62 = vsel %vm2224_vm11, %v2208_v0, %v6426_v24  ;;  %v2210_v9 = vsel %vm2191_vm10, %v2177_v50, %v6331_v11  ;;  %v6017_v0 = vunpack.i.h.bf16 %v10984_v60  ;;  %v6497_v43 = vunpack.i.h.bf16 %v6495_v21 }
 0x275   : > { %v2274_v49 = vsel %vm2257_vm12, %v2241_v62, %v6486_v3  ;;  %v2243_v31 = vsel %vm2224_vm11, %v2210_v9, %v6431_v10  ;;  %v5942_v3 = vunpack.i.h.bf16 %v10983_v26  ;;  %v10985_v62 = vld [vmem:[#allocation27_spill] sm:$0xff]  ;;  %v6496_v52 = vunpack.i.l.bf16 %v6495_v21  ;;  %v10990_v9 = vld [vmem:[#allocation18_spill] sm:$0xff] }
 0x276   : > { %v2298_v37 = vpack.c.bf16 %v2275_v53, %v2274_v49  ;;  %v2276_v47 = vsel %vm2257_vm12, %v2243_v31, %v6491_v40  ;;  %v6097_v6 = vunpack.i.h.bf16 %v10985_v62  ;;  %v6096_v49 = vunpack.i.l.bf16 %v10985_v62  ;;  %v10986_v53 = vld [vmem:[#allocation33_spill] sm:$0xff]  ;;  %v10989_v40 = vld [vmem:[#allocation12_spill] sm:$0xff]  ;;  %v10993_v62 = vld [vmem:[#allocation43_spill] sm:$0xff] }
 0x277   : > { %v6176_v55 = vunpack.i.l.bf16 %v10986_v53  ;;  %v5947_v50 = vunpack.i.h.bf16 %v10989_v40  ;;  %v6021_v31 = vunpack.i.l.bf16 %v10990_v9  ;;  %v6451_v21 = vunpack.i.l.bf16 %v8316_v57 }
 0x27d   : > { %5545 = vmatmul.msk.bf16.gmra.mxu0 %vm2342_vm13, %v2297_v56  ;;  %v7178_v56 = vld [vmem:[#allocation2 + $0xe0] sm:$0xff] }
 0x27e   : > { %v2046_v15 = vsel %vm300_vm2, %v7178_v56, %v5937_v12  ;;  %v7180_v12 = vld [vmem:[#allocation2 + $0xf8] sm:$0xff]  ;;  %v6337_v56 = vunpack.i.h.bf16 %v10988_v44 }
 0x27f   : > { %v2079_v32 = vsel %vm2059_vm6, %v2046_v15, %v6012_v41  ;;  %v2048_v39 = vsel %vm300_vm2, %v7180_v12, %v5942_v3  ;;  %v2047_v41 = vsel %vm300_vm2, %v7181_v46, %v5941_v35  ;;  %v6336_v15 = vunpack.i.l.bf16 %v10988_v44  ;;  %v7182_v35 = vld [vmem:[#allocation2 + $0x110] sm:$0xff]  ;;  %v10994_v12 = vld [vmem:[#allocation55_spill] sm:$0xff] }
 0x280   : > { %v2112_v17 = vsel %vm2092_vm7, %v2079_v32, %v6092_v29  ;;  %v6256_v29 = vunpack.i.l.bf16 %v10987_v63  ;;  %v2080_v14 = vsel %vm2059_vm6, %v2047_v41, %v6016_v22  ;;  %v2050_v60 = vsel %vm300_vm2, %v7182_v35, %v5947_v50  ;;  %v11000_v35 = vld [vmem:[#allocation56_spill] sm:$0xff] }
 0x281   : > { %v2145_v16 = vsel %vm2125_vm9, %v2112_v17, %v6172_v51  ;;  %v2081_v51 = vsel %vm2059_vm6, %v2048_v39, %v6017_v0  ;;  %v2113_v20 = vsel %vm2092_vm7, %v2080_v14, %v6096_v49  ;;  %v7183_v0 = vld [vmem:[#allocation2 + $0x108] sm:$0xff]  ;;  %v6261_v49 = vunpack.i.l.bf16 %v10993_v62 }
 0x282   : > { %v2178_v23 = vsel %vm2158_vm8, %v2145_v16, %v6252_v4  ;;  %v2114_v58 = vsel %vm2092_vm7, %v2081_v51, %v6097_v6  ;;  %v6442_v4 = vunpack.i.h.bf16 %v8252_v8  ;;  %v2146_v54 = vsel %vm2125_vm9, %v2113_v20, %v6176_v55 }
 0x283   : > { %v2211_v13 = vsel %vm2191_vm10, %v2178_v23, %v6332_v30  ;;  %v2179_v30 = vsel %vm2158_vm8, %v2146_v54, %v6256_v29  ;;  %v5946_v23 = vunpack.i.l.bf16 %v10989_v40  ;;  %v6262_v6 = vunpack.i.h.bf16 %v10993_v62  ;;  %v10998_v40 = vld [vmem:[#allocation36_spill] sm:$0xff] }
 0x284   : > { %v2244_v28 = vsel %vm2224_vm11, %v2211_v13, %v6432_v27  ;;  %v2212_v19 = vsel %vm2191_vm10, %v2179_v30, %v6336_v15  ;;  %v6022_v13 = vunpack.i.h.bf16 %v10990_v9  ;;  %v6342_v39 = vunpack.i.h.bf16 %v10994_v12  ;;  %v7184_v9 = vld [vmem:[#allocation2 + $0x128] sm:$0xff] }
 0x285   : > { %v2277_v24 = vsel %vm2257_vm12, %v2244_v28, %v6492_v36  ;;  %v2245_v27 = vsel %vm2224_vm11, %v2212_v19, %v6441_v5  ;;  %v10991_v28 = vld [vmem:[#allocation24_spill] sm:$0xff]  ;;  %v2049_v22 = vsel %vm300_vm2, %v7183_v0, %v5946_v23  ;;  %v6341_v46 = vunpack.i.l.bf16 %v10994_v12 }
 0x286   : > { %v2299_v1 = vpack.c.bf16 %v2277_v24, %v2276_v47  ;;  %v2278_v8 = vsel %vm2257_vm12, %v2245_v27, %v6496_v52  ;;  %v6102_v47 = vunpack.i.h.bf16 %v10991_v28  ;;  %v6101_v24 = vunpack.i.l.bf16 %v10991_v28  ;;  %v10995_v52 = vld [vmem:[#allocation9_spill] sm:$0xff] }
 0x287   : > { %v2083_v55 = vsel %vm2059_vm6, %v2050_v60, %v6022_v13  ;;  %v6452_v29 = vunpack.i.h.bf16 %v8316_v57  ;;  %v5952_v30 = vunpack.i.h.bf16 %v10995_v52  ;;  %v6187_v50 = vunpack.i.h.bf16 %v10998_v40 }
 0x288   : > { %v2116_v63 = vsel %vm2092_vm7, %v2083_v55, %v6102_v47  ;;  %v6186_v23 = vunpack.i.l.bf16 %v10998_v40  ;;  %v10999_v47 = vld [vmem:[#allocation44_spill] sm:$0xff]  ;;  %v6347_v60 = vunpack.i.h.bf16 %v11000_v35  ;;  %v6346_v0 = vunpack.i.l.bf16 %v11000_v35 }
 0x289   : > { %v2052_v13 = vsel %vm300_vm2, %v7184_v9, %v5952_v30  ;;  %v6466_v35 = vunpack.i.l.bf16 %v8332_v18 }
 0x28a   : > { %v8328_v34 = vpop.f32.mrf.mxu0 }
 0x28d   : > { %5546 = vmatmul.msk.bf16.gmra.mxu0 %vm2342_vm13, %v2298_v37  ;;  %v6177_v37 = vunpack.i.h.bf16 %v10986_v53  ;;  %v6500_v53 = vpop.permute.xlu1 %6499 }
 0x28e   : > { %v6502_v44 = vunpack.i.h.bf16 %v6500_v53 }
 0x28f   : > { %v2147_v32 = vsel %vm2125_vm9, %v2114_v58, %v6177_v37  ;;  %v2082_v37 = vsel %vm2059_vm6, %v2049_v22, %v6021_v31  ;;  %v7185_v31 = vld [vmem:[#allocation2 + $0x120] sm:$0xff] }
 0x290   : > { %v2180_v11 = vsel %vm2158_vm8, %v2147_v32, %v6257_v33  ;;  %v2115_v33 = vsel %vm2092_vm7, %v2082_v37, %v6101_v24  ;;  %v6267_v24 = vunpack.i.h.bf16 %v10999_v47 }
 0x291   : > { %v2213_v17 = vsel %vm2191_vm10, %v2180_v11, %v6337_v56  ;;  %v6501_v56 = vunpack.i.l.bf16 %v6500_v53  ;;  %v5951_v11 = vunpack.i.l.bf16 %v10995_v52  ;;  %v6505_v53 = vpop.permute.xlu2 %6504 }
 0x292   : > { %v8349_v42 = vpop.f32.mrf.mxu0  ;;  %v2246_v10 = vsel %vm2224_vm11, %v2213_v17, %v6442_v4  ;;  %v10996_v17 = vld [vmem:[#allocation15_spill] sm:$0xff] }
 0x293   : > { %v2279_v48 = vsel %vm2257_vm12, %v2246_v10, %v6497_v43  ;;  %v6027_v27 = vunpack.i.h.bf16 %v10996_v17  ;;  %v6026_v10 = vunpack.i.l.bf16 %v10996_v17  ;;  %v2051_v28 = vsel %vm300_vm2, %v7185_v31, %v5951_v11  ;;  %v11004_v11 = vld [vmem:[#allocation35_spill] sm:$0xff]  ;;  %v11006_v31 = vld [vmem:[#allocation53_spill] sm:$0xff] }
 0x294   : > { %v2300_v36 = vpack.c.bf16 %v2279_v48, %v2278_v8  ;;  %v10997_v8 = vld [vmem:[#allocation30_spill] sm:$0xff]  ;;  %v6191_v17 = vunpack.i.l.bf16 %v11004_v11 }
 0x295   : > { %v6107_v48 = vunpack.i.h.bf16 %v10997_v8 }
 0x29a   : > { %v8367_v45 = vpop.f32.mrf.mxu0 }
 0x29d   : > { %5547 = vmatmul.msk.bf16.gmra.mxu0 %vm2342_vm13, %v2299_v1  ;;  %v10992_v1 = vld [vmem:[#allocation39_spill] sm:$0xff] }
 0x29e   : > { %v6182_v26 = vunpack.i.h.bf16 %v10992_v1  ;;  %v6181_v3 = vunpack.i.l.bf16 %v10992_v1  ;;  %v6266_v1 = vunpack.i.l.bf16 %v10999_v47  ;;  %v6351_v47 = vunpack.i.l.bf16 %v11006_v31 }
 0x2a0   : > { %v2148_v14 = vsel %vm2125_vm9, %v2115_v33, %v6181_v3  ;;  %v2149_v51 = vsel %vm2125_vm9, %v2116_v63, %v6182_v26  ;;  %v2085_v26 = vsel %vm2059_vm6, %v2052_v13, %v6027_v27  ;;  %v2084_v3 = vsel %vm2059_vm6, %v2051_v28, %v6026_v10  ;;  %v7186_v27 = vld [vmem:[#allocation2 + $0x140] sm:$0xff] }
 0x2a1   : > { %v2181_v15 = vsel %vm2158_vm8, %v2148_v14, %v6261_v49  ;;  %v2182_v20 = vsel %vm2158_vm8, %v2149_v51, %v6262_v6  ;;  %v2118_v62 = vsel %vm2092_vm7, %v2085_v26, %v6107_v48  ;;  %v6457_v6 = vunpack.i.h.bf16 %v8262_v38 }
 0x2a2   : > { %v8386_v7 = vpop.f32.mrf.mxu0  ;;  %v2214_v58 = vsel %vm2191_vm10, %v2181_v15, %v6341_v46  ;;  %v2215_v4 = vsel %vm2191_vm10, %v2182_v20, %v6342_v39  ;;  %v6456_v49 = vunpack.i.l.bf16 %v8262_v38  ;;  %v2151_v55 = vsel %vm2125_vm9, %v2118_v62, %v6187_v50  ;;  %v11001_v20 = vld [vmem:[#allocation8_spill] sm:$0xff] }
 0x2a3   : > { %v2247_v5 = vsel %vm2224_vm11, %v2214_v58, %v6451_v21  ;;  %v2248_v54 = vsel %vm2224_vm11, %v2215_v4, %v6452_v29  ;;  %v2184_v46 = vsel %vm2158_vm8, %v2151_v55, %v6267_v24  ;;  %v6507_v29 = vunpack.i.h.bf16 %v6505_v53 }
 0x2a4   : > { %v2280_v57 = vsel %vm2257_vm12, %v2247_v5, %v6501_v56  ;;  %v2281_v32 = vsel %vm2257_vm12, %v2248_v54, %v6502_v44  ;;  %v2217_v33 = vsel %vm2191_vm10, %v2184_v46, %v6347_v60  ;;  %v6506_v21 = vunpack.i.l.bf16 %v6505_v53  ;;  %v11002_v5 = vld [vmem:[#allocation23_spill] sm:$0xff] }
 0x2a5   : > { %v2301_v19 = vpack.c.bf16 %v2281_v32, %v2280_v57  ;;  %v2250_v38 = vsel %vm2224_vm11, %v2217_v33, %v6457_v6  ;;  %v5957_v58 = vunpack.i.h.bf16 %v11001_v20  ;;  %v5956_v4 = vunpack.i.l.bf16 %v11001_v20  ;;  %v11003_v32 = vld [vmem:[#allocation28_spill] sm:$0xff] }
 0x2a6   : > { %v2283_v44 = vsel %vm2257_vm12, %v2250_v38, %v6507_v29  ;;  %v6032_v54 = vunpack.i.h.bf16 %v11002_v5  ;;  %v6031_v57 = vunpack.i.l.bf16 %v11002_v5  ;;  %v6112_v52 = vunpack.i.h.bf16 %v11003_v32  ;;  %v11007_v29 = vld [vmem:[#allocation14_spill] sm:$0xff]  ;;  %v11008_v38 = vld [vmem:[#allocation20_spill] sm:$0xff] }
 0x2a7   : > { %v6111_v30 = vunpack.i.l.bf16 %v11003_v32  ;;  %v2054_v10 = vsel %vm300_vm2, %v7186_v27, %v5957_v58  ;;  %v6352_v28 = vunpack.i.h.bf16 %v11006_v31  ;;  %v6515_v27 = vpop.permute.xlu1 %6514 }
 0x2a8   : > { %v2087_v13 = vsel %vm2059_vm6, %v2054_v10, %v6032_v54 }
 0x2a9   : > { %v2120_v26 = vsel %vm2092_vm7, %v2087_v13, %v6112_v52  ;;  %v7189_v52 = vld [vmem:[#allocation2 + $0x150] sm:$0xff]  ;;  %v6471_v13 = vunpack.i.l.bf16 %v8289_v25 }
 0x2aa   : > { %v8402_v16 = vpop.f32.mrf.mxu0 }
 0x2ad   : > { %5548 = vmatmul.msk.bf16.gmra.mxu0 %vm2342_vm13, %v2300_v36  ;;  %v6106_v36 = vunpack.i.l.bf16 %v10997_v8  ;;  %v7187_v8 = vld [vmem:[#allocation2 + $0x138] sm:$0xff] }
 0x2ae   : > { %v2053_v48 = vsel %vm300_vm2, %v7187_v8, %v5956_v4  ;;  %v11010_v4 = vld [vmem:[#allocation40_spill] sm:$0xff] }
 0x2af   : > { %v2117_v22 = vsel %vm2092_vm7, %v2084_v3, %v6106_v36  ;;  %v11005_v36 = vld [vmem:[#allocation49_spill] sm:$0xff]  ;;  %v2086_v9 = vsel %vm2059_vm6, %v2053_v48, %v6031_v57  ;;  %v6467_v3 = vunpack.i.h.bf16 %v8332_v18  ;;  %v6197_v5 = vunpack.i.h.bf16 %v11010_v4  ;;  %v7188_v57 = vld [vmem:[#allocation2 + $0x158] sm:$0xff] }
 0x2b0   : > { %v2150_v37 = vsel %vm2125_vm9, %v2117_v22, %v6186_v23  ;;  %v6272_v40 = vunpack.i.h.bf16 %v11005_v36  ;;  %v6271_v50 = vunpack.i.l.bf16 %v11005_v36  ;;  %v6510_v23 = vpop.permute.xlu0 %6509  ;;  %v6196_v54 = vunpack.i.l.bf16 %v11010_v4 }
 0x2b1   : > { %v2183_v39 = vsel %vm2158_vm8, %v2150_v37, %v6266_v1  ;;  %v2119_v1 = vsel %vm2092_vm7, %v2086_v9, %v6111_v30  ;;  %v6512_v22 = vunpack.i.h.bf16 %v6510_v23  ;;  %v6511_v62 = vunpack.i.l.bf16 %v6510_v23 }
 0x2b2   : > { %v8421_v41 = vpop.f32.mrf.mxu0  ;;  %v2216_v63 = vsel %vm2191_vm10, %v2183_v39, %v6346_v0  ;;  %v2152_v60 = vsel %vm2125_vm9, %v2119_v1, %v6191_v17  ;;  %v6357_v48 = vunpack.i.h.bf16 %v8047_v61  ;;  %v6356_v36 = vunpack.i.l.bf16 %v8047_v61 }
 0x2b3   : > { %v2249_v14 = vsel %vm2224_vm11, %v2216_v63, %v6456_v49  ;;  %v2185_v6 = vsel %vm2158_vm8, %v2152_v60, %v6271_v50  ;;  %v6472_v9 = vunpack.i.h.bf16 %v8289_v25  ;;  %v6516_v1 = vunpack.i.l.bf16 %v6515_v27 }
 0x2b4   : > { %v2282_v51 = vsel %vm2257_vm12, %v2249_v14, %v6506_v21  ;;  %v2218_v53 = vsel %vm2191_vm10, %v2185_v6, %v6351_v47  ;;  %v5962_v21 = vunpack.i.h.bf16 %v11007_v29  ;;  %v5961_v14 = vunpack.i.l.bf16 %v11007_v29  ;;  %v11012_v6 = vld [vmem:[#allocation11_spill] sm:$0xff] }
 0x2b5   : > { %v2302_v15 = vpack.c.bf16 %v2283_v44, %v2282_v51  ;;  %v2251_v55 = vsel %vm2224_vm11, %v2218_v53, %v6466_v35  ;;  %v6037_v51 = vunpack.i.h.bf16 %v11008_v38  ;;  %v6036_v44 = vunpack.i.l.bf16 %v11008_v38 }
 0x2b6   : > { %v2284_v18 = vsel %vm2257_vm12, %v2251_v55, %v6511_v62  ;;  %v2056_v32 = vsel %vm300_vm2, %v7188_v57, %v5962_v21  ;;  %v2055_v30 = vsel %vm300_vm2, %v7189_v52, %v5961_v14  ;;  %v6517_v47 = vunpack.i.h.bf16 %v6515_v27  ;;  %v11013_v55 = vld [vmem:[#allocation16_spill] sm:$0xff]  ;;  %v11015_v21 = vld [vmem:[#allocation38_spill] sm:$0xff]  ;;  %v6520_v27 = vpop.permute.xlu2 %6519 }
 0x2b7   : > { %v2088_v10 = vsel %vm2059_vm6, %v2055_v30, %v6036_v44  ;;  %v2089_v8 = vsel %vm2059_vm6, %v2056_v32, %v6037_v51  ;;  %v5966_v53 = vunpack.i.l.bf16 %v11012_v6  ;;  %v6202_v14 = vunpack.i.h.bf16 %v11015_v21  ;;  %v7190_v51 = vld [vmem:[#allocation2 + $0x170] sm:$0xff] }
 0x2b8   : > { %v6201_v38 = vunpack.i.l.bf16 %v11015_v21  ;;  %v6362_v32 = vunpack.i.h.bf16 %v8056_v59  ;;  %v6361_v52 = vunpack.i.l.bf16 %v8056_v59 }
 0x2ba   : > { %v8437_v43 = vpop.f32.mrf.mxu0 }
 0x2bd   : > { %5549 = vmatmul.msk.bf16.gmra.mxu0 %vm2342_vm13, %v2301_v19  ;;  %v6192_v19 = vunpack.i.h.bf16 %v11004_v11  ;;  %v11011_v11 = vld [vmem:[#allocation46_spill] sm:$0xff] }
 0x2be   : > { %v6276_v17 = vunpack.i.l.bf16 %v11011_v11 }
 0x2bf   : > { %v2153_v0 = vsel %vm2125_vm9, %v2120_v26, %v6192_v19  ;;  %v6277_v19 = vunpack.i.h.bf16 %v11011_v11 }
 0x2c0   : > { %v2186_v49 = vsel %vm2158_vm8, %v2153_v0, %v6272_v40 }
 0x2c1   : > { %v2219_v37 = vsel %vm2191_vm10, %v2186_v49, %v6352_v28  ;;  %v5967_v49 = vunpack.i.h.bf16 %v11012_v6 }
 0x2c2   : > { %v8462_v12 = vpop.f32.mrf.mxu0  ;;  %v2252_v39 = vsel %vm2224_vm11, %v2219_v37, %v6467_v3 }
 0x2c3   : > { %v2285_v46 = vsel %vm2257_vm12, %v2252_v39, %v6512_v22  ;;  %v6042_v39 = vunpack.i.h.bf16 %v11013_v55  ;;  %v2058_v44 = vsel %vm300_vm2, %v7190_v51, %v5967_v49  ;;  %v2489_v51 = vsel %vm346_vm0, %v8386_v7, 0.0 }
 0x2c4   : > { %v2303_v33 = vpack.c.bf16 %v2285_v46, %v2284_v18  ;;  %v6041_v18 = vunpack.i.l.bf16 %v11013_v55  ;;  %v11014_v46 = vld [vmem:[#allocation32_spill] sm:$0xff]  ;;  %v2485_v55 = vsel %vm346_vm0, %v8349_v42, 0.0 }
 0x2c5   : > { %v6121_v29 = vunpack.i.l.bf16 %v11014_v46 }
 0x2ca   : > { %v8472_v56 = vpop.f32.mrf.mxu0 }
 0x2cd   : > { %5550 = vmatmul.msk.bf16.gmra.mxu0 %vm2342_vm13, %v2302_v15  ;;  %v11009_v15 = vld [vmem:[#allocation25_spill] sm:$0xff] }
 0x2ce   : > { %v6117_v20 = vunpack.i.h.bf16 %v11009_v15  ;;  %v6116_v58 = vunpack.i.l.bf16 %v11009_v15  ;;  %v7191_v15 = vld [vmem:[#allocation2 + $0x168] sm:$0xff] }
 0x2d0   : > { %v2122_v50 = vsel %vm2092_vm7, %v2089_v8, %v6117_v20  ;;  %v2121_v23 = vsel %vm2092_vm7, %v2088_v10, %v6116_v58  ;;  %v2057_v20 = vsel %vm300_vm2, %v7191_v15, %v5966_v53  ;;  %v11016_v58 = vld [vmem:[#allocation48_spill] sm:$0xff]  ;;  %v2562_v53 = vmul.f32 %v8349_v42, %v8349_v42 }
 0x2d1   : > { %v2154_v31 = vsel %vm2125_vm9, %v2121_v23, %v6196_v54  ;;  %v2155_v28 = vsel %vm2125_vm9, %v2122_v50, %v6197_v5  ;;  %v6282_v4 = vunpack.i.h.bf16 %v11016_v58  ;;  %v6281_v5 = vunpack.i.l.bf16 %v11016_v58 }
 0x2d2   : > { %v8491_v24 = vpop.f32.mrf.mxu0  ;;  %v2187_v26 = vsel %vm2158_vm8, %v2154_v31, %v6276_v17  ;;  %v2188_v61 = vsel %vm2158_vm8, %v2155_v28, %v6277_v19  ;;  %v2091_v54 = vsel %vm2059_vm6, %v2058_v44, %v6042_v39  ;;  %v2090_v57 = vsel %vm2059_vm6, %v2057_v20, %v6041_v18 }
 0x2d3   : > { %v2220_v3 = vsel %vm2191_vm10, %v2187_v26, %v6356_v36  ;;  %v2221_v35 = vsel %vm2191_vm10, %v2188_v61, %v6357_v48  ;;  %v2123_v30 = vsel %vm2092_vm7, %v2090_v57, %v6121_v29  ;;  %v6482_v19 = vunpack.i.h.bf16 %v8363_v2 }
 0x2d4   : > { %v2253_v60 = vsel %vm2224_vm11, %v2220_v3, %v6471_v13  ;;  %v2254_v0 = vsel %vm2224_vm11, %v2221_v35, %v6472_v9  ;;  %v6481_v17 = vunpack.i.l.bf16 %v8363_v2  ;;  %v2156_v10 = vsel %vm2125_vm9, %v2123_v30, %v6201_v38 }
 0x2d5   : > { %v2286_v25 = vsel %vm2257_vm12, %v2253_v60, %v6516_v1  ;;  %v2287_v22 = vsel %vm2257_vm12, %v2254_v0, %v6517_v47  ;;  %v2189_v36 = vsel %vm2158_vm8, %v2156_v10, %v6281_v5  ;;  %v6522_v9 = vunpack.i.h.bf16 %v6520_v27 }
 0x2d6   : > { %v2304_v37 = vpack.c.bf16 %v2287_v22, %v2286_v25  ;;  %v2222_v59 = vsel %vm2191_vm10, %v2189_v36, %v6361_v52  ;;  %v6521_v13 = vunpack.i.l.bf16 %v6520_v27  ;;  %v2563_v39 = vmul.f32 %v8367_v45, %v8367_v45 }
 0x2d7   : > { %v2255_v31 = vsel %vm2224_vm11, %v2222_v59, %v6481_v17  ;;  %v2484_v18 = vsel %vm346_vm0, %v8328_v34, 0.0  ;;  %v2564_v29 = vmul.f32 %v8386_v7, %v8386_v7  ;;  %v2565_v44 = vmul.f32 %v8402_v16, %v8402_v16 }
 0x2d8   : > { %v2288_v28 = vsel %vm2257_vm12, %v2255_v31, %v6521_v13  ;;  %v2486_v21 = vadd.f32 %v2485_v55, %v2484_v18  ;;  %v2596_v38 = vsel %vm346_vm0, %v2563_v39, 0.0  ;;  %v2491_v5 = vsel %vm346_vm0, %v8402_v16, 0.0 }
 0x2d9   : > { %v2600_v52 = vsel %vm346_vm0, %v2565_v44, 0.0  ;;  %v2493_v30 = vsel %vm346_vm0, %v8421_v41, 0.0  ;;  %v2495_v10 = vsel %vm346_vm0, %v8437_v43, 0.0  ;;  %v2501_v39 = vsel %vm346_vm0, %v8491_v24, 0.0 }
 0x2da   : > { %v8507_v63 = vpop.f32.mrf.mxu0 }
 0x2db   : > { %v2571_v18 = vmul.f32 %v8507_v63, %v8507_v63 }
 0x2dd   : > { %5551 = vmatmul.msk.bf16.gmra.mxu0 %vm2342_vm13, %v2303_v33  ;;  %v6122_v33 = vunpack.i.h.bf16 %v11014_v46  ;;  %v2594_v46 = vsel %vm346_vm0, %v2562_v53, 0.0  ;;  %v2612_v44 = vsel %vm346_vm0, %v2571_v18, 0.0 }
 0x2df   : > { %v2124_v11 = vsel %vm2092_vm7, %v2091_v54, %v6122_v33  ;;  %v2487_v33 = vsel %vm346_vm0, %v8367_v45, 0.0  ;;  %v2566_v54 = vmul.f32 %v8421_v41, %v8421_v41 }
 0x2e0   : > { %v2157_v8 = vsel %vm2125_vm9, %v2124_v11, %v6202_v14  ;;  %v2488_v15 = vadd.f32 %v2487_v33, %v2486_v21  ;;  %v2567_v11 = vmul.f32 %v8437_v43, %v8437_v43  ;;  %v2503_v21 = vsel %vm346_vm0, %v8507_v63, 0.0 }
 0x2e1   : > { %v2190_v50 = vsel %vm2158_vm8, %v2157_v8, %v6282_v4  ;;  %v2598_v4 = vsel %vm346_vm0, %v2564_v29, 0.0  ;;  %v2602_v27 = vsel %vm346_vm0, %v2566_v54, 0.0  ;;  %v2568_v8 = vmul.f32 %v8462_v12, %v8462_v12 }
 0x2e2   : > { %v8526_v40 = vpop.f32.mrf.mxu0  ;;  %v2223_v23 = vsel %vm2191_vm10, %v2190_v50, %v6362_v32  ;;  %v2490_v32 = vadd.f32 %v2489_v51, %v2488_v15  ;;  %v2604_v59 = vsel %vm346_vm0, %v2567_v11, 0.0  ;;  %vm4215_vm8 = vcmask 97280  }
 0x2e3   : > { %v2256_v2 = vsel %vm2224_vm11, %v2223_v23, %v6482_v19  ;;  %v2497_v23 = vsel %vm346_vm0, %v8462_v12, 0.0  ;;  %v2505_v15 = vsel %vm346_vm0, %v8526_v40, 0.0  ;;  %vm4280_vm10 = vcmask 162816  }
 0x2e4   : > { %v2289_v47 = vsel %vm2257_vm12, %v2256_v2, %v6522_v9  ;;  %v2492_v19 = vadd.f32 %v2491_v5, %v2490_v32  ;;  %v2569_v9 = vmul.f32 %v8472_v56, %v8472_v56  ;;  %vm4345_vm11 = vcmask 228352  }
 0x2e5   : > { %v2305_v26 = vpack.c.bf16 %v2289_v47, %v2288_v28  ;;  %v2606_v28 = vsel %vm346_vm0, %v2568_v8, 0.0  ;;  %v2499_v47 = vsel %vm346_vm0, %v8472_v56, 0.0  ;;  %vm4446_vm12 = vcmask 293888  }
 0x2e6   : > { %v2494_v50 = vadd.f32 %v2493_v30, %v2492_v19  ;;  %v2608_v55 = vsel %vm346_vm0, %v2569_v9, 0.0 }
 0x2e8   : > { %v2496_v13 = vadd.f32 %v2495_v10, %v2494_v50 }
 0x2ea   : > { %v8542_v62 = vpop.f32.mrf.mxu0 }
 0x2eb   : > { %v2507_v32 = vsel %vm346_vm0, %v8542_v62, 0.0 }
 0x2ed   : > { %5552 = vmatmul.msk.bf16.gmra.mxu0 %vm2342_vm13, %v2304_v37  ;;  %v2561_v37 = vmul.f32 %v8328_v34, %v8328_v34 }
 0x2ef   : > { %v2593_v14 = vsel %vm346_vm0, %v2561_v37, 0.0  ;;  %v2498_v37 = vadd.f32 %v2497_v23, %v2496_v13 }
 0x2f0   : > { %v2595_v20 = vadd.f32 %v2594_v46, %v2593_v14  ;;  %v2572_v14 = vmul.f32 %v8526_v40, %v8526_v40 }
 0x2f1   : > { %v2500_v46 = vadd.f32 %v2499_v47, %v2498_v37 }
 0x2f2   : > { %v8567_v48 = vpop.f32.mrf.mxu0  ;;  %v2597_v57 = vadd.f32 %v2596_v38, %v2595_v20  ;;  %v2573_v20 = vmul.f32 %v8542_v62, %v8542_v62 }
 0x2f3   : > { %v2502_v51 = vadd.f32 %v2501_v39, %v2500_v46 }
 0x2f4   : > { %v2599_v17 = vadd.f32 %v2598_v4, %v2597_v57  ;;  %v2614_v57 = vsel %vm346_vm0, %v2572_v14, 0.0  ;;  %v2616_v19 = vsel %vm346_vm0, %v2573_v20, 0.0 }
 0x2f5   : > { %v2504_v5 = vadd.f32 %v2503_v21, %v2502_v51 }
 0x2f6   : > { %v2601_v36 = vadd.f32 %v2600_v52, %v2599_v17  ;;  %v2574_v52 = vmul.f32 %v8567_v48, %v8567_v48  ;;  %v2509_v17 = vsel %vm346_vm0, %v8567_v48, 0.0 }
 0x2f7   : > { %v2506_v11 = vadd.f32 %v2505_v15, %v2504_v5 }
 0x2f8   : > { %v2603_v31 = vadd.f32 %v2602_v27, %v2601_v36  ;;  %v2618_v36 = vsel %vm346_vm0, %v2574_v52, 0.0 }
 0x2f9   : > { %v2508_v8 = vadd.f32 %v2507_v32, %v2506_v11 }
 0x2fa   : > { %v8577_v1 = vpop.f32.mrf.mxu0  ;;  %v2605_v53 = vadd.f32 %v2604_v59, %v2603_v31 }
 0x2fb   : > { %v2575_v27 = vmul.f32 %v8577_v1, %v8577_v1  ;;  %v2511_v50 = vsel %vm346_vm0, %v8577_v1, 0.0  ;;  %v2510_v9 = vadd.f32 %v2509_v17, %v2508_v8 }
 0x2fc   : > { %v2607_v33 = vadd.f32 %v2606_v28, %v2605_v53 }
 0x2fd   : > { %5553 = vmatmul.msk.bf16.gmra.mxu0 %vm2342_vm13, %v2305_v26  ;;  %v2570_v26 = vmul.f32 %v8491_v24, %v8491_v24  ;;  %v2620_v13 = vsel %vm346_vm0, %v2575_v27, 0.0 }
 0x2fe   : > { %v2609_v38 = vadd.f32 %v2608_v55, %v2607_v33 }
 0x2ff   : > { %v2610_v29 = vsel %vm346_vm0, %v2570_v26, 0.0  ;;  %v2512_v26 = vadd.f32 %v2511_v50, %v2510_v9 }
 0x300   : > { %v2611_v4 = vadd.f32 %v2610_v29, %v2609_v38 }
 0x302   : > { %v8580_v61 = vpop.f32.mrf.mxu0  ;;  %v2613_v30 = vadd.f32 %v2612_v44, %v2611_v4 }
 0x303   : > { %v2576_v59 = vmul.f32 %v8580_v61, %v8580_v61  ;;  %v2513_v31 = vsel %vm346_vm0, %v8580_v61, 0.0 }
 0x304   : > { %v2615_v10 = vadd.f32 %v2614_v57, %v2613_v30  ;;  %v2514_v46 = vadd.f32 %v2513_v31, %v2512_v26 }
 0x305   : > { %v2622_v37 = vsel %vm346_vm0, %v2576_v59, 0.0 }
 0x306   : > { %v2617_v23 = vadd.f32 %v2616_v19, %v2615_v10 }
 0x308   : > { %v2619_v47 = vadd.f32 %v2618_v36, %v2617_v23 }
 0x30a   : > { %v8582_v3 = vpop.f32.mrf.mxu0  ;;  %v2621_v18 = vadd.f32 %v2620_v13, %v2619_v47 }
 0x30b   : > { %v2577_v28 = vmul.f32 %v8582_v3, %v8582_v3  ;;  %v2515_v55 = vsel %vm346_vm0, %v8582_v3, 0.0 }
 0x30c   : > { %v2623_v14 = vadd.f32 %v2622_v37, %v2621_v18  ;;  %v2516_v38 = vadd.f32 %v2515_v55, %v2514_v46 }
 0x30d   : > { %v2624_v33 = vsel %vm346_vm0, %v2577_v28, 0.0 }
 0x30e   : > { %v2625_v20 = vadd.f32 %v2624_v33, %v2623_v14 }
 0x312   : > { %v8584_v35 = vpop.f32.mrf.mxu0 }
 0x313   : > { %v2578_v39 = vmul.f32 %v8584_v35, %v8584_v35  ;;  %v2517_v29 = vsel %vm346_vm0, %v8584_v35, 0.0 }
 0x314   : > { %v2518_v4 = vadd.f32 %v2517_v29, %v2516_v38 }
 0x315   : > { %v2626_v51 = vsel %vm346_vm0, %v2578_v39, 0.0 }
 0x316   : > { %v2627_v52 = vadd.f32 %v2626_v51, %v2625_v20 }
 0x31a   : > { %v8586_v60 = vpop.f32.mrf.mxu0 }
 0x31b   : > { %v2579_v21 = vmul.f32 %v8586_v60, %v8586_v60  ;;  %v2519_v44 = vsel %vm346_vm0, %v8586_v60, 0.0 }
 0x31c   : > { %v2520_v30 = vadd.f32 %v2519_v44, %v2518_v4 }
 0x31d   : > { %v2628_v5 = vsel %vm346_vm0, %v2579_v21, 0.0 }
 0x31e   : > { %v2629_v10 = vadd.f32 %v2628_v5, %v2627_v52 }
 0x322   : > { %v8588_v0 = vpop.f32.mrf.mxu0 }
 0x323   : > { %v2580_v15 = vmul.f32 %v8588_v0, %v8588_v0  ;;  %v2521_v57 = vsel %vm346_vm0, %v8588_v0, 0.0 }
 0x324   : > { %v2522_v8 = vadd.f32 %v2521_v57, %v2520_v30  ;;  %v7210_v57 = vmov 256.0  }
 0x325   : > { %v2630_v19 = vsel %vm346_vm0, %v2580_v15, 0.0  ;;  %7164 = vrcp.f32 %v7210_v57 }
 0x326   : > { %v2631_v23 = vadd.f32 %v2630_v19, %v2629_v10 }
 0x32a   : > { %v8590_v25 = vpop.f32.mrf.mxu0 }
 0x32b   : > { %v2581_v32 = vmul.f32 %v8590_v25, %v8590_v25  ;;  %v2523_v17 = vsel %vm346_vm0, %v8590_v25, 0.0 }
 0x32c   : > { %v2524_v9 = vadd.f32 %v2523_v17, %v2522_v8 }
 0x32d   : > { %v2632_v36 = vsel %vm346_vm0, %v2581_v32, 0.0 }
 0x32e   : > { %v2633_v47 = vadd.f32 %v2632_v36, %v2631_v23 }
 0x332   : > { %v8592_v22 = vpop.f32.mrf.mxu0 }
 0x333   : > { %v2582_v27 = vmul.f32 %v8592_v22, %v8592_v22  ;;  %v2525_v50 = vsel %vm346_vm0, %v8592_v22, 0.0 }
 0x334   : > { %v2526_v26 = vadd.f32 %v2525_v50, %v2524_v9 }
 0x335   : > { %v2634_v13 = vsel %vm346_vm0, %v2582_v27, 0.0 }
 0x336   : > { %v2635_v18 = vadd.f32 %v2634_v13, %v2633_v47 }
 0x33a   : > { %v8594_v6 = vpop.f32.mrf.mxu0 }
 0x33b   : > { %v2583_v59 = vmul.f32 %v8594_v6, %v8594_v6  ;;  %v2527_v31 = vsel %vm346_vm0, %v8594_v6, 0.0 }
 0x33c   : > { %v2528_v46 = vadd.f32 %v2527_v31, %v2526_v26  ;;  %v7165_v31 = vpop.eup %7164 }
 0x33d   : > { %v2636_v37 = vsel %vm346_vm0, %v2583_v59, 0.0  ;;  %vm2558_vm14 = vweird.f32 %v7165_v31 }
 0x33e   : > { %v2637_v38 = vadd.f32 %v2636_v37, %v2635_v18 }
 0x342   : > { %v8596_v49 = vpop.f32.mrf.mxu0 }
 0x343   : > { %v2584_v28 = vmul.f32 %v8596_v49, %v8596_v49  ;;  %v2529_v55 = vsel %vm346_vm0, %v8596_v49, 0.0 }
 0x344   : > { %v2530_v51 = vadd.f32 %v2529_v55, %v2528_v46 }
 0x345   : > { %v2638_v29 = vsel %vm346_vm0, %v2584_v28, 0.0 }
 0x346   : > { %v2639_v4 = vadd.f32 %v2638_v29, %v2637_v38 }
 0x34a   : > { %v8619_v58 = vpop.f32.mrf.mxu0 }
 0x34b   : > { %v2585_v39 = vmul.f32 %v8619_v58, %v8619_v58  ;;  %v2531_v21 = vsel %vm346_vm0, %v8619_v58, 0.0 }
 0x34c   : > { %v2532_v5 = vadd.f32 %v2531_v21, %v2530_v51  ;;  %v2554_v21 = vmul.f32 256.0, %v7165_v31 }
 0x34d   : > { %v2640_v44 = vsel %vm346_vm0, %v2585_v39, 0.0 }
 0x34e   : > { %v2641_v19 = vadd.f32 %v2640_v44, %v2639_v4 }
 0x352   : > { %v8641_v2 = vpop.f32.mrf.mxu0 }
 0x353   : > { %v2586_v14 = vmul.f32 %v8641_v2, %v8641_v2  ;;  %v2533_v15 = vsel %vm346_vm0, %v8641_v2, 0.0 }
 0x354   : > { %v2534_v17 = vadd.f32 %v2533_v15, %v2532_v5  ;;  %v2555_v5 = vsub.f32 1.0, %v2554_v21  ;;  %v11018_v21 = vmov 0.0  }
 0x355   : > { %v2642_v32 = vsel %vm346_vm0, %v2586_v14, 0.0  ;;  %350 = vst.msk [vmem:[#allocation3 + $0x10] sm:$0x3] %vm349_vm15, %v11018_v21 }
 0x356   : > { %v2643_v36 = vadd.f32 %v2642_v32, %v2641_v19  ;;  %354 = vst.msk [vmem:[#allocation3 + $0x1a8] sm:$0x3] %vm349_vm15, %v11018_v21 }
 0x357   : > { %374 = vst.msk [vmem:[#allocation3 + $0x11] sm:$0x1] %vm355_vm1, %v11018_v21 }
 0x358   : > { %356 = vst.msk [vmem:[#allocation3] sm:$0x1] %vm355_vm1, %v11018_v21 }
 0x359   : > { %357 = vst.msk [vmem:[#allocation3 + $0x18] sm:$0x1] %vm355_vm1, %v11018_v21 }
 0x35a   : > { %v8663_v54 = vpop.f32.mrf.mxu0  ;;  %358 = vst.msk [vmem:[#allocation3 + $0x30] sm:$0x1] %vm355_vm1, %v11018_v21 }
 0x35b   : > { %v2587_v20 = vmul.f32 %v8663_v54, %v8663_v54  ;;  %v2535_v52 = vsel %vm346_vm0, %v8663_v54, 0.0  ;;  %359 = vst.msk [vmem:[#allocation3 + $0x48] sm:$0x1] %vm355_vm1, %v11018_v21 }
 0x35c   : > { %v2536_v50 = vadd.f32 %v2535_v52, %v2534_v17  ;;  %360 = vst.msk [vmem:[#allocation3 + $0x60] sm:$0x1] %vm355_vm1, %v11018_v21 }
 0x35d   : > { %v2644_v27 = vsel %vm346_vm0, %v2587_v20, 0.0  ;;  %361 = vst.msk [vmem:[#allocation3 + $0x78] sm:$0x1] %vm355_vm1, %v11018_v21 }
 0x35e   : > { %v2645_v28 = vadd.f32 %v2644_v27, %v2643_v36  ;;  %v2556_v27 = vmul.f32 %v7165_v31, %v2555_v5  ;;  %v2870_v5 = vld [vmem:[#allocation3 + $0x1] sm:$0xff]  ;;  %362 = vst.msk [vmem:[#allocation3 + $0x90] sm:$0x1] %vm355_vm1, %v11018_v21 }
 0x35f   : > { %363 = vst.msk [vmem:[#allocation3 + $0xa8] sm:$0x1] %vm355_vm1, %v11018_v21 }
 0x360   : > { %364 = vst.msk [vmem:[#allocation3 + $0xc0] sm:$0x1] %vm355_vm1, %v11018_v21 }
 0x361   : > { %365 = vst.msk [vmem:[#allocation3 + $0xd8] sm:$0x1] %vm355_vm1, %v11018_v21 }
 0x362   : > { %v8685_v53 = vpop.f32.mrf.mxu0  ;;  %366 = vst.msk [vmem:[#allocation3 + $0xf0] sm:$0x1] %vm355_vm1, %v11018_v21 }
 0x363   : > { %v2588_v30 = vmul.f32 %v8685_v53, %v8685_v53  ;;  %v2537_v10 = vsel %vm346_vm0, %v8685_v53, 0.0  ;;  %367 = vst.msk [vmem:[#allocation3 + $0x108] sm:$0x1] %vm355_vm1, %v11018_v21 }
 0x364   : > { %v2538_v47 = vadd.f32 %v2537_v10, %v2536_v50  ;;  %368 = vst.msk [vmem:[#allocation3 + $0x120] sm:$0x1] %vm355_vm1, %v11018_v21 }
 0x365   : > { %v2646_v23 = vsel %vm346_vm0, %v2588_v30, 0.0  ;;  %369 = vst.msk [vmem:[#allocation3 + $0x138] sm:$0x1] %vm355_vm1, %v11018_v21 }
 0x366   : > { %v2647_v39 = vadd.f32 %v2646_v23, %v2645_v28  ;;  %v2557_v23 = vadd.f32 %v7165_v31, %v2556_v27  ;;  %v2903_v27 = vld [vmem:[#allocation3 + $0xa] sm:$0xff]  ;;  %370 = vst.msk [vmem:[#allocation3 + $0x150] sm:$0x1] %vm355_vm1, %v11018_v21 }
 0x367   : > { %371 = vst.msk [vmem:[#allocation3 + $0x168] sm:$0x1] %vm355_vm1, %v11018_v21 }
 0x368   : > { %372 = vst.msk [vmem:[#allocation3 + $0x180] sm:$0x1] %vm355_vm1, %v11018_v21 }
 0x369   : > { %373 = vst.msk [vmem:[#allocation3 + $0x198] sm:$0x1] %vm355_vm1, %v11018_v21 }
 0x36a   : > { %v8707_v11 = vpop.f32.mrf.mxu0  ;;  %375 = vst.msk [vmem:[#allocation3 + $0x29] sm:$0x1] %vm355_vm1, %v11018_v21 }
 0x36b   : > { %v2589_v8 = vmul.f32 %v8707_v11, %v8707_v11  ;;  %v2539_v9 = vsel %vm346_vm0, %v8707_v11, 0.0  ;;  %376 = vst.msk [vmem:[#allocation3 + $0x41] sm:$0x1] %vm355_vm1, %v11018_v21 }
 0x36c   : > { %v2540_v18 = vadd.f32 %v2539_v9, %v2538_v47  ;;  %377 = vst.msk [vmem:[#allocation3 + $0x59] sm:$0x1] %vm355_vm1, %v11018_v21 }
 0x36d   : > { %v2648_v26 = vsel %vm346_vm0, %v2589_v8, 0.0  ;;  %378 = vst.msk [vmem:[#allocation3 + $0x71] sm:$0x1] %vm355_vm1, %v11018_v21 }
 0x36e   : > { %v2649_v14 = vadd.f32 %v2648_v26, %v2647_v39  ;;  %v8774_v26 = vsel %vm2558_vm14, %v7165_v31, %v2557_v23  ;;  %379 = vst.msk [vmem:[#allocation3 + $0x89] sm:$0x1] %vm355_vm1, %v11018_v21 }
 0x36f   : > { %11017 = vst [vmem:[#allocation5_spill] sm:$0xff] %v8774_v26 }
 0x370   : > { %380 = vst.msk [vmem:[#allocation3 + $0xa1] sm:$0x1] %vm355_vm1, %v11018_v21 }
 0x371   : > { %381 = vst.msk [vmem:[#allocation3 + $0xb9] sm:$0x1] %vm355_vm1, %v11018_v21 }
 0x372   : > { %v8729_v33 = vpop.f32.mrf.mxu0  ;;  %382 = vst.msk [vmem:[#allocation3 + $0xd1] sm:$0x1] %vm355_vm1, %v11018_v21 }
 0x373   : > { %v2590_v13 = vmul.f32 %v8729_v33, %v8729_v33  ;;  %v2541_v37 = vsel %vm346_vm0, %v8729_v33, 0.0  ;;  %383 = vst.msk [vmem:[#allocation3 + $0xe9] sm:$0x1] %vm355_vm1, %v11018_v21 }
 0x374   : > { %v2542_v38 = vadd.f32 %v2541_v37, %v2540_v18  ;;  %384 = vst.msk [vmem:[#allocation3 + $0x101] sm:$0x1] %vm355_vm1, %v11018_v21 }
 0x375   : > { %v2650_v46 = vsel %vm346_vm0, %v2590_v13, 0.0  ;;  %385 = vst.msk [vmem:[#allocation3 + $0x119] sm:$0x1] %vm355_vm1, %v11018_v21 }
 0x376   : > { %v2651_v44 = vadd.f32 %v2650_v46, %v2649_v14  ;;  %386 = vst.msk [vmem:[#allocation3 + $0x131] sm:$0x1] %vm355_vm1, %v11018_v21 }
 0x377   : > { %387 = vst.msk [vmem:[#allocation3 + $0x149] sm:$0x1] %vm355_vm1, %v11018_v21 }
 0x378   : > { %388 = vst.msk [vmem:[#allocation3 + $0x161] sm:$0x1] %vm355_vm1, %v11018_v21 }
 0x379   : > { %389 = vst.msk [vmem:[#allocation3 + $0x179] sm:$0x1] %vm355_vm1, %v11018_v21 }
 0x37a   : > { %v8751_v59 = vpop.f32.mrf.mxu0  ;;  %390 = vst.msk [vmem:[#allocation3 + $0x191] sm:$0x1] %vm355_vm1, %v11018_v21 }
 0x37b   : > { %v2591_v55 = vmul.f32 %v8751_v59, %v8751_v59  ;;  %v2543_v29 = vsel %vm346_vm0, %v8751_v59, 0.0  ;;  %391 = vst.msk [vmem:[#allocation3 + $0x1a9] sm:$0x1] %vm355_vm1, %v11018_v21 }
 0x37c   : > { %v2544_v15 = vadd.f32 %v2543_v29, %v2542_v38 }
 0x37d   : > { %v2652_v51 = vsel %vm346_vm0, %v2591_v55, 0.0 }
 0x37e   : > { %v2653_v32 = vadd.f32 %v2652_v51, %v2651_v44 }
 0x382   : > { %v8767_v20 = vpop.f32.mrf.mxu0 }
 0x383   : > { %v2545_v4 = vsel %vm346_vm0, %v8767_v20, 0.0  ;;  %v2592_v57 = vmul.f32 %v8767_v20, %v8767_v20 }
 0x384   : > { %v2546_v52 = vadd.f32 %v2545_v4, %v2544_v15 }
 0x385   : > { %v2654_v30 = vsel %vm346_vm0, %v2592_v57, 0.0  ;;  %v2871_v57 = vld [vmem:[#allocation3 + $0x9] sm:$0xff] }
 0x386   : > { %v2547_v19 = vrot.slane %v2546_v52, 4  ;;  %v2655_v17 = vadd.f32 %v2654_v30, %v2653_v32  ;;  %v6523_v32 = vpack.i.bf16 %v2871_v57, %v2870_v5 }
 0x388   : > { %v2548_v10 = vadd.f32 %v2547_v19, %v2546_v52  ;;  %v2656_v8 = vrot.slane %v2655_v17, 4  ;;  %v2902_v19 = vld [vmem:[#allocation3 + $0x2] sm:$0xff]  ;;  %6524 = vrot.lane.b32.xlu0 %v6523_v32, %s7200_s30 }
 0x38a   : > { %v2549_v36 = vrot.slane %v2548_v10, 2  ;;  %v2657_v50 = vadd.f32 %v2656_v8, %v2655_v17 }
 0x38c   : > { %v2550_v9 = vadd.f32 %v2549_v36, %v2548_v10  ;;  %v2658_v13 = vrot.slane %v2657_v50, 2  ;;  %v6528_v10 = vpack.i.bf16 %v2903_v27, %v2902_v19 }
 0x38e   : > { %v2551_v28 = vrot.slane %v2550_v9, 1  ;;  %v2659_v47 = vadd.f32 %v2658_v13, %v2657_v50  ;;  %6529 = vrot.lane.b32.xlu1 %v6528_v10, %s7202_s11 }
 0x390   : > { %v2552_v37 = vadd.f32 %v2551_v28, %v2550_v9  ;;  %v2660_v55 = vrot.slane %v2659_v47, 1 }
 0x392   : > { %v8777_v39 = vmul.f32 %v8774_v26, %v2552_v37  ;;  %v2661_v18 = vadd.f32 %v2660_v55, %v2659_v47 }
 0x394   : > { %v2662_v46 = vmul.f32 %v2661_v18, %v8774_v26  ;;  %v2663_v29 = vmul.f32 %v8777_v39, %v8777_v39  ;;  %v2693_v51 = vsub.f32 %v8685_v53, %v8777_v39  ;;  %v2694_v44 = vsub.f32 %v8707_v11, %v8777_v39 }
 0x395   : > { %v2695_v15 = vsub.f32 %v8729_v33, %v8777_v39  ;;  %v2696_v4 = vsub.f32 %v8751_v59, %v8777_v39  ;;  %v2697_v23 = vsub.f32 %v8767_v20, %v8777_v39  ;;  %v2670_v47 = vsub.f32 %v8402_v16, %v8777_v39 }
 0x396   : > { %v2664_v14 = vsub.f32 %v2662_v46, %v2663_v29  ;;  %v2671_v37 = vsub.f32 %v8421_v41, %v8777_v39  ;;  %v2668_v55 = vsub.f32 %v8367_v45, %v8777_v39  ;;  %v2669_v16 = vsub.f32 %v8386_v7, %v8777_v39 }
 0x397   : > { %v2666_v41 = vsub.f32 %v8328_v34, %v8777_v39  ;;  %v2667_v29 = vsub.f32 %v8349_v42, %v8777_v39  ;;  %v2674_v57 = vsub.f32 %v8472_v56, %v8777_v39 }
 0x398   : > { %v2665_v38 = vmax.f32 %v2664_v14, 0.0  ;;  %v2672_v14 = vsub.f32 %v8437_v43, %v8777_v39  ;;  %v2675_v43 = vsub.f32 %v8491_v24, %v8777_v39  ;;  %v2678_v24 = vsub.f32 %v8542_v62, %v8777_v39 }
 0x399   : > { %v2680_v62 = vsub.f32 %v8577_v1, %v8777_v39 }
 0x39a   : > { %v2698_v31 = vadd.f32 1e-05, %v2665_v38 }
 0x39c   : > { %7166 = vrsqrt.f32 %v2698_v31  ;;  %vm2705_vm4 = vweird.f32 %v2698_v31 }
 0x3a2   : > { %v7167_v52 = vpop.eup %7166 }
 0x3a3   : > { %v2700_v30 = vmul.f32 %v7167_v52, %v2698_v31  ;;  %vm2706_vm3 = vweird.f32 %v7167_v52  ;;  %v2673_v31 = vsub.f32 %v8462_v12, %v8777_v39  ;;  %v2676_v12 = vsub.f32 %v8507_v63, %v8777_v39 }
 0x3a4   : > { %vm2707_vm5 = vmor %vm2705_vm4, %vm2706_vm3 }
 0x3a5   : > { %v2701_v17 = vmul.f32 %v7167_v52, %v2700_v30  ;;  %v2677_v30 = vsub.f32 %v8526_v40, %v8777_v39  ;;  %v2679_v40 = vsub.f32 %v8567_v48, %v8777_v39  ;;  %v2681_v48 = vsub.f32 %v8580_v61, %v8777_v39 }
 0x3a7   : > { %v2702_v8 = vmul.f32 0.5, %v2701_v17 }
 0x3a9   : > { %v2703_v36 = vsub.f32 1.5, %v2702_v8 }
 0x3ab   : > { %v2704_v50 = vmul.f32 %v7167_v52, %v2703_v36 }
 0x3ad   : > { %v8826_v9 = vsel %vm2707_vm5, %v7167_v52, %v2704_v50 }
 0x3ae   : > { %v2740_v13 = vmul.f32 %v8826_v9, %v2697_v23  ;;  %v2713_v18 = vmul.f32 %v8826_v9, %v2670_v47  ;;  %v2714_v46 = vmul.f32 %v8826_v9, %v2671_v37  ;;  %v2711_v45 = vmul.f32 %v8826_v9, %v2668_v55 }
 0x3af   : > { %v2712_v7 = vmul.f32 %v8826_v9, %v2669_v16  ;;  %v2709_v34 = vmul.f32 %v8826_v9, %v2666_v41  ;;  %v2710_v42 = vmul.f32 %v8826_v9, %v2667_v29  ;;  %v2715_v32 = vmul.f32 %v8826_v9, %v2672_v14 }
 0x3b0   : > { %v2772_v28 = vmul.f32 0.01, %v2740_v13  ;;  %v2745_v38 = vmul.f32 0.01, %v2713_v18  ;;  %v2746_v5 = vmul.f32 0.01, %v2714_v46  ;;  %v2716_v56 = vmul.f32 %v8826_v9, %v2673_v31 }
 0x3b1   : > { %v2743_v52 = vmul.f32 0.01, %v2711_v45  ;;  %v2744_v19 = vmul.f32 0.01, %v2712_v7  ;;  %v8903_v17 = vmul.f32 %v8826_v9, %v2674_v57  ;;  %v2741_v27 = vmul.f32 0.01, %v2709_v34 }
 0x3b2   : > { %v2804_v20 = vmax.f32 %v2740_v13, %v2772_v28  ;;  %v2777_v63 = vmax.f32 %v2713_v18, %v2745_v38  ;;  %v8910_v10 = vmul.f32 %v8826_v9, %v2675_v43  ;;  %v2742_v8 = vmul.f32 0.01, %v2710_v42 }
 0x3b3   : > { %v2778_v36 = vmax.f32 %v2714_v46, %v2746_v5  ;;  %v8917_v50 = vmul.f32 %v8826_v9, %v2676_v12  ;;  %v2747_v23 = vmul.f32 0.01, %v2715_v32  ;;  %v2775_v13 = vmax.f32 %v2711_v45, %v2743_v52 }
 0x3b4   : > { %2837 = vst.msk [vmem:[#allocation3 + $0x189] sm:$0xff] %vm346_vm0, %v2804_v20  ;;  %v8922_v28 = vmul.f32 %v8826_v9, %v2677_v30  ;;  %v2748_v20 = vmul.f32 0.01, %v2716_v56  ;;  %v2776_v47 = vmax.f32 %v2712_v7, %v2744_v19  ;;  %v2682_v37 = vsub.f32 %v8582_v3, %v8777_v39 }
 0x3b5   : > { %v8927_v1 = vmul.f32 %v8826_v9, %v2678_v24  ;;  %v2749_v21 = vmul.f32 0.01, %v8903_v17  ;;  %2810 = vst.msk [vmem:[#allocation3 + $0x49] sm:$0xff] %vm346_vm0, %v2777_v63  ;;  %v2773_v55 = vmax.f32 %v2709_v34, %v2741_v27  ;;  %v2683_v18 = vsub.f32 %v8584_v35, %v8777_v39 }
 0x3b6   : > { %v8934_v61 = vmul.f32 %v8826_v9, %v2679_v40  ;;  %v2750_v16 = vmul.f32 0.01, %v8910_v10  ;;  %2811 = vst.msk [vmem:[#allocation3 + $0x51] sm:$0xff] %vm346_vm0, %v2778_v36  ;;  %v2774_v46 = vmax.f32 %v2710_v42, %v2742_v8  ;;  %v2684_v3 = vsub.f32 %v8586_v60, %v8777_v39 }
 0x3b7   : > { %v8941_v41 = vmul.f32 %v8826_v9, %v2680_v62  ;;  %v2751_v45 = vmul.f32 0.01, %v8917_v50  ;;  %v2779_v29 = vmax.f32 %v2715_v32, %v2747_v23  ;;  %2808 = vst.msk [vmem:[#allocation3 + $0x31] sm:$0xff] %vm346_vm0, %v2775_v13  ;;  %v2685_v35 = vsub.f32 %v8588_v0, %v8777_v39 }
 0x3b8   : > { %v8948_v7 = vmul.f32 %v8826_v9, %v2681_v48  ;;  %v2752_v14 = vmul.f32 0.01, %v8922_v28  ;;  %v2780_v34 = vmax.f32 %v2716_v56, %v2748_v20  ;;  %2809 = vst.msk [vmem:[#allocation3 + $0x39] sm:$0xff] %vm346_vm0, %v2776_v47  ;;  %v2686_v60 = vsub.f32 %v8590_v25, %v8777_v39 }
 0x3b9   : > { %v8955_v38 = vmul.f32 %v8826_v9, %v2682_v37  ;;  %v2753_v31 = vmul.f32 0.01, %v8927_v1  ;;  %v2781_v42 = vmax.f32 %v8903_v17, %v2749_v21  ;;  %2806 = vst.msk [vmem:[#allocation3 + $0x19] sm:$0xff] %vm346_vm0, %v2773_v55  ;;  %v2687_v0 = vsub.f32 %v8592_v22, %v8777_v39 }
 0x3ba   : > { %v8963_v5 = vmul.f32 %v8826_v9, %v2683_v18  ;;  %v2754_v57 = vmul.f32 0.01, %v8934_v61  ;;  %v2782_v43 = vmax.f32 %v8910_v10, %v2750_v16  ;;  %2807 = vst.msk [vmem:[#allocation3 + $0x21] sm:$0xff] %vm346_vm0, %v2774_v46  ;;  %v2688_v25 = vsub.f32 %v8594_v6, %v8777_v39 }
 0x3bb   : > { %v8971_v32 = vmul.f32 %v8826_v9, %v2684_v3  ;;  %v2755_v52 = vmul.f32 0.01, %v8941_v41  ;;  %v2783_v12 = vmax.f32 %v8917_v50, %v2751_v45  ;;  %2812 = vst.msk [vmem:[#allocation3 + $0x61] sm:$0xff] %vm346_vm0, %v2779_v29  ;;  %v2689_v22 = vsub.f32 %v8596_v49, %v8777_v39 }
 0x3bc   : > { %v8979_v30 = vmul.f32 %v8826_v9, %v2685_v35  ;;  %v2756_v56 = vmul.f32 0.01, %v8948_v7  ;;  %v2876_v19 = vld [vmem:[#allocation3 + $0x49] sm:$0xff]  ;;  %v2784_v6 = vmax.f32 %v8922_v28, %v2752_v14  ;;  %2813 = vst.msk [vmem:[#allocation3 + $0x69] sm:$0xff] %vm346_vm0, %v2780_v34  ;;  %v2690_v24 = vsub.f32 %v8619_v58, %v8777_v39 }
 0x3bd   : > { %v8987_v17 = vmul.f32 %v8826_v9, %v2686_v60  ;;  %v2757_v27 = vmul.f32 0.01, %v8955_v38  ;;  %v2877_v63 = vld [vmem:[#allocation3 + $0x51] sm:$0xff]  ;;  %v2785_v49 = vmax.f32 %v8927_v1, %v2753_v31  ;;  %2814 = vst.msk [vmem:[#allocation3 + $0x79] sm:$0xff] %vm346_vm0, %v2781_v42  ;;  %v8993_v40 = vmul.f32 %v8826_v9, %v2687_v0 }
 0x3be   : > { %v2758_v10 = vmul.f32 0.01, %v8963_v5  ;;  %v8996_v8 = vpack.i.bf16 %v2877_v63, %v2876_v19  ;;  %v2786_v36 = vmax.f32 %v8934_v61, %v2754_v57  ;;  %v2874_v58 = vld [vmem:[#allocation3 + $0x31] sm:$0xff]  ;;  %2815 = vst.msk [vmem:[#allocation3 + $0x81] sm:$0xff] %vm346_vm0, %v2782_v43  ;;  %v2691_v62 = vsub.f32 %v8641_v2, %v8777_v39 }
 0x3bf   : > { %v9003_v50 = vmul.f32 %v8826_v9, %v2688_v25  ;;  %v2759_v23 = vmul.f32 0.01, %v8971_v32  ;;  %v2787_v13 = vmax.f32 %v8941_v41, %v2755_v52  ;;  %v2875_v48 = vld [vmem:[#allocation3 + $0x39] sm:$0xff]  ;;  %2816 = vst.msk [vmem:[#allocation3 + $0x91] sm:$0xff] %vm346_vm0, %v2783_v12  ;;  %v9009_v28 = vmul.f32 %v8826_v9, %v2689_v22 }
 0x3c0   : > { %v2760_v20 = vmul.f32 0.01, %v8979_v30  ;;  %6544 = vrot.lane.b32.xlu0 %v8996_v8, %s7200_s30  ;;  %v2788_v2 = vmax.f32 %v8948_v7, %v2756_v56  ;;  %v9015_v47 = vpack.i.bf16 %v2875_v48, %v2874_v58  ;;  %2817 = vst.msk [vmem:[#allocation3 + $0x99] sm:$0xff] %vm346_vm0, %v2784_v6  ;;  %v2872_v37 = vld [vmem:[#allocation3 + $0x19] sm:$0xff]  ;;  %v2692_v1 = vsub.f32 %v8663_v54, %v8777_v39 }
 0x3c1   : > { %v2733_v21 = vmul.f32 %v8826_v9, %v2690_v24  ;;  %v2761_v55 = vmul.f32 0.01, %v8987_v17  ;;  %v2789_v18 = vmax.f32 %v8955_v38, %v2757_v27  ;;  %2818 = vst.msk [vmem:[#allocation3 + $0xa9] sm:$0xff] %vm346_vm0, %v2785_v49  ;;  %v2873_v61 = vld [vmem:[#allocation3 + $0x21] sm:$0xff]  ;;  %v2734_v16 = vmul.f32 %v8826_v9, %v2691_v62 }
 0x3c2   : > { %v2762_v46 = vmul.f32 0.01, %v8993_v40  ;;  %v2790_v3 = vmax.f32 %v8963_v5, %v2758_v10  ;;  %6539 = vrot.lane.b32.xlu2 %v9015_v47, %s7200_s30  ;;  %2819 = vst.msk [vmem:[#allocation3 + $0xb1] sm:$0xff] %vm346_vm0, %v2786_v36  ;;  %v9030_v54 = vpack.i.bf16 %v2873_v61, %v2872_v37  ;;  %v2735_v41 = vmul.f32 %v8826_v9, %v2692_v1  ;;  %v2878_v33 = vld [vmem:[#allocation3 + $0x61] sm:$0xff] }
 0x3c3   : > { %v2763_v45 = vmul.f32 0.01, %v9003_v50  ;;  %v2791_v29 = vmax.f32 %v8971_v32, %v2759_v23  ;;  %2820 = vst.msk [vmem:[#allocation3 + $0xc1] sm:$0xff] %vm346_vm0, %v2787_v13  ;;  %v2736_v35 = vmul.f32 %v8826_v9, %v2693_v51  ;;  %v2764_v7 = vmul.f32 0.01, %v9009_v28  ;;  %v2879_v25 = vld [vmem:[#allocation3 + $0x69] sm:$0xff] }
 0x3c4   : > { %v2792_v14 = vmax.f32 %v8979_v30, %v2760_v20  ;;  %2821 = vst.msk [vmem:[#allocation3 + $0xc9] sm:$0xff] %vm346_vm0, %v2788_v2  ;;  %6534 = vrot.lane.b32.xlu1 %v9030_v54, %s7200_s30  ;;  %v2737_v34 = vmul.f32 %v8826_v9, %v2694_v44  ;;  %v2765_v60 = vmul.f32 0.01, %v2733_v21  ;;  %v2793_v38 = vmax.f32 %v8987_v17, %v2761_v55  ;;  %v2880_v53 = vld [vmem:[#allocation3 + $0x79] sm:$0xff] }
 0x3c5   : > { %2822 = vst.msk [vmem:[#allocation3 + $0xd9] sm:$0xff] %vm346_vm0, %v2789_v18  ;;  %v2881_v51 = vld [vmem:[#allocation3 + $0x81] sm:$0xff]  ;;  %v2738_v31 = vmul.f32 %v8826_v9, %v2695_v15  ;;  %v2766_v42 = vmul.f32 0.01, %v2734_v16  ;;  %v2794_v0 = vmax.f32 %v8993_v40, %v2762_v46  ;;  %v2739_v44 = vmul.f32 %v8826_v9, %v2696_v4 }
 0x3c6   : > { %2823 = vst.msk [vmem:[#allocation3 + $0xe1] sm:$0xff] %vm346_vm0, %v2790_v3  ;;  %v2882_v11 = vld [vmem:[#allocation3 + $0x91] sm:$0xff]  ;;  %v2767_v5 = vmul.f32 0.01, %v2735_v41  ;;  %v2795_v57 = vmax.f32 %v9003_v50, %v2763_v45  ;;  %v2768_v15 = vmul.f32 0.01, %v2736_v35  ;;  %v2796_v32 = vmax.f32 %v9009_v28, %v2764_v7 }
 0x3c7   : > { %2824 = vst.msk [vmem:[#allocation3 + $0xf1] sm:$0xff] %vm346_vm0, %v2791_v29  ;;  %v2883_v43 = vld [vmem:[#allocation3 + $0x99] sm:$0xff]  ;;  %v9067_v12 = vpack.i.bf16 %v2881_v51, %v2880_v53  ;;  %v2769_v59 = vmul.f32 0.01, %v2737_v34  ;;  %v2797_v39 = vmax.f32 %v2733_v21, %v2765_v60  ;;  %v2770_v4 = vmul.f32 0.01, %v2738_v31 }
 0x3c8   : > { %2825 = vst.msk [vmem:[#allocation3 + $0xf9] sm:$0xff] %vm346_vm0, %v2792_v14  ;;  %v9065_v52 = vpack.i.bf16 %v2883_v43, %v2882_v11  ;;  %v2798_v9 = vmax.f32 %v2734_v16, %v2766_v42  ;;  %v9075_v22 = vpack.i.bf16 %v2879_v25, %v2878_v33  ;;  %v2771_v30 = vmul.f32 0.01, %v2739_v44  ;;  %v2884_v10 = vld [vmem:[#allocation3 + $0xa9] sm:$0xff]  ;;  %v2907_v7 = vld [vmem:[#allocation3 + $0x3a] sm:$0xff] }
 0x3c9   : > { %2826 = vst.msk [vmem:[#allocation3 + $0x109] sm:$0xff] %vm346_vm0, %v2793_v38  ;;  %v2799_v56 = vmax.f32 %v2735_v41, %v2767_v5  ;;  %v2800_v19 = vmax.f32 %v2736_v35, %v2768_v15  ;;  %v2801_v24 = vmax.f32 %v2737_v34, %v2769_v59  ;;  %v2802_v49 = vmax.f32 %v2738_v31, %v2770_v4  ;;  %v2885_v36 = vld [vmem:[#allocation3 + $0xb1] sm:$0xff]  ;;  %v2904_v14 = vld [vmem:[#allocation3 + $0x1a] sm:$0xff]  ;;  %v2905_v34 = vld [vmem:[#allocation3 + $0x22] sm:$0xff] }
 0x3ca   : > { %2827 = vst.msk [vmem:[#allocation3 + $0x111] sm:$0xff] %vm346_vm0, %v2794_v0  ;;  %6559 = vrot.lane.b32.xlu0 %v9065_v52, %s7200_s30  ;;  %6554 = vrot.lane.b32.xlu2 %v9067_v12, %s7200_s30  ;;  %v2886_v6 = vld [vmem:[#allocation3 + $0xc1] sm:$0xff]  ;;  %v2803_v40 = vmax.f32 %v2739_v44, %v2771_v30  ;;  %v9089_v50 = vpack.i.bf16 %v2885_v36, %v2884_v10  ;;  %v2906_v35 = vld [vmem:[#allocation3 + $0x32] sm:$0xff]  ;;  %v2908_v60 = vld [vmem:[#allocation3 + $0x4a] sm:$0xff] }
 0x3cb   : > { %2828 = vst.msk [vmem:[#allocation3 + $0x121] sm:$0xff] %vm346_vm0, %v2795_v57  ;;  %v2887_v63 = vld [vmem:[#allocation3 + $0xc9] sm:$0xff]  ;;  %v2909_v38 = vld [vmem:[#allocation3 + $0x52] sm:$0xff]  ;;  %v9100_v53 = vpack.i.bf16 %v2907_v7, %v2906_v35  ;;  %v9102_v51 = vpack.i.bf16 %v2905_v34, %v2904_v14  ;;  %v2912_v0 = vld [vmem:[#allocation3 + $0x7a] sm:$0xff] }
 0x3cc   : > { %2829 = vst.msk [vmem:[#allocation3 + $0x129] sm:$0xff] %vm346_vm0, %v2796_v32  ;;  %6549 = vrot.lane.b32.xlu1 %v9075_v22, %s7200_s30  ;;  %v2888_v17 = vld [vmem:[#allocation3 + $0xd9] sm:$0xff]  ;;  %v6568_v62 = vpack.i.bf16 %v2887_v63, %v2886_v6  ;;  %v9108_v31 = vpack.i.bf16 %v2909_v38, %v2908_v60  ;;  %v2910_v42 = vld [vmem:[#allocation3 + $0x62] sm:$0xff]  ;;  %v2911_v44 = vld [vmem:[#allocation3 + $0x6a] sm:$0xff] }
 0x3cd   : > { %2830 = vst.msk [vmem:[#allocation3 + $0x139] sm:$0xff] %vm346_vm0, %v2797_v39  ;;  %v2889_v27 = vld [vmem:[#allocation3 + $0xe1] sm:$0xff]  ;;  %v2914_v5 = vld [vmem:[#allocation3 + $0x92] sm:$0xff]  ;;  %v9114_v33 = vpack.i.bf16 %v2911_v44, %v2910_v42  ;;  %v2916_v15 = vld [vmem:[#allocation3 + $0xaa] sm:$0xff] }
 0x3ce   : > { %2831 = vst.msk [vmem:[#allocation3 + $0x141] sm:$0xff] %vm346_vm0, %v2798_v9  ;;  %v6573_v58 = vpack.i.bf16 %v2889_v27, %v2888_v17  ;;  %v2890_v20 = vld [vmem:[#allocation3 + $0xf1] sm:$0xff]  ;;  %v2913_v11 = vld [vmem:[#allocation3 + $0x82] sm:$0xff]  ;;  %v2915_v57 = vld [vmem:[#allocation3 + $0x9a] sm:$0xff] }
 0x3cf   : > { %2832 = vst.msk [vmem:[#allocation3 + $0x151] sm:$0xff] %vm346_vm0, %v2799_v56  ;;  %v2891_v2 = vld [vmem:[#allocation3 + $0xf9] sm:$0xff]  ;;  %v9112_v43 = vpack.i.bf16 %v2913_v11, %v2912_v0  ;;  %v9120_v25 = vpack.i.bf16 %v2915_v57, %v2914_v5  ;;  %v2918_v32 = vld [vmem:[#allocation3 + $0xc2] sm:$0xff]  ;;  %v2919_v59 = vld [vmem:[#allocation3 + $0xca] sm:$0xff] }
 0x3d0   : > { %2833 = vst.msk [vmem:[#allocation3 + $0x159] sm:$0xff] %vm346_vm0, %v2800_v19  ;;  %v2892_v23 = vld [vmem:[#allocation3 + $0x109] sm:$0xff]  ;;  %v6578_v21 = vpack.i.bf16 %v2891_v2, %v2890_v20  ;;  %v2917_v39 = vld [vmem:[#allocation3 + $0xb2] sm:$0xff]  ;;  %v2920_v4 = vld [vmem:[#allocation3 + $0xda] sm:$0xff]  ;;  %v9124_v30 = vpack.i.bf16 %v2919_v59, %v2918_v32 }
 0x3d1   : > { %2834 = vst.msk [vmem:[#allocation3 + $0x169] sm:$0xff] %vm346_vm0, %v2801_v24  ;;  %v2893_v28 = vld [vmem:[#allocation3 + $0x111] sm:$0xff]  ;;  %v2921_v9 = vld [vmem:[#allocation3 + $0xe2] sm:$0xff]  ;;  %v9126_v56 = vpack.i.bf16 %v2917_v39, %v2916_v15  ;;  %v2923_v27 = vld [vmem:[#allocation3 + $0xfa] sm:$0xff] }
 0x3d2   : > { %2835 = vst.msk [vmem:[#allocation3 + $0x171] sm:$0xff] %vm346_vm0, %v2802_v49  ;;  %6574 = vrot.lane.b32.xlu0 %v6573_v58, %s7200_s30  ;;  %6569 = vrot.lane.b32.xlu2 %v6568_v62, %s7200_s30  ;;  %v2894_v13 = vld [vmem:[#allocation3 + $0x121] sm:$0xff]  ;;  %v6583_v1 = vpack.i.bf16 %v2893_v28, %v2892_v23  ;;  %v6648_v19 = vpack.i.bf16 %v2921_v9, %v2920_v4  ;;  %v2922_v6 = vld [vmem:[#allocation3 + $0xf2] sm:$0xff]  ;;  %v2924_v24 = vld [vmem:[#allocation3 + $0x10a] sm:$0xff] }
 0x3d3   : > { %11019 = vst [vmem:[#allocation4_spill] sm:$0xff] %v9089_v50  ;;  %v2895_v48 = vld [vmem:[#allocation3 + $0x129] sm:$0xff]  ;;  %v2925_v17 = vld [vmem:[#allocation3 + $0x112] sm:$0xff]  ;;  %v6653_v10 = vpack.i.bf16 %v2923_v27, %v2922_v6  ;;  %v9170_v35 = vld [vmem:[#allocation3 + $0x80] sm:$0xff] }
 0x3d4   : > { %2836 = vst.msk [vmem:[#allocation3 + $0x181] sm:$0xff] %vm346_vm0, %v2803_v40  ;;  %6564 = vrot.lane.b32.xlu1 %v9089_v50, %s7200_s30  ;;  %v6588_v37 = vpack.i.bf16 %v2895_v48, %v2894_v13  ;;  %v2896_v46 = vld [vmem:[#allocation3 + $0x139] sm:$0xff]  ;;  %v2926_v63 = vld [vmem:[#allocation3 + $0x122] sm:$0xff]  ;;  %v2927_v49 = vld [vmem:[#allocation3 + $0x12a] sm:$0xff]  ;;  %v6658_v40 = vpack.i.bf16 %v2925_v17, %v2924_v24 }
 0x3d5   : > { %v2897_v3 = vld [vmem:[#allocation3 + $0x141] sm:$0xff]  ;;  %11020 = vst [vmem:[#allocation19_spill] sm:$0xff] %v9124_v30  ;;  %v6663_v36 = vpack.i.bf16 %v2927_v49, %v2926_v63  ;;  %v9174_v14 = vld [vmem:[#allocation3 + $0x90] sm:$0xff]  ;;  %v9176_v34 = vld [vmem:[#allocation3 + $0x98] sm:$0xff] }
 0x3d6   : > { %v2898_v55 = vld [vmem:[#allocation3 + $0x151] sm:$0xff]  ;;  %v6593_v29 = vpack.i.bf16 %v2897_v3, %v2896_v46  ;;  %11021 = vst [vmem:[#allocation26_spill] sm:$0xff] %v9126_v56  ;;  %v2928_v58 = vld [vmem:[#allocation3 + $0x13a] sm:$0xff]  ;;  %v2929_v13 = vld [vmem:[#allocation3 + $0x142] sm:$0xff]  ;;  %v9192_v42 = vpack.i.bf16 %v9176_v34, %v9174_v14 }
 0x3d7   : > { %v2899_v16 = vld [vmem:[#allocation3 + $0x159] sm:$0xff]  ;;  %v6668_v2 = vpack.i.bf16 %v2929_v13, %v2928_v58  ;;  %v9172_v7 = vld [vmem:[#allocation3 + $0x68] sm:$0xff]  ;;  %v9204_v57 = vld [vmem:[#allocation3 + $0xb0] sm:$0xff] }
 0x3d8   : > { %v2900_v18 = vld [vmem:[#allocation3 + $0x169] sm:$0xff]  ;;  %v6598_v45 = vpack.i.bf16 %v2899_v16, %v2898_v55  ;;  %v2930_v62 = vld [vmem:[#allocation3 + $0x152] sm:$0xff]  ;;  %v2931_v23 = vld [vmem:[#allocation3 + $0x15a] sm:$0xff] }
 0x3d9   : > { %v2901_v61 = vld [vmem:[#allocation3 + $0x171] sm:$0xff]  ;;  %v6673_v20 = vpack.i.bf16 %v2931_v23, %v2930_v62  ;;  %v9198_v11 = vld [vmem:[#allocation3 + $0xa8] sm:$0xff]  ;;  %v9200_v44 = vld [vmem:[#allocation3 + $0xc0] sm:$0xff] }
 0x3da   : > { %6589 = vrot.lane.b32.xlu0 %v6588_v37, %s7200_s30  ;;  %6584 = vrot.lane.b32.xlu2 %v6583_v1, %s7200_s30  ;;  %v6603_v41 = vpack.i.bf16 %v2901_v61, %v2900_v18  ;;  %v2932_v48 = vld [vmem:[#allocation3 + $0x16a] sm:$0xff]  ;;  %v2933_v28 = vld [vmem:[#allocation3 + $0x172] sm:$0xff]  ;;  %v9145_v18 = vld [vmem:[#allocation3 + $0x20] sm:$0xff]  ;;  %v9216_v39 = vpack.i.bf16 %v9204_v57, %v9198_v11 }
 0x3db   : > { %v6678_v37 = vpack.i.bf16 %v2933_v28, %v2932_v48  ;;  %v9139_v1 = vld [vmem:[#allocation3 + $0x30] sm:$0xff]  ;;  %v9143_v55 = vld [vmem:[#allocation3 + $0x18] sm:$0xff]  ;;  %v9147_v61 = vld [vmem:[#allocation3 + $0x48] sm:$0xff] }
 0x3dc   : > { %6579 = vrot.lane.b32.xlu1 %v6578_v21, %s7200_s30  ;;  %v9141_v21 = vld [vmem:[#allocation3 + $0x38] sm:$0xff]  ;;  %v9149_v16 = vld [vmem:[#allocation3 + $0x50] sm:$0xff]  ;;  %v6683_v3 = vpack.i.bf16 %v9145_v18, %v9143_v55  ;;  %v9202_v5 = vld [vmem:[#allocation3 + $0xc8] sm:$0xff]  ;;  %11023 = vst [vmem:[#allocation45_spill] sm:$0xff] %v9216_v39 }
 0x3dd   : > { %v9153_v46 = vpack.i.bf16 %v9141_v21, %v9139_v1  ;;  %v9206_v15 = vld [vmem:[#allocation3 + $0xd8] sm:$0xff]  ;;  %v9208_v32 = vld [vmem:[#allocation3 + $0xe0] sm:$0xff]  ;;  %v9212_v59 = vpack.i.bf16 %v9202_v5, %v9200_v44  ;;  %v9230_v6 = vld [vmem:[#allocation3 + $0x108] sm:$0xff] }
 0x3de   : > { %v9224_v9 = vpack.i.bf16 %v9208_v32, %v9206_v15  ;;  %v9232_v24 = vld [vmem:[#allocation3 + $0xf0] sm:$0xff]  ;;  %v9234_v17 = vld [vmem:[#allocation3 + $0xf8] sm:$0xff]  ;;  %v9238_v58 = vld [vmem:[#allocation3 + $0x120] sm:$0xff] }
 0x3df   : > { %11022 = vst [vmem:[#allocation31_spill] sm:$0xff] %v9212_v59  ;;  %v9240_v62 = vld [vmem:[#allocation3 + $0x128] sm:$0xff]  ;;  %v9246_v28 = vpack.i.bf16 %v9234_v17, %v9232_v24  ;;  %v9274_v26 = vld [vmem:[#allocation3 + $0x170] sm:$0xff] }
 0x3e0   : > { %11024 = vst [vmem:[#allocation50_spill] sm:$0xff] %v9224_v9 }
 0x3e1   : > { %11025 = vst [vmem:[#allocation10_spill] sm:$0xff] %v9246_v28 }
 0x3e2   : > { %6604 = vrot.lane.b32.xlu0 %v6603_v41, %s7200_s30  ;;  %6599 = vrot.lane.b32.xlu2 %v6598_v45, %s7200_s30  ;;  %v9162_v41 = vpack.i.bf16 %v9149_v16, %v9147_v61  ;;  %v9166_v45 = vld [vmem:[#allocation3 + $0x60] sm:$0xff] }
 0x3e3   : > { %v9184_v38 = vpack.i.bf16 %v9172_v7, %v9166_v45 }
 0x3e4   : > { %6594 = vrot.lane.b32.xlu1 %v6593_v29, %s7200_s30  ;;  %s7211_s30 = smov 12   ;;  %v9168_v29 = vld [vmem:[#allocation3 + $0x78] sm:$0xff] }
 0x3e5   : > { %v9180_v60 = vpack.i.bf16 %v9170_v35, %v9168_v29 }
 0x3ea   : > { %6614 = vrot.lane.b32.xlu0 %v9100_v53, %s7202_s11  ;;  %6609 = vrot.lane.b32.xlu2 %v9102_v51, %s7202_s11 }
 0x3ec   : > { %6619 = vrot.lane.b32.xlu1 %v9108_v31, %s7202_s11 }
 0x3f2   : > { %6629 = vrot.lane.b32.xlu0 %v9112_v43, %s7202_s11  ;;  %6624 = vrot.lane.b32.xlu2 %v9114_v33, %s7202_s11 }
 0x3f4   : > { %6634 = vrot.lane.b32.xlu1 %v9120_v25, %s7202_s11 }
 0x3fa   : > { %6644 = vrot.lane.b32.xlu0 %v9124_v30, %s7202_s11  ;;  %6639 = vrot.lane.b32.xlu2 %v9126_v56, %s7202_s11  ;;  %v6525_v4 = vpop.permute.xlu0 %6524 }
 0x3fb   : > { %v6527_v63 = vunpack.i.h.bf16 %v6525_v4  ;;  %v6526_v49 = vunpack.i.l.bf16 %v6525_v4 }
 0x3fc   : > { %6649 = vrot.lane.b32.xlu1 %v6648_v19, %s7202_s11 }
 0x400   : > { %v6530_v27 = vpop.permute.xlu1 %6529 }
 0x401   : > { %v6532_v23 = vunpack.i.h.bf16 %v6530_v27  ;;  %v6531_v13 = vunpack.i.l.bf16 %v6530_v27 }
 0x402   : > { %6659 = vrot.lane.b32.xlu0 %v6658_v40, %s7202_s11  ;;  %6654 = vrot.lane.b32.xlu2 %v6653_v10, %s7202_s11  ;;  %v9236_v40 = vld [vmem:[#allocation3 + $0x110] sm:$0xff]  ;;  %v2838_v10 = vld [vmem:[#allocation3] sm:$0xff] }
 0x403   : > { %v6733_v48 = vpack.i.bf16 %v9236_v40, %v9230_v6 }
 0x404   : > { %6664 = vrot.lane.b32.xlu1 %v6663_v36, %s7202_s11  ;;  %v2839_v36 = vld [vmem:[#allocation3 + $0x8] sm:$0xff] }
 0x40a   : > { %6674 = vrot.lane.b32.xlu0 %v6673_v20, %s7202_s11  ;;  %6669 = vrot.lane.b32.xlu2 %v6668_v2, %s7202_s11  ;;  %v4152_v20 = vsel %vm346_vm0, %v2839_v36, %v6527_v63  ;;  %v4151_v2 = vsel %vm346_vm0, %v2838_v10, %v6526_v49  ;;  %v9264_v63 = vld [vmem:[#allocation3 + $0x138] sm:$0xff]  ;;  %v9266_v49 = vld [vmem:[#allocation3 + $0x150] sm:$0xff]  ;;  %v9270_v36 = vld [vmem:[#allocation3 + $0x140] sm:$0xff] }
 0x40b   : > { %v9259_v4 = vsel %vm300_vm2, %v4152_v20, %v6532_v23  ;;  %v9268_v10 = vld [vmem:[#allocation3 + $0x158] sm:$0xff] }
 0x40c   : > { %6679 = vrot.lane.b32.xlu1 %v6678_v37, %s7202_s11  ;;  %v6738_v37 = vpack.i.bf16 %v9240_v62, %v9238_v58  ;;  %11027 = vst [vmem:[#allocation22_spill] sm:$0xff] %v9259_v4  ;;  %v6748_v23 = vpack.i.bf16 %v9268_v10, %v9266_v49  ;;  %v2965_v4 = vld [vmem:[#allocation3 + $0x188] sm:$0xff]  ;;  %s7212_s11 = smov 20  }
 0x412   : > { %6689 = vrot.lane.b32.xlu0 %v9153_v46, %s7211_s30  ;;  %6684 = vrot.lane.b32.xlu2 %v6683_v3, %s7211_s30  ;;  %v9256_v3 = vsel %vm300_vm2, %v4151_v2, %v6531_v13  ;;  %v6743_v13 = vpack.i.bf16 %v9270_v36, %v9264_v63 }
 0x413   : > { %11026 = vst [vmem:[#allocation17_spill] sm:$0xff] %v9256_v3  ;;  %v2964_v3 = vld [vmem:[#allocation3 + $0x180] sm:$0xff] }
 0x414   : > { %6694 = vrot.lane.b32.xlu1 %v9162_v41, %s7211_s30 }
 0x41a   : > { %6704 = vrot.lane.b32.xlu0 %v9180_v60, %s7211_s30  ;;  %6699 = vrot.lane.b32.xlu2 %v9184_v38, %s7211_s30 }
 0x41c   : > { %6709 = vrot.lane.b32.xlu1 %v9192_v42, %s7211_s30  ;;  %v9196_v0 = vpop.permute.xlu2 %6539 }
 0x422   : > { %6719 = vrot.lane.b32.xlu0 %v9212_v59, %s7211_s30  ;;  %6714 = vrot.lane.b32.xlu2 %v9216_v39, %s7211_s30 }
 0x424   : > { %6724 = vrot.lane.b32.xlu1 %v9224_v9, %s7211_s30  ;;  %v9228_v19 = vpop.permute.xlu2 %6554  ;;  %v6758_v9 = vpack.i.bf16 %v2965_v4, %v2964_v3 }
 0x42a   : > { %6734 = vrot.lane.b32.xlu0 %v6733_v48, %s7211_s30  ;;  %6729 = vrot.lane.b32.xlu2 %v9246_v28, %s7211_s30  ;;  %v9272_v48 = vld [vmem:[#allocation3 + $0x168] sm:$0xff] }
 0x42b   : > { %v6753_v20 = vpack.i.bf16 %v9274_v26, %v9272_v48 }
 0x42c   : > { %6739 = vrot.lane.b32.xlu1 %v6738_v37, %s7211_s30  ;;  %v9262_v27 = vpop.permute.xlu2 %6569 }
 0x432   : > { %6749 = vrot.lane.b32.xlu0 %v6748_v23, %s7211_s30  ;;  %6744 = vrot.lane.b32.xlu2 %v6743_v13, %s7211_s30  ;;  %v9284_v2 = vpop.permute.xlu0 %6544 }
 0x434   : > { %6754 = vrot.lane.b32.xlu1 %v6753_v20, %s7211_s30  ;;  %v9287_v37 = vpop.permute.xlu2 %6584 }
 0x436   : > { %v6535_v28 = vpop.permute.xlu1 %6534 }
 0x437   : > { %v6537_v20 = vunpack.i.h.bf16 %v6535_v28  ;;  %v6536_v59 = vunpack.i.l.bf16 %v6535_v28 }
 0x439   : > { %v4153_v56 = vsel %vm346_vm0, %v9143_v55, %v6536_v59  ;;  %v4154_v28 = vsel %vm346_vm0, %v9145_v18, %v6537_v20 }
 0x43a   : > { %6764 = vrot.lane.b32.xlu0 %v9030_v54, %s7203_s12  ;;  %6759 = vrot.lane.b32.xlu2 %v6758_v9, %s7211_s30 }
 0x43c   : > { %6769 = vrot.lane.b32.xlu1 %v9015_v47, %s7203_s12  ;;  %v9294_v23 = vpop.permute.xlu0 %6559  ;;  %v9296_v13 = vpop.permute.xlu2 %6599 }
 0x43e   : > { %v6550_v30 = vpop.permute.xlu1 %6549 }
 0x43f   : > { %v6552_v39 = vunpack.i.h.bf16 %v6550_v30 }
 0x441   : > { %v4160_v20 = vsel %vm346_vm0, %v9172_v7, %v6552_v39 }
 0x442   : > { %6779 = vrot.lane.b32.xlu0 %v9153_v46, %s7204_s13  ;;  %6774 = vrot.lane.b32.xlu2 %v9102_v51, %s7212_s11 }
 0x444   : > { %6784 = vrot.lane.b32.xlu1 %v9015_v47, %s7213_s15  ;;  %v9304_v54 = vpop.permute.xlu0 %6574  ;;  %v6610_v9 = vpop.permute.xlu2 %6609  ;;  %v6551_v47 = vunpack.i.l.bf16 %v6550_v30 }
 0x445   : > { %v6612_v3 = vunpack.i.h.bf16 %v6610_v9  ;;  %v6611_v4 = vunpack.i.l.bf16 %v6610_v9 }
 0x446   : > { %v6565_v46 = vpop.permute.xlu1 %6564  ;;  %v4159_v30 = vsel %vm346_vm0, %v9166_v45, %v6551_v47 }
 0x447   : > { %v9311_v50 = vsel %vm300_vm2, %v4153_v56, %v6611_v4  ;;  %v9314_v51 = vsel %vm300_vm2, %v4154_v28, %v6612_v3  ;;  %v6567_v4 = vunpack.i.h.bf16 %v6565_v46 }
 0x448   : > { %11028 = vst [vmem:[#allocation37_spill] sm:$0xff] %v9314_v51 }
 0x449   : > { %v4166_v47 = vsel %vm346_vm0, %v9204_v57, %v6567_v4  ;;  %v6546_v57 = vunpack.i.l.bf16 %v9284_v2 }
 0x44a   : > { %6794 = vrot.lane.b32.xlu0 %v9100_v53, %s7212_s11  ;;  %6789 = vrot.lane.b32.xlu2 %v9100_v53, %s7205_s14 }
 0x44c   : > { %6799 = vrot.lane.b32.xlu1 %v9162_v41, %s7204_s13  ;;  %v9322_v55 = vpop.permute.xlu0 %6589  ;;  %v6625_v18 = vpop.permute.xlu2 %6624  ;;  %v6566_v41 = vunpack.i.l.bf16 %v6565_v46 }
 0x44d   : > { %v6627_v59 = vunpack.i.h.bf16 %v6625_v18  ;;  %v6626_v56 = vunpack.i.l.bf16 %v6625_v18 }
 0x44e   : > { %v6580_v9 = vpop.permute.xlu1 %6579  ;;  %v4165_v46 = vsel %vm346_vm0, %v9198_v11, %v6566_v41  ;;  %v6547_v11 = vunpack.i.h.bf16 %v9284_v2 }
 0x44f   : > { %v9329_v3 = vsel %vm300_vm2, %v4159_v30, %v6626_v56  ;;  %v9332_v53 = vsel %vm300_vm2, %v4160_v20, %v6627_v59  ;;  %v6541_v20 = vunpack.i.l.bf16 %v9196_v0  ;;  %v6582_v30 = vunpack.i.h.bf16 %v6580_v9 }
 0x450   : > { %v6581_v51 = vunpack.i.l.bf16 %v6580_v9 }
 0x451   : > { %v4155_v9 = vsel %vm346_vm0, %v9139_v1, %v6541_v20  ;;  %v6556_v20 = vunpack.i.l.bf16 %v9228_v19 }
 0x452   : > { %6809 = vrot.lane.b32.xlu0 %v9108_v31, %s7205_s14  ;;  %6804 = vrot.lane.b32.xlu2 %v8996_v8, %s7213_s15  ;;  %v4171_v2 = vsel %vm346_vm0, %v9232_v24, %v6581_v51  ;;  %v4157_v24 = vsel %vm346_vm0, %v9147_v61, %v6546_v57  ;;  %v4158_v51 = vsel %vm346_vm0, %v9149_v16, %v6547_v11  ;;  %v6561_v61 = vunpack.i.l.bf16 %v9294_v23 }
 0x454   : > { %6814 = vrot.lane.b32.xlu1 %v8996_v8, %s7203_s12  ;;  %v9340_v7 = vpop.permute.xlu0 %6604  ;;  %v6640_v45 = vpop.permute.xlu2 %6639  ;;  %v6542_v8 = vunpack.i.h.bf16 %v9196_v0 }
 0x455   : > { %v6642_v39 = vunpack.i.h.bf16 %v6640_v45  ;;  %v6641_v28 = vunpack.i.l.bf16 %v6640_v45 }
 0x456   : > { %v6595_v18 = vpop.permute.xlu1 %6594 }
 0x457   : > { %v9347_v59 = vsel %vm300_vm2, %v4165_v46, %v6641_v28  ;;  %v9350_v56 = vsel %vm300_vm2, %v4166_v47, %v6642_v39 }
 0x45a   : > { %6824 = vrot.lane.b32.xlu0 %v9184_v38, %s7204_s13  ;;  %6819 = vrot.lane.b32.xlu2 %v9108_v31, %s7212_s11  ;;  %v4156_v38 = vsel %vm346_vm0, %v9141_v21, %v6542_v8  ;;  %v4172_v31 = vsel %vm346_vm0, %v9234_v17, %v6582_v30  ;;  %v6557_v17 = vunpack.i.h.bf16 %v9228_v19  ;;  %v6597_v30 = vunpack.i.h.bf16 %v6595_v18 }
 0x45b   : > { %v6562_v19 = vunpack.i.h.bf16 %v9294_v23 }
 0x45c   : > { %6829 = vrot.lane.b32.xlu1 %v9075_v22, %s7213_s15  ;;  %v6615_v4 = vpop.permute.xlu0 %6614  ;;  %v6655_v41 = vpop.permute.xlu2 %6654 }
 0x45d   : > { %v6617_v45 = vunpack.i.h.bf16 %v6615_v4  ;;  %v6616_v39 = vunpack.i.l.bf16 %v6615_v4  ;;  %v6657_v0 = vunpack.i.h.bf16 %v6655_v41  ;;  %v6656_v28 = vunpack.i.l.bf16 %v6655_v41 }
 0x45e   : > { %v6620_v47 = vpop.permute.xlu1 %6619 }
 0x45f   : > { %v9371_v46 = vsel %vm300_vm2, %v4155_v9, %v6616_v39  ;;  %v9374_v4 = vsel %vm300_vm2, %v4156_v38, %v6617_v45  ;;  %v9377_v41 = vsel %vm300_vm2, %v4171_v2, %v6656_v28  ;;  %v9380_v1 = vsel %vm300_vm2, %v4172_v31, %v6657_v0 }
 0x460   : > { %v6622_v21 = vunpack.i.h.bf16 %v6620_v47  ;;  %v6621_v8 = vunpack.i.l.bf16 %v6620_v47  ;;  %v6596_v45 = vunpack.i.l.bf16 %v6595_v18  ;;  %v4162_v38 = vsel %vm346_vm0, %v9170_v35, %v6557_v17 }
 0x461   : > { %v4178_v31 = vsel %vm346_vm0, %v9270_v36, %v6597_v30  ;;  %v4164_v36 = vsel %vm346_vm0, %v9176_v34, %v6562_v19  ;;  %v6572_v17 = vunpack.i.h.bf16 %v9262_v27  ;;  %v6576_v30 = vunpack.i.l.bf16 %v9304_v54 }
 0x462   : > { %v9389_v39 = vsel %vm300_vm2, %v4158_v51, %v6622_v21  ;;  %v9392_v0 = vsel %vm300_vm2, %v4157_v24, %v6621_v8  ;;  %6839 = vrot.lane.b32.xlu0 %v9075_v22, %s7203_s12  ;;  %6834 = vrot.lane.b32.xlu2 %v9114_v33, %s7205_s14  ;;  %v4161_v22 = vsel %vm346_vm0, %v9168_v29, %v6556_v20  ;;  %v6571_v20 = vunpack.i.l.bf16 %v9262_v27 }
 0x463   : > { %v4177_v23 = vsel %vm346_vm0, %v9264_v63, %v6596_v45  ;;  %v4163_v63 = vsel %vm346_vm0, %v9174_v14, %v6561_v61  ;;  %v6577_v27 = vunpack.i.h.bf16 %v9304_v54  ;;  %v4168_v61 = vsel %vm346_vm0, %v9202_v5, %v6572_v17 }
 0x464   : > { %6844 = vrot.lane.b32.xlu1 %v9114_v33, %s7212_s11  ;;  %v6630_v16 = vpop.permute.xlu0 %6629  ;;  %v6670_v18 = vpop.permute.xlu2 %6669  ;;  %v6587_v5 = vunpack.i.h.bf16 %v9287_v37 }
 0x465   : > { %v6632_v11 = vunpack.i.h.bf16 %v6630_v16  ;;  %v6631_v57 = vunpack.i.l.bf16 %v6630_v16  ;;  %v6672_v28 = vunpack.i.h.bf16 %v6670_v18  ;;  %v6671_v9 = vunpack.i.l.bf16 %v6670_v18 }
 0x466   : > { %v6635_v2 = vpop.permute.xlu1 %6634  ;;  %v4167_v16 = vsel %vm346_vm0, %v9200_v44, %v6571_v20  ;;  %v4170_v54 = vsel %vm346_vm0, %v9208_v32, %v6577_v27  ;;  %v6592_v32 = vunpack.i.h.bf16 %v9322_v55  ;;  %v6602_v27 = vunpack.i.h.bf16 %v9296_v13 }
 0x467   : > { %v9411_v33 = vsel %vm300_vm2, %v4161_v22, %v6631_v57  ;;  %v9414_v47 = vsel %vm300_vm2, %v4162_v38, %v6632_v11  ;;  %v9417_v21 = vsel %vm300_vm2, %v4177_v23, %v6671_v9  ;;  %v9420_v35 = vsel %vm300_vm2, %v4178_v31, %v6672_v28 }
 0x468   : > { %v6637_v29 = vunpack.i.h.bf16 %v6635_v2  ;;  %v6636_v8 = vunpack.i.l.bf16 %v6635_v2  ;;  %v4169_v9 = vsel %vm346_vm0, %v9206_v15, %v6576_v30  ;;  %v6586_v38 = vunpack.i.l.bf16 %v9287_v37 }
 0x469   : > { %v6591_v31 = vunpack.i.l.bf16 %v9322_v55  ;;  %v6601_v30 = vunpack.i.l.bf16 %v9296_v13 }
 0x46a   : > { %v9429_v24 = vsel %vm300_vm2, %v4164_v36, %v6637_v29  ;;  %v9432_v51 = vsel %vm300_vm2, %v4163_v63, %v6636_v8  ;;  %6854 = vrot.lane.b32.xlu0 %v9067_v12, %s7213_s15  ;;  %6849 = vrot.lane.b32.xlu2 %v9180_v60, %s7204_s13  ;;  %v4174_v36 = vsel %vm346_vm0, %v9236_v40, %v6587_v5 }
 0x46c   : > { %6859 = vrot.lane.b32.xlu1 %v9112_v43, %s7205_s14  ;;  %v6645_v14 = vpop.permute.xlu0 %6644  ;;  %v9440_v34 = vpop.permute.xlu2 %6684 }
 0x46d   : > { %v6647_v45 = vunpack.i.h.bf16 %v6645_v14  ;;  %v6646_v19 = vunpack.i.l.bf16 %v6645_v14  ;;  %v4175_v14 = vsel %vm346_vm0, %v9238_v58, %v6591_v31 }
 0x46e   : > { %v6650_v18 = vpop.permute.xlu1 %6649 }
 0x46f   : > { %v9449_v60 = vsel %vm300_vm2, %v4167_v16, %v6646_v19  ;;  %v9452_v11 = vsel %vm300_vm2, %v4168_v61, %v6647_v45  ;;  %v6652_v57 = vunpack.i.h.bf16 %v6650_v18  ;;  %v6651_v28 = vunpack.i.l.bf16 %v6650_v18 }
 0x471   : > { %v9461_v44 = vsel %vm300_vm2, %v4170_v54, %v6652_v57  ;;  %v4201_v22 = vsel %vm300_vm2, %v4169_v9, %v6651_v28  ;;  %v4180_v57 = vsel %vm346_vm0, %v9268_v10, %v6602_v27  ;;  %v4179_v28 = vsel %vm346_vm0, %v9266_v49, %v6601_v30  ;;  %v3075_v27 = vld [vmem:[#allocation3 + $0xc1] sm:$0xff]  ;;  %v3076_v30 = vld [vmem:[#allocation3 + $0xc9] sm:$0xff] }
 0x472   : > { %6869 = vrot.lane.b32.xlu0 %v9112_v43, %s7212_s11  ;;  %6864 = vrot.lane.b32.xlu2 %v9067_v12, %s7203_s12  ;;  %v4173_v43 = vsel %vm346_vm0, %v9230_v6, %v6586_v38  ;;  %v4176_v6 = vsel %vm346_vm0, %v9240_v62, %v6592_v32  ;;  %v6606_v62 = vunpack.i.l.bf16 %v9340_v7 }
 0x474   : > { %6874 = vrot.lane.b32.xlu1 %v9192_v42, %s7204_s13  ;;  %v6660_v15 = vpop.permute.xlu0 %6659  ;;  %v6700_v37 = vpop.permute.xlu2 %6699  ;;  %v4181_v32 = vsel %vm346_vm0, %v9272_v48, %v6606_v62 }
 0x475   : > { %v6662_v23 = vunpack.i.h.bf16 %v6660_v15  ;;  %v6661_v2 = vunpack.i.l.bf16 %v6660_v15  ;;  %v6702_v29 = vunpack.i.h.bf16 %v6700_v37  ;;  %v6701_v8 = vunpack.i.l.bf16 %v6700_v37  ;;  %v11029_v37 = vld [vmem:[#allocation45_spill] sm:$0xff] }
 0x476   : > { %v6665_v12 = vpop.permute.xlu1 %6664 }
 0x477   : > { %v9477_v63 = vsel %vm300_vm2, %v4173_v43, %v6661_v2  ;;  %v9480_v55 = vsel %vm300_vm2, %v4174_v36, %v6662_v23  ;;  %v9484_v42 = vsel %vm4215_vm8, %v9392_v0, %v6701_v8  ;;  %v9488_v17 = vsel %vm4215_vm8, %v9389_v39, %v6702_v29 }
 0x478   : > { %v6667_v40 = vunpack.i.h.bf16 %v6665_v12  ;;  %v6666_v20 = vunpack.i.l.bf16 %v6665_v12  ;;  %v6607_v39 = vunpack.i.h.bf16 %v9340_v7 }
 0x47a   : > { %v4208_v45 = vsel %vm300_vm2, %v4176_v6, %v6667_v40  ;;  %v4207_v0 = vsel %vm300_vm2, %v4175_v14, %v6666_v20  ;;  %6884 = vrot.lane.b32.xlu0 %v9120_v25, %s7205_s14  ;;  %6879 = vrot.lane.b32.xlu2 %v9065_v52, %s7213_s15  ;;  %v4182_v49 = vsel %vm346_vm0, %v9274_v26, %v6607_v39 }
 0x47c   : > { %6889 = vrot.lane.b32.xlu1 %v9065_v52, %s7203_s12  ;;  %v6675_v58 = vpop.permute.xlu0 %6674  ;;  %v6715_v19 = vpop.permute.xlu2 %6714 }
 0x47d   : > { %v6677_v13 = vunpack.i.h.bf16 %v6675_v58  ;;  %v6676_v61 = vunpack.i.l.bf16 %v6675_v58  ;;  %v6717_v16 = vunpack.i.h.bf16 %v6715_v19  ;;  %v6716_v18 = vunpack.i.l.bf16 %v6715_v19 }
 0x47e   : > { %v6680_v54 = vpop.permute.xlu1 %6679 }
 0x47f   : > { %v9511_v9 = vsel %vm300_vm2, %v4179_v28, %v6676_v61  ;;  %v9514_v7 = vsel %vm300_vm2, %v4180_v57, %v6677_v13  ;;  %v9518_v52 = vsel %vm4215_vm8, %v9432_v51, %v6716_v18  ;;  %v9522_v5 = vsel %vm4215_vm8, %v9429_v24, %v6717_v16  ;;  %v11030_v24 = vld [vmem:[#allocation4_spill] sm:$0xff]  ;;  %v4430_v18 = vld [vmem:[%s10809_s3 + $0x10] sm:$0x3]  ;;  %v11033_v57 = vld [vmem:[#allocation19_spill] sm:$0xff] }
 0x480   : > { %v6682_v38 = vunpack.i.h.bf16 %v6680_v54  ;;  %v6681_v10 = vunpack.i.l.bf16 %v6680_v54  ;;  %v6928_v16 = vpack.i.bf16 %v3076_v30, %v3075_v27 }
 0x482   : > { %v4214_v31 = vsel %vm300_vm2, %v4182_v49, %v6682_v38  ;;  %v4213_v15 = vsel %vm300_vm2, %v4181_v32, %v6681_v10  ;;  %6899 = vrot.lane.b32.xlu0 %v11029_v37, %s7204_s13  ;;  %6894 = vrot.lane.b32.xlu2 %v9120_v25, %s7212_s11  ;;  %vm4495_vm2 = vcmask 1041408  }
 0x484   : > { %6904 = vrot.lane.b32.xlu1 %v11030_v24, %s7213_s15  ;;  %v9536_v51 = vpop.permute.xlu0 %6689  ;;  %v6730_v23 = vpop.permute.xlu2 %6729 }
 0x485   : > { %v6732_v26 = vunpack.i.h.bf16 %v6730_v23  ;;  %v6731_v2 = vunpack.i.l.bf16 %v6730_v23 }
 0x486   : > { %v6695_v29 = vpop.permute.xlu1 %6694 }
 0x487   : > { %v9539_v48 = vsel %vm4215_vm8, %v4201_v22, %v6731_v2  ;;  %v9543_v8 = vsel %vm4215_vm8, %v9461_v44, %v6732_v26  ;;  %v6697_v36 = vunpack.i.h.bf16 %v6695_v29  ;;  %v6696_v43 = vunpack.i.l.bf16 %v6695_v29  ;;  %v11031_v22 = vld [vmem:[#allocation26_spill] sm:$0xff] }
 0x489   : > { %v9547_v25 = vsel %vm4215_vm8, %v9374_v4, %v6697_v36  ;;  %v9551_v12 = vsel %vm4215_vm8, %v9371_v46, %v6696_v43  ;;  %v5780_v43 = vld [vmem:[%s10809_s3 + $0x8] sm:$0xff] }
 0x48a   : > { %6914 = vrot.lane.b32.xlu0 %v11030_v24, %s7203_s12  ;;  %6909 = vrot.lane.b32.xlu2 %v11031_v22, %s7205_s14 }
 0x48c   : > { %6919 = vrot.lane.b32.xlu1 %v11031_v22, %s7212_s11  ;;  %v6705_v44 = vpop.permute.xlu0 %6704  ;;  %v6745_v40 = vpop.permute.xlu2 %6744 }
 0x48d   : > { %v6707_v20 = vunpack.i.h.bf16 %v6705_v44  ;;  %v6706_v6 = vunpack.i.l.bf16 %v6705_v44  ;;  %v6747_v14 = vunpack.i.h.bf16 %v6745_v40  ;;  %v6746_v4 = vunpack.i.l.bf16 %v6745_v40  ;;  %v3109_v44 = vld [vmem:[#allocation3 + $0xda] sm:$0xff] }
 0x48e   : > { %v6710_v39 = vpop.permute.xlu1 %6709 }
 0x48f   : > { %v9561_v46 = vsel %vm4215_vm8, %v9329_v3, %v6706_v6  ;;  %v9565_v62 = vsel %vm4215_vm8, %v9332_v53, %v6707_v20  ;;  %v9568_v58 = vsel %vm4215_vm8, %v4207_v0, %v6746_v4  ;;  %v9571_v19 = vsel %vm4215_vm8, %v4208_v45, %v6747_v14  ;;  %v11032_v45 = vld [vmem:[#allocation31_spill] sm:$0xff]  ;;  %v3077_v6 = vld [vmem:[#allocation3 + $0xd9] sm:$0xff] }
 0x490   : > { %v6712_v13 = vunpack.i.h.bf16 %v6710_v39  ;;  %v6711_v61 = vunpack.i.l.bf16 %v6710_v39  ;;  %v4440_v0 = vunpack.c.l.b16 %v4430_v18  ;;  %v3110_v20 = vld [vmem:[#allocation3 + $0xe2] sm:$0xff] }
 0x491   : > { %v3078_v14 = vld [vmem:[#allocation3 + $0xe1] sm:$0xff] }
 0x492   : > { %v9578_v3 = vsel %vm4215_vm8, %v9414_v47, %v6712_v13  ;;  %v9582_v53 = vsel %vm4215_vm8, %v9411_v33, %v6711_v61  ;;  %6929 = vrot.lane.b32.xlu0 %v6928_v16, %s7213_s15  ;;  %6924 = vrot.lane.b32.xlu2 %v11032_v45, %s7204_s13  ;;  %v4443_v38 = vpack.c.b16 %v4440_v0, %v4440_v0 }
 0x493   : > { %v6958_v61 = vpack.i.bf16 %v3110_v20, %v3109_v44  ;;  %v11036_v44 = vld [vmem:[#allocation22_spill] sm:$0xff] }
 0x494   : > { %6934 = vrot.lane.b32.xlu1 %v11033_v57, %s7205_s14  ;;  %v6720_v28 = vpop.permute.xlu0 %6719  ;;  %v6760_v54 = vpop.permute.xlu2 %6759  ;;  %v4497_v33 = vsel %vm4495_vm2, %v4443_v38, 0 }
 0x495   : > { %v6722_v10 = vunpack.i.h.bf16 %v6720_v28  ;;  %v6721_v47 = vunpack.i.l.bf16 %v6720_v28  ;;  %v6762_v49 = vunpack.i.h.bf16 %v6760_v54  ;;  %v6761_v32 = vunpack.i.l.bf16 %v6760_v54  ;;  %4504 = vmatpush.bf16.msra.mxu1 %v4497_v33 }
 0x496   : > { %v6725_v37 = vpop.permute.xlu1 %6724 }
 0x497   : > { %v9592_v24 = vsel %vm4215_vm8, %v9347_v59, %v6721_v47  ;;  %v9596_v23 = vsel %vm4215_vm8, %v9350_v56, %v6722_v10  ;;  %v9599_v26 = vsel %vm4215_vm8, %v4213_v15, %v6761_v32  ;;  %v9602_v2 = vsel %vm4215_vm8, %v4214_v31, %v6762_v49  ;;  %v5779_v31 = vld [vmem:[%s10809_s3] sm:$0xff]  ;;  %v11034_v15 = vld [vmem:[#allocation50_spill] sm:$0xff] }
 0x498   : > { %v6727_v29 = vunpack.i.h.bf16 %v6725_v37  ;;  %v6726_v36 = vunpack.i.l.bf16 %v6725_v37  ;;  %v3079_v10 = vld [vmem:[#allocation3 + $0xf1] sm:$0xff]  ;;  %v3080_v47 = vld [vmem:[#allocation3 + $0xf9] sm:$0xff] }
 0x499   : > { %4505 = vmatpush.bf16.msra.mxu1 %v5780_v43  ;;  %v11035_v37 = vld [vmem:[#allocation10_spill] sm:$0xff]  ;;  %v6686_v43 = vunpack.i.l.bf16 %v9440_v34 }
 0x49a   : > { %v9609_v59 = vsel %vm4215_vm8, %v9452_v11, %v6727_v29  ;;  %v9613_v56 = vsel %vm4215_vm8, %v9449_v60, %v6726_v36  ;;  %6944 = vrot.lane.b32.xlu0 %v11033_v57, %s7212_s11  ;;  %6939 = vrot.lane.b32.xlu2 %v6928_v16, %s7203_s12  ;;  %v6953_v16 = vpack.i.bf16 %v3078_v14, %v3077_v6  ;;  %v3111_v29 = vld [vmem:[#allocation3 + $0xf2] sm:$0xff]  ;;  %v3112_v36 = vld [vmem:[#allocation3 + $0xfa] sm:$0xff]  ;;  %v3081_v6 = vld [vmem:[#allocation3 + $0x109] sm:$0xff] }
 0x49b   : > { %v3082_v14 = vld [vmem:[#allocation3 + $0x111] sm:$0xff] }
 0x49c   : > { %6949 = vrot.lane.b32.xlu1 %v11034_v15, %s7204_s13  ;;  %v6735_v22 = vpop.permute.xlu0 %6734  ;;  %v9623_v11 = vpop.permute.xlu2 %6774 }
 0x49d   : > { %v6737_v40 = vunpack.i.h.bf16 %v6735_v22  ;;  %v6736_v60 = vunpack.i.l.bf16 %v6735_v22  ;;  %4506 = vmatpush.bf16.msra.mxu1 %v5779_v31  ;;  %v6983_v22 = vpack.i.bf16 %v3112_v36, %v3111_v29 }
 0x49e   : > { %v6740_v4 = vpop.permute.xlu1 %6739 }
 0x49f   : > { %v9627_v27 = vsel %vm4215_vm8, %v9377_v41, %v6736_v60  ;;  %v9631_v30 = vsel %vm4215_vm8, %v9380_v1, %v6737_v40  ;;  %v6742_v39 = vunpack.i.h.bf16 %v6740_v4  ;;  %v6741_v13 = vunpack.i.l.bf16 %v6740_v4  ;;  %v11037_v60 = vld [vmem:[#allocation17_spill] sm:$0xff] }
 0x4a0   : > { %v4216_v20 = vsel %vm4215_vm8, %v11037_v60, %v6686_v43  ;;  %v6692_v43 = vunpack.i.h.bf16 %v9536_v51 }
 0x4a1   : > { %v9635_v18 = vsel %vm4215_vm8, %v9480_v55, %v6742_v39  ;;  %v9639_v45 = vsel %vm4215_vm8, %v9477_v63, %v6741_v13  ;;  %v3049_v39 = vld [vmem:[#allocation3 + $0x108] sm:$0xff]  ;;  %v3050_v13 = vld [vmem:[#allocation3 + $0x110] sm:$0xff] }
 0x4a2   : > { %6959 = vrot.lane.b32.xlu0 %v6958_v61, %s7205_s14  ;;  %6954 = vrot.lane.b32.xlu2 %v6953_v16, %s7213_s15 }
 0x4a4   : > { %6964 = vrot.lane.b32.xlu1 %v6953_v16, %s7203_s12  ;;  %v6750_v41 = vpop.permute.xlu0 %6749  ;;  %v9644_v1 = vpop.permute.xlu2 %6789  ;;  %v6776_v16 = vunpack.i.l.bf16 %v9623_v11 }
 0x4a5   : > { %v6752_v0 = vunpack.i.h.bf16 %v6750_v41  ;;  %v6751_v57 = vunpack.i.l.bf16 %v6750_v41 }
 0x4a6   : > { %v6755_v28 = vpop.permute.xlu1 %6754 }
 0x4a7   : > { %v9648_v55 = vsel %vm4215_vm8, %v9417_v21, %v6751_v57  ;;  %v9652_v63 = vsel %vm4215_vm8, %v9420_v35, %v6752_v0  ;;  %v6757_v54 = vunpack.i.h.bf16 %v6755_v28  ;;  %v6756_v38 = vunpack.i.l.bf16 %v6755_v28 }
 0x4a8   : > { %v6978_v21 = vpack.i.bf16 %v3080_v47, %v3079_v10  ;;  %v3114_v10 = vld [vmem:[#allocation3 + $0x112] sm:$0xff] }
 0x4a9   : > { %v9656_v49 = vsel %vm4215_vm8, %v9514_v7, %v6757_v54  ;;  %v9660_v32 = vsel %vm4215_vm8, %v9511_v9, %v6756_v38  ;;  %v6687_v7 = vunpack.i.h.bf16 %v9440_v34  ;;  %v7003_v54 = vpack.i.bf16 %v3082_v14, %v3081_v6  ;;  %v3113_v38 = vld [vmem:[#allocation3 + $0x10a] sm:$0xff] }
 0x4aa   : > { %6974 = vrot.lane.b32.xlu0 %v11035_v37, %s7204_s13  ;;  %6969 = vrot.lane.b32.xlu2 %v6958_v61, %s7212_s11  ;;  %v6777_v61 = vunpack.i.h.bf16 %v9623_v11  ;;  %v4902_v6 = vld [vmem:[%s10810_s4] sm:$0x3] }
 0x4ab   : > { %v4217_v40 = vsel %vm4215_vm8, %v11036_v44, %v6687_v7  ;;  %v6691_v44 = vunpack.i.l.bf16 %v9536_v51 }
 0x4ac   : > { %6979 = vrot.lane.b32.xlu1 %v6978_v21, %s7213_s15  ;;  %v6765_v35 = vpop.permute.xlu0 %6764  ;;  %v9666_v33 = vpop.permute.xlu2 %6804 }
 0x4ad   : > { %v6767_v9 = vunpack.i.h.bf16 %v6765_v35  ;;  %v6766_v15 = vunpack.i.l.bf16 %v6765_v35  ;;  %v6998_v35 = vpack.i.bf16 %v3050_v13, %v3049_v39 }
 0x4ae   : > { %v9670_v31 = vpop.permute.xlu1 %6769 }
 0x4af   : > { %v4248_v4 = vsel %vm2059_vm6, %v4216_v20, %v6766_v15  ;;  %v4249_v34 = vsel %vm2059_vm6, %v4217_v40, %v6767_v9  ;;  %v6792_v9 = vunpack.i.h.bf16 %v9644_v1  ;;  %v6791_v15 = vunpack.i.l.bf16 %v9644_v1  ;;  %v4903_v20 = vld [vmem:[%s10811_s5] sm:$0x3] }
 0x4b0   : > { %v4281_v47 = vsel %vm4280_vm10, %v4248_v4, %v6776_v16  ;;  %v4282_v37 = vsel %vm4280_vm10, %v4249_v34, %v6777_v61  ;;  %v5033_v14 = vsel %vm4495_vm2, %v4903_v20, 0  ;;  %v5253_v4 = vsel %vm4495_vm2, %v4902_v6, 0 }
 0x4b1   : > { %v6772_v34 = vunpack.i.h.bf16 %v9670_v31  ;;  %v6771_v39 = vunpack.i.l.bf16 %v9670_v31  ;;  %5042 = vmatpush.bf16.msra.mxu2 %v5033_v14  ;;  %5262 = vmatpush.bf16.msra.mxu3 %v5253_v4  ;;  %v3083_v4 = vld [vmem:[#allocation3 + $0x121] sm:$0xff] }
 0x4b2   : > { %6989 = vrot.lane.b32.xlu0 %v6978_v21, %s7203_s12  ;;  %6984 = vrot.lane.b32.xlu2 %v6983_v22, %s7205_s14 }
 0x4b4   : > { %6994 = vrot.lane.b32.xlu1 %v6983_v22, %s7212_s11  ;;  %v6780_v41 = vpop.permute.xlu0 %6779  ;;  %v9683_v0 = vpop.permute.xlu2 %6819  ;;  %v7008_v22 = vpack.i.bf16 %v3114_v10, %v3113_v38  ;;  %v4218_v10 = vsel %vm4215_vm8, %v9311_v50, %v6691_v44 }
 0x4b5   : > { %v6782_v57 = vunpack.i.h.bf16 %v6780_v41  ;;  %v6781_v28 = vunpack.i.l.bf16 %v6780_v41  ;;  %v5759_v41 = vld [vmem:[%s7270_s29] sm:$0xff] }
 0x4b6   : > { %v6785_v21 = vpop.permute.xlu1 %6784  ;;  %5642 = vmatmul.msk.bf16.vlgmr.msra.gmra.mxu2 %vm346_vm0, %v5759_v41 }
 0x4b7   : > { %v4313_v29 = vsel %vm2092_vm7, %v4281_v47, %v6781_v28  ;;  %v4314_v11 = vsel %vm2092_vm7, %v4282_v37, %v6782_v57  ;;  %v6787_v36 = vunpack.i.h.bf16 %v6785_v21  ;;  %v6786_v7 = vunpack.i.l.bf16 %v6785_v21  ;;  %v5743_v57 = vld [vmem:[%s7307_s10] sm:$0xff]  ;;  %v11038_v47 = vld [vmem:[#allocation37_spill] sm:$0xff] }
 0x4b8   : > { %v4219_v31 = vsel %vm4215_vm8, %v11038_v47, %v6692_v43  ;;  %5722 = vmatmul.msk.bf16.vlgmr.msra.gmra.mxu3 %vm346_vm0, %v5743_v57  ;;  %v4250_v21 = vsel %vm2059_vm6, %v4218_v10, %v6771_v39 }
 0x4b9   : > { %v4347_v40 = vsel %vm4345_vm11, %v4314_v11, %v6787_v36  ;;  %v4346_v60 = vsel %vm4345_vm11, %v4313_v29, %v6786_v7  ;;  %v3051_v36 = vld [vmem:[#allocation3 + $0x120] sm:$0xff]  ;;  %v3052_v7 = vld [vmem:[#allocation3 + $0x128] sm:$0xff] }
 0x4ba   : > { %7004 = vrot.lane.b32.xlu0 %v7003_v54, %s7213_s15  ;;  %6999 = vrot.lane.b32.xlu2 %v6998_v35, %s7204_s13  ;;  %v4378_v51 = vsel %vm2125_vm9, %v4346_v60, %v6791_v15  ;;  %v4379_v1 = vsel %vm2125_vm9, %v4347_v40, %v6792_v9  ;;  %v4251_v35 = vsel %vm2059_vm6, %v4219_v31, %v6772_v34  ;;  %v6807_v40 = vunpack.i.h.bf16 %v9666_v33 }
 0x4bb   : > { %v4410_v13 = vpack.c.bf16 %v4379_v1, %v4378_v51  ;;  %v7023_v43 = vpack.i.bf16 %v3052_v7, %v3051_v36  ;;  %v6806_v60 = vunpack.i.l.bf16 %v9666_v33  ;;  %v3115_v51 = vld [vmem:[#allocation3 + $0x122] sm:$0xff]  ;;  %v5744_v36 = vld [vmem:[%s7307_s10 + $0x8] sm:$0xff] }
 0x4bc   : > { %7009 = vrot.lane.b32.xlu1 %v7008_v22, %s7205_s14  ;;  %v6795_v61 = vpop.permute.xlu0 %6794  ;;  %v9710_v16 = vpop.permute.xlu2 %6834 }
 0x4bd   : > { %v6797_v28 = vunpack.i.h.bf16 %v6795_v61  ;;  %v6796_v38 = vunpack.i.l.bf16 %v6795_v61  ;;  %5562 = vmatmul.msk.bf16.vlgmr.msra.gmra.mxu1 %vm4446_vm12, %v4410_v13 }
 0x4be   : > { %v6800_v37 = vpop.permute.xlu1 %6799 }
 0x4bf   : > { %v6802_v29 = vunpack.i.h.bf16 %v6800_v37  ;;  %v6801_v11 = vunpack.i.l.bf16 %v6800_v37  ;;  %v4283_v9 = vsel %vm4280_vm10, %v4250_v21, %v6796_v38  ;;  %v4284_v50 = vsel %vm4280_vm10, %v4251_v35, %v6797_v28 }
 0x4c0   : > { %v6822_v37 = vunpack.i.h.bf16 %v9683_v0  ;;  %v6821_v21 = vunpack.i.l.bf16 %v9683_v0 }
 0x4c1   : > { %v4315_v15 = vsel %vm2092_vm7, %v4283_v9, %v6801_v11  ;;  %v4316_v44 = vsel %vm2092_vm7, %v4284_v50, %v6802_v29  ;;  %v5760_v11 = vld [vmem:[%s7270_s29 + $0x8] sm:$0xff] }
 0x4c2   : > { %7019 = vrot.lane.b32.xlu0 %v7008_v22, %s7212_s11  ;;  %7014 = vrot.lane.b32.xlu2 %v7003_v54, %s7203_s12  ;;  %v3116_v22 = vld [vmem:[#allocation3 + $0x12a] sm:$0xff]  ;;  %v4348_v39 = vsel %vm4345_vm11, %v4315_v15, %v6806_v60  ;;  %v4349_v13 = vsel %vm4345_vm11, %v4316_v44, %v6807_v40  ;;  %v3053_v50 = vld [vmem:[#allocation3 + $0x138] sm:$0xff]  ;;  %v3086_v60 = vld [vmem:[#allocation3 + $0x141] sm:$0xff] }
 0x4c3   : > { %v3084_v54 = vld [vmem:[#allocation3 + $0x129] sm:$0xff]  ;;  %v7033_v28 = vpack.i.bf16 %v3116_v22, %v3115_v51  ;;  %v3085_v40 = vld [vmem:[#allocation3 + $0x139] sm:$0xff]  ;;  %v6836_v22 = vunpack.i.l.bf16 %v9710_v16 }
 0x4c4   : > { %7024 = vrot.lane.b32.xlu1 %v7023_v43, %s7204_s13  ;;  %v6810_v20 = vpop.permute.xlu0 %6809  ;;  %v9732_v6 = vpop.permute.xlu2 %6849  ;;  %v7028_v38 = vpack.i.bf16 %v3084_v54, %v3083_v4 }
 0x4c5   : > { %v6812_v1 = vunpack.i.h.bf16 %v6810_v20  ;;  %v6811_v14 = vunpack.i.l.bf16 %v6810_v20 }
 0x4c6   : > { %v6815_v34 = vpop.permute.xlu1 %6814  ;;  %5643 = vmatmul.msk.bf16.gmra.mxu2 %vm346_vm0, %v5760_v11 }
 0x4c7   : > { %v6817_v61 = vunpack.i.h.bf16 %v6815_v34  ;;  %v6816_v41 = vunpack.i.l.bf16 %v6815_v34  ;;  %v4380_v33 = vsel %vm2125_vm9, %v4348_v39, %v6811_v14  ;;  %v4381_v57 = vsel %vm2125_vm9, %v4349_v13, %v6812_v1 }
 0x4c8   : > { %v4411_v10 = vpack.c.bf16 %v4381_v57, %v4380_v33  ;;  %5723 = vmatmul.msk.bf16.gmra.mxu3 %vm346_vm0, %v5744_v36  ;;  %v6837_v14 = vunpack.i.h.bf16 %v9710_v16  ;;  %v7053_v34 = vpack.i.bf16 %v3086_v60, %v3085_v40  ;;  %v3056_v40 = vld [vmem:[#allocation3 + $0x158] sm:$0xff] }
 0x4c9   : > { %v4252_v47 = vsel %vm2059_vm6, %v9551_v12, %v6816_v41  ;;  %v4253_v31 = vsel %vm2059_vm6, %v9547_v25, %v6817_v61  ;;  %v3054_v12 = vld [vmem:[#allocation3 + $0x140] sm:$0xff] }
 0x4ca   : > { %7034 = vrot.lane.b32.xlu0 %v7033_v28, %s7205_s14  ;;  %7029 = vrot.lane.b32.xlu2 %v7028_v38, %s7213_s15  ;;  %v4285_v43 = vsel %vm4280_vm10, %v4252_v47, %v6821_v21  ;;  %v4286_v25 = vsel %vm4280_vm10, %v4253_v31, %v6822_v37  ;;  %v7048_v1 = vpack.i.bf16 %v3054_v12, %v3053_v50  ;;  %v3087_v12 = vld [vmem:[#allocation3 + $0x151] sm:$0xff] }
 0x4cc   : > { %7039 = vrot.lane.b32.xlu1 %v7028_v38, %s7203_s12  ;;  %v6825_v35 = vpop.permute.xlu0 %6824  ;;  %v9747_v29 = vpop.permute.xlu2 %6864  ;;  %v3117_v38 = vld [vmem:[#allocation3 + $0x13a] sm:$0xff] }
 0x4cd   : > { %v6827_v7 = vunpack.i.h.bf16 %v6825_v35  ;;  %v6826_v9 = vunpack.i.l.bf16 %v6825_v35  ;;  %5563 = vmatmul.msk.bf16.gmra.mxu1 %vm4446_vm12, %v4411_v10  ;;  %v3118_v10 = vld [vmem:[#allocation3 + $0x142] sm:$0xff] }
 0x4ce   : > { %v6830_v15 = vpop.permute.xlu1 %6829  ;;  %v7058_v35 = vpack.i.bf16 %v3118_v10, %v3117_v38  ;;  %v6866_v38 = vunpack.i.l.bf16 %v9747_v29 }
 0x4cf   : > { %v4317_v0 = vsel %vm2092_vm7, %v4285_v43, %v6826_v9  ;;  %v4318_v44 = vsel %vm2092_vm7, %v4286_v25, %v6827_v7  ;;  %v6832_v20 = vunpack.i.h.bf16 %v6830_v15  ;;  %v6831_v51 = vunpack.i.l.bf16 %v6830_v15  ;;  %v5745_v43 = vld [vmem:[%s7307_s10 + $0x10] sm:$0xff] }
 0x4d0   : > { %v6852_v7 = vunpack.i.h.bf16 %v9732_v6  ;;  %v6851_v9 = vunpack.i.l.bf16 %v9732_v6 }
 0x4d1   : > { %v4350_v4 = vsel %vm4345_vm11, %v4317_v0, %v6831_v51  ;;  %v4351_v54 = vsel %vm4345_vm11, %v4318_v44, %v6832_v20  ;;  %v3088_v0 = vld [vmem:[#allocation3 + $0x159] sm:$0xff]  ;;  %v3055_v44 = vld [vmem:[#allocation3 + $0x150] sm:$0xff] }
 0x4d2   : > { %7049 = vrot.lane.b32.xlu0 %v7048_v1, %s7204_s13  ;;  %7044 = vrot.lane.b32.xlu2 %v7033_v28, %s7212_s11  ;;  %v4382_v39 = vsel %vm2125_vm9, %v4350_v4, %v6836_v22  ;;  %v4383_v13 = vsel %vm2125_vm9, %v4351_v54, %v6837_v14  ;;  %v3119_v4 = vld [vmem:[#allocation3 + $0x152] sm:$0xff]  ;;  %v3120_v54 = vld [vmem:[#allocation3 + $0x15a] sm:$0xff] }
 0x4d3   : > { %v4412_v33 = vpack.c.bf16 %v4383_v13, %v4382_v39  ;;  %v7073_v39 = vpack.i.bf16 %v3056_v40, %v3055_v44  ;;  %v3121_v40 = vld [vmem:[#allocation3 + $0x16a] sm:$0xff] }
 0x4d4   : > { %7054 = vrot.lane.b32.xlu1 %v7053_v34, %s7213_s15  ;;  %v6840_v61 = vpop.permute.xlu0 %6839  ;;  %v9767_v41 = vpop.permute.xlu2 %6879 }
 0x4d5   : > { %v6842_v16 = vunpack.i.h.bf16 %v6840_v61  ;;  %v6841_v57 = vunpack.i.l.bf16 %v6840_v61 }
 0x4d6   : > { %v6845_v47 = vpop.permute.xlu1 %6844 }
 0x4d7   : > { %v6847_v31 = vunpack.i.h.bf16 %v6845_v47  ;;  %v6846_v28 = vunpack.i.l.bf16 %v6845_v47  ;;  %v4254_v37 = vsel %vm2059_vm6, %v9484_v42, %v6841_v57  ;;  %v4255_v21 = vsel %vm2059_vm6, %v9488_v17, %v6842_v16  ;;  %v5761_v17 = vld [vmem:[%s7270_s29 + $0x10] sm:$0xff] }
 0x4d8   : > { %5644 = vmatmul.msk.bf16.gmra.mxu2 %vm346_vm0, %v5761_v17  ;;  %5724 = vmatmul.msk.bf16.gmra.mxu3 %vm346_vm0, %v5745_v43  ;;  %v6867_v57 = vunpack.i.h.bf16 %v9747_v29  ;;  %v3058_v29 = vld [vmem:[#allocation3 + $0x170] sm:$0xff]  ;;  %v5762_v17 = vld [vmem:[%s7270_s29 + $0x18] sm:$0xff] }
 0x4d9   : > { %v4287_v11 = vsel %vm4280_vm10, %v4254_v37, %v6846_v28  ;;  %v4288_v36 = vsel %vm4280_vm10, %v4255_v21, %v6847_v31  ;;  %v4256_v21 = vsel %vm2059_vm6, %v9561_v46, %v6866_v38  ;;  %v5746_v43 = vld [vmem:[%s7307_s10 + $0x18] sm:$0xff] }
 0x4da   : > { %7064 = vrot.lane.b32.xlu0 %v7053_v34, %s7203_s12  ;;  %7059 = vrot.lane.b32.xlu2 %v7058_v35, %s7205_s14  ;;  %v4319_v60 = vsel %vm2092_vm7, %v4287_v11, %v6851_v9  ;;  %v4320_v20 = vsel %vm2092_vm7, %v4288_v36, %v6852_v7  ;;  %v7078_v34 = vpack.i.bf16 %v3088_v0, %v3087_v12  ;;  %v3057_v7 = vld [vmem:[#allocation3 + $0x168] sm:$0xff] }
 0x4db   : > { %v7098_v12 = vpack.i.bf16 %v3058_v29, %v3057_v7  ;;  %v3091_v29 = vld [vmem:[#allocation3 + $0x181] sm:$0xff] }
 0x4dc   : > { %7069 = vrot.lane.b32.xlu1 %v7058_v35, %s7212_s11  ;;  %v6855_v50 = vpop.permute.xlu0 %6854  ;;  %v9780_v42 = vpop.permute.xlu2 %6894  ;;  %v4257_v35 = vsel %vm2059_vm6, %v9565_v62, %v6867_v57  ;;  %v6882_v62 = vunpack.i.h.bf16 %v9767_v41 }
 0x4dd   : > { %v6857_v25 = vunpack.i.h.bf16 %v6855_v50  ;;  %v6856_v15 = vunpack.i.l.bf16 %v6855_v50  ;;  %5564 = vmatmul.msk.bf16.gmra.mxu1 %vm4446_vm12, %v4412_v33  ;;  %v7083_v33 = vpack.i.bf16 %v3120_v54, %v3119_v4  ;;  %v6897_v38 = vunpack.i.h.bf16 %v9780_v42 }
 0x4de   : > { %v6860_v6 = vpop.permute.xlu1 %6859 }
 0x4df   : > { %v4352_v51 = vsel %vm4345_vm11, %v4319_v60, %v6856_v15  ;;  %v4353_v1 = vsel %vm4345_vm11, %v4320_v20, %v6857_v25  ;;  %v6862_v14 = vunpack.i.h.bf16 %v6860_v6  ;;  %v6861_v22 = vunpack.i.l.bf16 %v6860_v6  ;;  %v3122_v6 = vld [vmem:[#allocation3 + $0x172] sm:$0xff] }
 0x4e0   : > { %v6881_v15 = vunpack.i.l.bf16 %v9767_v41 }
 0x4e1   : > { %v4384_v13 = vsel %vm2125_vm9, %v4352_v51, %v6861_v22  ;;  %v4385_v61 = vsel %vm2125_vm9, %v4353_v1, %v6862_v14  ;;  %v3089_v51 = vld [vmem:[#allocation3 + $0x169] sm:$0xff]  ;;  %v3090_v1 = vld [vmem:[#allocation3 + $0x171] sm:$0xff] }
 0x4e2   : > { %7079 = vrot.lane.b32.xlu0 %v7078_v34, %s7213_s15  ;;  %7074 = vrot.lane.b32.xlu2 %v7073_v39, %s7204_s13  ;;  %v4413_v16 = vpack.c.bf16 %v4385_v61, %v4384_v13  ;;  %v7108_v13 = vpack.i.bf16 %v3122_v6, %v3121_v40  ;;  %v7103_v61 = vpack.i.bf16 %v3090_v1, %v3089_v51  ;;  %v5747_v40 = vld [vmem:[%s7307_s10 + $0x20] sm:$0xff] }
 0x4e4   : > { %7084 = vrot.lane.b32.xlu1 %v7083_v33, %s7205_s14  ;;  %v6870_v10 = vpop.permute.xlu0 %6869  ;;  %v9798_v47 = vpop.permute.xlu2 %6909 }
 0x4e5   : > { %v6872_v31 = vunpack.i.h.bf16 %v6870_v10  ;;  %v6871_v28 = vunpack.i.l.bf16 %v6870_v10  ;;  %v6896_v10 = vunpack.i.l.bf16 %v9780_v42 }
 0x4e6   : > { %v6875_v37 = vpop.permute.xlu1 %6874 }
 0x4e7   : > { %v6877_v11 = vunpack.i.h.bf16 %v6875_v37  ;;  %v6876_v36 = vunpack.i.l.bf16 %v6875_v37  ;;  %v4289_v9 = vsel %vm4280_vm10, %v4256_v21, %v6871_v28  ;;  %v4290_v50 = vsel %vm4280_vm10, %v4257_v35, %v6872_v31  ;;  %v3059_v35 = vld [vmem:[#allocation3 + $0x180] sm:$0xff] }
 0x4e8   : > { %5645 = vmatmul.msk.bf16.gmra.mxu2 %vm346_vm0, %v5762_v17  ;;  %5725 = vmatmul.msk.bf16.gmra.mxu3 %vm346_vm0, %v5746_v43  ;;  %v6912_v43 = vunpack.i.h.bf16 %v9798_v47 }
 0x4e9   : > { %v4321_v46 = vsel %vm2092_vm7, %v4289_v9, %v6876_v36  ;;  %v4322_v25 = vsel %vm2092_vm7, %v4290_v50, %v6877_v11  ;;  %v3060_v11 = vld [vmem:[#allocation3 + $0x188] sm:$0xff] }
 0x4ea   : > { %7094 = vrot.lane.b32.xlu0 %v7083_v33, %s7212_s11  ;;  %7089 = vrot.lane.b32.xlu2 %v7078_v34, %s7203_s12  ;;  %v4354_v22 = vsel %vm4345_vm11, %v4321_v46, %v6881_v15  ;;  %v4355_v4 = vsel %vm4345_vm11, %v4322_v25, %v6882_v62  ;;  %v3092_v9 = vld [vmem:[#allocation3 + $0x189] sm:$0xff]  ;;  %v7123_v17 = vpack.i.bf16 %v3060_v11, %v3059_v35  ;;  %v6911_v46 = vunpack.i.l.bf16 %v9798_v47 }
 0x4eb   : > { %v7128_v15 = vpack.i.bf16 %v3092_v9, %v3091_v29 }
 0x4ec   : > { %7099 = vrot.lane.b32.xlu1 %v7098_v12, %s7204_s13  ;;  %v6885_v0 = vpop.permute.xlu0 %6884  ;;  %v9815_v44 = vpop.permute.xlu2 %6924 }
 0x4ed   : > { %v6887_v60 = vunpack.i.h.bf16 %v6885_v0  ;;  %v6886_v20 = vunpack.i.l.bf16 %v6885_v0  ;;  %5565 = vmatmul.msk.bf16.gmra.mxu1 %vm4446_vm12, %v4413_v16  ;;  %v5763_v0 = vld [vmem:[%s7270_s29 + $0x20] sm:$0xff] }
 0x4ee   : > { %v6890_v14 = vpop.permute.xlu1 %6889 }
 0x4ef   : > { %v6892_v41 = vunpack.i.h.bf16 %v6890_v14  ;;  %v6891_v54 = vunpack.i.l.bf16 %v6890_v14  ;;  %v4386_v34 = vsel %vm2125_vm9, %v4354_v22, %v6886_v20  ;;  %v4387_v39 = vsel %vm2125_vm9, %v4355_v4, %v6887_v60  ;;  %v3123_v22 = vld [vmem:[#allocation3 + $0x182] sm:$0xff]  ;;  %v3124_v4 = vld [vmem:[#allocation3 + $0x18a] sm:$0xff] }
 0x4f0   : > { %v4414_v33 = vpack.c.bf16 %v4387_v39, %v4386_v34 }
 0x4f1   : > { %v4258_v16 = vsel %vm2059_vm6, %v9582_v53, %v6891_v54  ;;  %v4259_v57 = vsel %vm2059_vm6, %v9578_v3, %v6892_v41 }
 0x4f2   : > { %7109 = vrot.lane.b32.xlu0 %v7108_v13, %s7205_s14  ;;  %7104 = vrot.lane.b32.xlu2 %v7103_v61, %s7213_s15  ;;  %v4291_v36 = vsel %vm4280_vm10, %v4258_v16, %v6896_v10  ;;  %v4292_v53 = vsel %vm4280_vm10, %v4259_v57, %v6897_v38  ;;  %v3094_v38 = vld [vmem:[#allocation3 + $0x1a1] sm:$0xff]  ;;  %v3061_v10 = vld [vmem:[#allocation3 + $0x198] sm:$0xff] }
 0x4f4   : > { %7114 = vrot.lane.b32.xlu1 %v7103_v61, %s7203_s12  ;;  %v6900_v31 = vpop.permute.xlu0 %6899  ;;  %v9833_v28 = vpop.permute.xlu2 %6939  ;;  %v7133_v61 = vpack.i.bf16 %v3124_v4, %v3123_v22 }
 0x4f5   : > { %v6902_v37 = vunpack.i.h.bf16 %v6900_v31  ;;  %v6901_v21 = vunpack.i.l.bf16 %v6900_v31  ;;  %v3062_v31 = vld [vmem:[#allocation3 + $0x1a0] sm:$0xff] }
 0x4f6   : > { %v6905_v7 = vpop.permute.xlu1 %6904  ;;  %v7148_v9 = vpack.i.bf16 %v3062_v31, %v3061_v10 }
 0x4f7   : > { %v4323_v3 = vsel %vm2092_vm7, %v4291_v36, %v6901_v21  ;;  %v4324_v42 = vsel %vm2092_vm7, %v4292_v53, %v6902_v37  ;;  %v6907_v50 = vunpack.i.h.bf16 %v6905_v7  ;;  %v6906_v12 = vunpack.i.l.bf16 %v6905_v7  ;;  %v3125_v36 = vld [vmem:[#allocation3 + $0x19a] sm:$0xff]  ;;  %v3126_v53 = vld [vmem:[#allocation3 + $0x1a2] sm:$0xff] }
 0x4f8   : > { %5646 = vmatmul.msk.bf16.gmra.mxu2 %vm346_vm0, %v5763_v0  ;;  %5726 = vmatmul.msk.bf16.gmra.mxu3 %vm346_vm0, %v5747_v40  ;;  %v6927_v37 = vunpack.i.h.bf16 %v9815_v44  ;;  %v5748_v0 = vld [vmem:[%s7307_s10 + $0x28] sm:$0xff]  ;;  %v6942_v40 = vunpack.i.h.bf16 %v9833_v28 }
 0x4f9   : > { %v4356_v25 = vsel %vm4345_vm11, %v4323_v3, %v6906_v12  ;;  %v4357_v62 = vsel %vm4345_vm11, %v4324_v42, %v6907_v50 }
 0x4fa   : > { %7124 = vrot.lane.b32.xlu0 %v7123_v17, %s7204_s13  ;;  %7119 = vrot.lane.b32.xlu2 %v7108_v13, %s7212_s11  ;;  %v4388_v60 = vsel %vm2125_vm9, %v4356_v25, %v6911_v46  ;;  %v4389_v20 = vsel %vm2125_vm9, %v4357_v62, %v6912_v43  ;;  %v7158_v43 = vpack.i.bf16 %v3126_v53, %v3125_v36 }
 0x4fb   : > { %v4415_v47 = vpack.c.bf16 %v4389_v20, %v4388_v60  ;;  %v6941_v60 = vunpack.i.l.bf16 %v9833_v28 }
 0x4fc   : > { %7129 = vrot.lane.b32.xlu1 %v7128_v15, %s7213_s15  ;;  %v6915_v6 = vpop.permute.xlu0 %6914  ;;  %v9850_v51 = vpop.permute.xlu2 %6954 }
 0x4fd   : > { %v6917_v1 = vunpack.i.h.bf16 %v6915_v6  ;;  %v6916_v14 = vunpack.i.l.bf16 %v6915_v6  ;;  %5566 = vmatmul.msk.bf16.gmra.mxu1 %vm4446_vm12, %v4414_v33  ;;  %v3093_v33 = vld [vmem:[#allocation3 + $0x199] sm:$0xff]  ;;  %v4262_v4 = vsel %vm2059_vm6, %v9592_v24, %v6941_v60 }
 0x4fe   : > { %v6920_v41 = vpop.permute.xlu1 %6919  ;;  %v7153_v29 = vpack.i.bf16 %v3094_v38, %v3093_v33  ;;  %v6956_v33 = vunpack.i.l.bf16 %v9850_v51 }
 0x4ff   : > { %v6922_v54 = vunpack.i.h.bf16 %v6920_v41  ;;  %v6921_v34 = vunpack.i.l.bf16 %v6920_v41  ;;  %v4260_v39 = vsel %vm2059_vm6, %v9518_v52, %v6916_v14  ;;  %v4261_v13 = vsel %vm2059_vm6, %v9522_v5, %v6917_v1 }
 0x500   : > { %v6926_v52 = vunpack.i.l.bf16 %v9815_v44  ;;  %v4263_v41 = vsel %vm2059_vm6, %v9596_v23, %v6942_v40 }
 0x501   : > { %v4293_v16 = vsel %vm4280_vm10, %v4260_v39, %v6921_v34  ;;  %v4294_v57 = vsel %vm4280_vm10, %v4261_v13, %v6922_v54 }
 0x502   : > { %7139 = vrot.lane.b32.xlu0 %v7128_v15, %s7203_s12  ;;  %7134 = vrot.lane.b32.xlu2 %v7133_v61, %s7205_s14  ;;  %v4325_v7 = vsel %vm2092_vm7, %v4293_v16, %v6926_v52  ;;  %v4326_v3 = vsel %vm2092_vm7, %v4294_v57, %v6927_v37  ;;  %v5764_v15 = vld [vmem:[%s7270_s29 + $0x28] sm:$0xff]  ;;  %s5742_s12 = sshll.u32 %s11128_s25, 8 }
 0x504   : > { %7144 = vrot.lane.b32.xlu1 %v7133_v61, %s7212_s11  ;;  %v6930_v5 = vpop.permute.xlu0 %6929  ;;  %v9866_v21 = vpop.permute.xlu2 %6969  ;;  %v6957_v61 = vunpack.i.h.bf16 %v9850_v51 }
 0x505   : > { %v6932_v35 = vunpack.i.h.bf16 %v6930_v5  ;;  %v6931_v11 = vunpack.i.l.bf16 %v6930_v5  ;;  %v6972_v53 = vunpack.i.h.bf16 %v9866_v21 }
 0x506   : > { %v6935_v42 = vpop.permute.xlu1 %6934 }
 0x507   : > { %v4358_v44 = vsel %vm4345_vm11, %v4325_v7, %v6931_v11  ;;  %v4359_v50 = vsel %vm4345_vm11, %v4326_v3, %v6932_v35  ;;  %v6937_v12 = vunpack.i.h.bf16 %v6935_v42  ;;  %v6936_v17 = vunpack.i.l.bf16 %v6935_v42 }
 0x508   : > { %5647 = vmatmul.msk.bf16.gmra.mxu2 %vm346_vm0, %v5764_v15  ;;  %5727 = vmatmul.msk.bf16.gmra.mxu3 %vm346_vm0, %v5748_v0  ;;  %v6971_v7 = vunpack.i.l.bf16 %v9866_v21 }
 0x509   : > { %v4390_v46 = vsel %vm2125_vm9, %v4358_v44, %v6936_v17  ;;  %v4391_v25 = vsel %vm2125_vm9, %v4359_v50, %v6937_v12  ;;  %v5749_v44 = vld [vmem:[%s7307_s10 + $0x30] sm:$0xff] }
 0x50a   : > { %7154 = vrot.lane.b32.xlu0 %v7153_v29, %s7213_s15  ;;  %7149 = vrot.lane.b32.xlu2 %v7148_v9, %s7204_s13  ;;  %v4416_v62 = vpack.c.bf16 %v4391_v25, %v4390_v46  ;;  %v5765_v9 = vld [vmem:[%s7270_s29 + $0x30] sm:$0xff] }
 0x50c   : > { %7159 = vrot.lane.b32.xlu1 %v7158_v43, %s7205_s14  ;;  %v6945_v20 = vpop.permute.xlu0 %6944  ;;  %v6985_v6 = vpop.permute.xlu2 %6984  ;;  %s10577_s14 = scalar_lea.vmem %s10813_s7, %s5742_s12 }
 0x50d   : > { %v6947_v1 = vunpack.i.h.bf16 %v6945_v20  ;;  %v6946_v14 = vunpack.i.l.bf16 %v6945_v20  ;;  %5567 = vmatmul.msk.bf16.gmra.mxu1 %vm4446_vm12, %v4415_v47  ;;  %v6987_v25 = vunpack.i.h.bf16 %v6985_v6 }
 0x50e   : > { %v6950_v22 = vpop.permute.xlu1 %6949 }
 0x50f   : > { %v6952_v28 = vunpack.i.h.bf16 %v6950_v22  ;;  %v6951_v54 = vunpack.i.l.bf16 %v6950_v22  ;;  %v4295_v34 = vsel %vm4280_vm10, %v4262_v4, %v6946_v14  ;;  %v4296_v39 = vsel %vm4280_vm10, %v4263_v41, %v6947_v1 }
 0x511   : > { %v4327_v13 = vsel %vm2092_vm7, %v4295_v34, %v6951_v54  ;;  %v4328_v47 = vsel %vm2092_vm7, %v4296_v39, %v6952_v28 }
 0x512   : > { %v4360_v23 = vsel %vm4345_vm11, %v4327_v13, %v6956_v33  ;;  %v4361_v31 = vsel %vm4345_vm11, %v4328_v47, %v6957_v61 }
 0x514   : > { %v6960_v16 = vpop.permute.xlu0 %6959  ;;  %v7000_v57 = vpop.permute.xlu2 %6999 }
 0x515   : > { %v6962_v24 = vunpack.i.h.bf16 %v6960_v16  ;;  %v6961_v38 = vunpack.i.l.bf16 %v6960_v16  ;;  %v7002_v47 = vunpack.i.h.bf16 %v7000_v57  ;;  %v7001_v61 = vunpack.i.l.bf16 %v7000_v57 }
 0x516   : > { %v6965_v10 = vpop.permute.xlu1 %6964 }
 0x517   : > { %v6967_v37 = vunpack.i.h.bf16 %v6965_v10  ;;  %v6966_v52 = vunpack.i.l.bf16 %v6965_v10  ;;  %v4392_v5 = vsel %vm2125_vm9, %v4360_v23, %v6961_v38  ;;  %v4393_v35 = vsel %vm2125_vm9, %v4361_v31, %v6962_v24  ;;  %v5766_v23 = vld [vmem:[%s7270_s29 + $0x38] sm:$0xff] }
 0x518   : > { %v4417_v11 = vpack.c.bf16 %v4393_v35, %v4392_v5  ;;  %5648 = vmatmul.msk.bf16.gmra.mxu2 %vm346_vm0, %v5765_v9  ;;  %5728 = vmatmul.msk.bf16.gmra.mxu3 %vm346_vm0, %v5749_v44  ;;  %v5750_v31 = vld [vmem:[%s7307_s10 + $0x38] sm:$0xff] }
 0x519   : > { %v4264_v51 = vsel %vm2059_vm6, %v9613_v56, %v6966_v52  ;;  %v4265_v36 = vsel %vm2059_vm6, %v9609_v59, %v6967_v37 }
 0x51a   : > { %v4297_v50 = vsel %vm4280_vm10, %v4264_v51, %v6971_v7  ;;  %v4298_v12 = vsel %vm4280_vm10, %v4265_v36, %v6972_v53 }
 0x51c   : > { %v6975_v3 = vpop.permute.xlu0 %6974  ;;  %v7015_v17 = vpop.permute.xlu2 %7014 }
 0x51d   : > { %v6977_v42 = vunpack.i.h.bf16 %v6975_v3  ;;  %v6976_v29 = vunpack.i.l.bf16 %v6975_v3  ;;  %5568 = vmatmul.msk.bf16.gmra.mxu1 %vm4446_vm12, %v4416_v62  ;;  %v6986_v62 = vunpack.i.l.bf16 %v6985_v6  ;;  %v7017_v53 = vunpack.i.h.bf16 %v7015_v17 }
 0x51e   : > { %v6980_v56 = vpop.permute.xlu1 %6979  ;;  %v7016_v7 = vunpack.i.l.bf16 %v7015_v17 }
 0x51f   : > { %v4329_v43 = vsel %vm2092_vm7, %v4297_v50, %v6976_v29  ;;  %v4330_v59 = vsel %vm2092_vm7, %v4298_v12, %v6977_v42  ;;  %v6982_v21 = vunpack.i.h.bf16 %v6980_v56  ;;  %v6981_v46 = vunpack.i.l.bf16 %v6980_v56 }
 0x520   : > { %v4268_v9 = vsel %vm2059_vm6, %v9627_v27, %v7016_v7  ;;  %v4269_v44 = vsel %vm2059_vm6, %v9631_v30, %v7017_v53 }
 0x521   : > { %v4362_v15 = vsel %vm4345_vm11, %v4329_v43, %v6981_v46  ;;  %v4363_v0 = vsel %vm4345_vm11, %v4330_v59, %v6982_v21 }
 0x522   : > { %v4394_v40 = vsel %vm2125_vm9, %v4362_v15, %v6986_v62  ;;  %v4395_v60 = vsel %vm2125_vm9, %v4363_v0, %v6987_v25  ;;  %v5767_v15 = vld [vmem:[%s7270_s29 + $0x40] sm:$0xff] }
 0x523   : > { %v4418_v1 = vpack.c.bf16 %v4395_v60, %v4394_v40  ;;  %v5751_v0 = vld [vmem:[%s7307_s10 + $0x40] sm:$0xff] }
 0x524   : > { %v6990_v20 = vpop.permute.xlu0 %6989  ;;  %v7030_v34 = vpop.permute.xlu2 %7029 }
 0x525   : > { %v6992_v14 = vunpack.i.h.bf16 %v6990_v20  ;;  %v6991_v22 = vunpack.i.l.bf16 %v6990_v20  ;;  %v7032_v40 = vunpack.i.h.bf16 %v7030_v34  ;;  %v7031_v60 = vunpack.i.l.bf16 %v7030_v34 }
 0x526   : > { %v6995_v4 = vpop.permute.xlu1 %6994 }
 0x527   : > { %v6997_v41 = vunpack.i.h.bf16 %v6995_v4  ;;  %v6996_v28 = vunpack.i.l.bf16 %v6995_v4  ;;  %v4266_v6 = vsel %vm2059_vm6, %v9539_v48, %v6991_v22  ;;  %v4267_v54 = vsel %vm2059_vm6, %v9543_v8, %v6992_v14 }
 0x528   : > { %5649 = vmatmul.msk.bf16.gmra.mxu2 %vm346_vm0, %v5766_v23  ;;  %5729 = vmatmul.msk.bf16.gmra.mxu3 %vm346_vm0, %v5750_v31 }
 0x529   : > { %v4299_v39 = vsel %vm4280_vm10, %v4266_v6, %v6996_v28  ;;  %v4300_v13 = vsel %vm4280_vm10, %v4267_v54, %v6997_v41 }
 0x52a   : > { %v4331_v38 = vsel %vm2092_vm7, %v4299_v39, %v7001_v61  ;;  %v4332_v10 = vsel %vm2092_vm7, %v4300_v13, %v7002_v47 }
 0x52c   : > { %v7005_v33 = vpop.permute.xlu0 %7004 }
 0x52d   : > { %v7007_v16 = vunpack.i.h.bf16 %v7005_v33  ;;  %v7006_v24 = vunpack.i.l.bf16 %v7005_v33  ;;  %5569 = vmatmul.msk.bf16.gmra.mxu1 %vm4446_vm12, %v4417_v11  ;;  %v7045_v11 = vpop.permute.xlu2 %7044 }
 0x52e   : > { %v7010_v48 = vpop.permute.xlu1 %7009 }
 0x52f   : > { %v4364_v8 = vsel %vm4345_vm11, %v4331_v38, %v7006_v24  ;;  %v4365_v37 = vsel %vm4345_vm11, %v4332_v10, %v7007_v16  ;;  %v7012_v52 = vunpack.i.h.bf16 %v7010_v48  ;;  %v7011_v5 = vunpack.i.l.bf16 %v7010_v48 }
 0x530   : > { %v7046_v16 = vunpack.i.l.bf16 %v7045_v11  ;;  %v7047_v48 = vunpack.i.h.bf16 %v7045_v11 }
 0x531   : > { %v9933_v57 = vsel %vm2125_vm9, %v4364_v8, %v7011_v5  ;;  %v9936_v35 = vsel %vm2125_vm9, %v4365_v37, %v7012_v52 }
 0x532   : > { %v4419_v51 = vpack.c.bf16 %v9936_v35, %v9933_v57 }
 0x534   : > { %v7020_v36 = vpop.permute.xlu0 %7019 }
 0x535   : > { %v7022_v42 = vunpack.i.h.bf16 %v7020_v36  ;;  %v7021_v29 = vunpack.i.l.bf16 %v7020_v36  ;;  %v9948_v17 = vpop.permute.xlu2 %7059 }
 0x536   : > { %v7025_v3 = vpop.permute.xlu1 %7024 }
 0x537   : > { %v7027_v50 = vunpack.i.h.bf16 %v7025_v3  ;;  %v7026_v12 = vunpack.i.l.bf16 %v7025_v3  ;;  %v4301_v43 = vsel %vm4280_vm10, %v4268_v9, %v7021_v29  ;;  %v4302_v59 = vsel %vm4280_vm10, %v4269_v44, %v7022_v42  ;;  %v5768_v29 = vld [vmem:[%s7270_s29 + $0x48] sm:$0xff] }
 0x538   : > { %5650 = vmatmul.msk.bf16.gmra.mxu2 %vm346_vm0, %v5767_v15  ;;  %5730 = vmatmul.msk.bf16.gmra.mxu3 %vm346_vm0, %v5751_v0  ;;  %v5752_v9 = vld [vmem:[%s7307_s10 + $0x48] sm:$0xff]  ;;  %v7062_v44 = vunpack.i.h.bf16 %v9948_v17 }
 0x539   : > { %v4333_v46 = vsel %vm2092_vm7, %v4301_v43, %v7026_v12  ;;  %v4334_v27 = vsel %vm2092_vm7, %v4302_v59, %v7027_v50  ;;  %v7061_v50 = vunpack.i.l.bf16 %v9948_v17 }
 0x53a   : > { %v9944_v56 = vpop.f32.mrf.mxu1  ;;  %v4366_v20 = vsel %vm4345_vm11, %v4333_v46, %v7031_v60  ;;  %v4367_v14 = vsel %vm4345_vm11, %v4334_v27, %v7032_v40 }
 0x53b   : > { %v5264_v22 = vpop.f32.mrf.mxu3 }
 0x53c   : > { %v7035_v21 = vpop.permute.xlu0 %7034 }
 0x53d   : > { %5570 = vmatmul.msk.bf16.gmra.mxu1 %vm4446_vm12, %v4418_v1  ;;  %v7037_v25 = vunpack.i.h.bf16 %v7035_v21  ;;  %v7036_v62 = vunpack.i.l.bf16 %v7035_v21  ;;  %v5044_v1 = vpop.f32.mrf.mxu2  ;;  %v7075_v47 = vpop.permute.xlu2 %7074 }
 0x53e   : > { %v7040_v30 = vpop.permute.xlu1 %7039  ;;  %v9969_v39 = vadd.f32 %v5264_v22, %v5044_v1  ;;  %v7077_v0 = vunpack.i.h.bf16 %v7075_v47  ;;  %v7076_v40 = vunpack.i.l.bf16 %v7075_v47 }
 0x53f   : > { %v7041_v4 = vunpack.i.l.bf16 %v7040_v30  ;;  %v9962_v28 = vsel %vm2125_vm9, %v4366_v20, %v7036_v62  ;;  %v9965_v6 = vsel %vm2125_vm9, %v4367_v14, %v7037_v25  ;;  %v7042_v54 = vunpack.i.h.bf16 %v7040_v30 }
 0x540   : > { %v4420_v34 = vpack.c.bf16 %v9965_v6, %v9962_v28 }
 0x541   : > { %v4270_v61 = vsel %vm2059_vm6, %v9639_v45, %v7041_v4  ;;  %v4271_v24 = vsel %vm2059_vm6, %v9635_v18, %v7042_v54 }
 0x542   : > { %v9959_v41 = vpop.f32.mrf.mxu1  ;;  %v4303_v23 = vsel %vm4280_vm10, %v4270_v61, %v7046_v16  ;;  %v4304_v37 = vsel %vm4280_vm10, %v4271_v24, %v7047_v48 }
 0x543   : > { %v5266_v8 = vpop.f32.mrf.mxu3 }
 0x544   : > { %v7050_v13 = vpop.permute.xlu0 %7049 }
 0x545   : > { %v7052_v38 = vunpack.i.h.bf16 %v7050_v13  ;;  %v7051_v10 = vunpack.i.l.bf16 %v7050_v13  ;;  %v5046_v31 = vpop.f32.mrf.mxu2  ;;  %v7090_v59 = vpop.permute.xlu2 %7089 }
 0x546   : > { %v7055_v33 = vpop.permute.xlu1 %7054  ;;  %v9979_v45 = vadd.f32 %v5266_v8, %v5046_v31  ;;  %v7092_v31 = vunpack.i.h.bf16 %v7090_v59  ;;  %v7091_v8 = vunpack.i.l.bf16 %v7090_v59 }
 0x547   : > { %v7057_v52 = vunpack.i.h.bf16 %v7055_v33  ;;  %v7056_v5 = vunpack.i.l.bf16 %v7055_v33  ;;  %v4335_v35 = vsel %vm2092_vm7, %v4303_v23, %v7051_v10  ;;  %v4336_v18 = vsel %vm2092_vm7, %v4304_v37, %v7052_v38 }
 0x548   : > { %5651 = vmatmul.msk.bf16.gmra.mxu2 %vm346_vm0, %v5768_v29  ;;  %5731 = vmatmul.msk.bf16.gmra.mxu3 %vm346_vm0, %v5752_v9 }
 0x549   : > { %v4368_v7 = vsel %vm4345_vm11, %v4335_v35, %v7056_v5  ;;  %v4369_v3 = vsel %vm4345_vm11, %v4336_v18, %v7057_v52 }
 0x54a   : > { %v9977_v57 = vpop.f32.mrf.mxu1  ;;  %v9997_v46 = vsel %vm2125_vm9, %v4368_v7, %v7061_v50  ;;  %v10000_v27 = vsel %vm2125_vm9, %v4369_v3, %v7062_v44  ;;  %v4275_v7 = vsel %vm2059_vm6, %v9652_v63, %v7092_v31 }
 0x54b   : > { %v5269_v25 = vpop.f32.mrf.mxu3 }
 0x54c   : > { %v7065_v36 = vpop.permute.xlu0 %7064 }
 0x54d   : > { %v7067_v11 = vunpack.i.h.bf16 %v7065_v36  ;;  %v7066_v53 = vunpack.i.l.bf16 %v7065_v36  ;;  %5571 = vmatmul.msk.bf16.gmra.mxu1 %vm4446_vm12, %v4419_v51  ;;  %v5049_v17 = vpop.f32.mrf.mxu2  ;;  %v7105_v37 = vpop.permute.xlu2 %7104  ;;  %v5769_v36 = vld [vmem:[%s7270_s29 + $0x50] sm:$0xff] }
 0x54e   : > { %v7070_v42 = vpop.permute.xlu1 %7069  ;;  %v10006_v30 = vadd.f32 %v5269_v25, %v5049_v17  ;;  %v7107_v50 = vunpack.i.h.bf16 %v7105_v37  ;;  %v7106_v63 = vunpack.i.l.bf16 %v7105_v37 }
 0x54f   : > { %v7072_v12 = vunpack.i.h.bf16 %v7070_v42  ;;  %v7071_v43 = vunpack.i.l.bf16 %v7070_v42  ;;  %v4272_v21 = vsel %vm2059_vm6, %v9568_v58, %v7066_v53  ;;  %v4273_v51 = vsel %vm2059_vm6, %v9571_v19, %v7067_v11  ;;  %v5753_v11 = vld [vmem:[%s7307_s10 + $0x50] sm:$0xff] }
 0x550   : > { %v4421_v58 = vpack.c.bf16 %v10000_v27, %v9997_v46  ;;  %v4274_v53 = vsel %vm2059_vm6, %v9648_v55, %v7091_v8 }
 0x551   : > { %v4305_v19 = vsel %vm4280_vm10, %v4272_v21, %v7071_v43  ;;  %v4306_v15 = vsel %vm4280_vm10, %v4273_v51, %v7072_v12 }
 0x552   : > { %v10002_v62 = vpop.f32.mrf.mxu1  ;;  %v4337_v1 = vsel %vm2092_vm7, %v4305_v19, %v7076_v40  ;;  %v4338_v22 = vsel %vm2092_vm7, %v4306_v15, %v7077_v0 }
 0x553   : > { %v5271_v38 = vpop.f32.mrf.mxu3 }
 0x554   : > { %v7080_v60 = vpop.permute.xlu0 %7079 }
 0x555   : > { %v7082_v20 = vunpack.i.h.bf16 %v7080_v60  ;;  %v7081_v14 = vunpack.i.l.bf16 %v7080_v60  ;;  %v5051_v24 = vpop.f32.mrf.mxu2  ;;  %v7120_v59 = vpop.permute.xlu2 %7119 }
 0x556   : > { %v7085_v4 = vpop.permute.xlu1 %7084  ;;  %v10024_v23 = vadd.f32 %v5271_v38, %v5051_v24  ;;  %v7122_v8 = vunpack.i.h.bf16 %v7120_v59  ;;  %v7121_v37 = vunpack.i.l.bf16 %v7120_v59 }
 0x557   : > { %v4370_v54 = vsel %vm4345_vm11, %v4337_v1, %v7081_v14  ;;  %v4371_v13 = vsel %vm4345_vm11, %v4338_v22, %v7082_v20  ;;  %v7087_v61 = vunpack.i.h.bf16 %v7085_v4  ;;  %v7086_v33 = vunpack.i.l.bf16 %v7085_v4 }
 0x558   : > { %5652 = vmatmul.msk.bf16.gmra.mxu2 %vm346_vm0, %v5769_v36  ;;  %5732 = vmatmul.msk.bf16.gmra.mxu3 %vm346_vm0, %v5753_v11 }
 0x559   : > { %v10015_v16 = vsel %vm2125_vm9, %v4370_v54, %v7086_v33  ;;  %v10018_v47 = vsel %vm2125_vm9, %v4371_v13, %v7087_v61  ;;  %v5770_v61 = vld [vmem:[%s7270_s29 + $0x58] sm:$0xff] }
 0x55a   : > { %v4422_v10 = vpack.c.bf16 %v10018_v47, %v10015_v16  ;;  %v10022_v48 = vpop.f32.mrf.mxu1  ;;  %v5754_v33 = vld [vmem:[%s7307_s10 + $0x58] sm:$0xff] }
 0x55b   : > { %11039 = vst [vmem:[#allocation41_spill] sm:$0xff] %v10022_v48  ;;  %v5274_v44 = vpop.f32.mrf.mxu3 }
 0x55c   : > { %v7095_v52 = vpop.permute.xlu0 %7094 }
 0x55d   : > { %v7097_v5 = vunpack.i.h.bf16 %v7095_v52  ;;  %v7096_v35 = vunpack.i.l.bf16 %v7095_v52  ;;  %5572 = vmatmul.msk.bf16.gmra.mxu1 %vm4446_vm12, %v4420_v34  ;;  %v5054_v6 = vpop.f32.mrf.mxu2  ;;  %v7135_v24 = vpop.permute.xlu2 %7134 }
 0x55e   : > { %v7100_v18 = vpop.permute.xlu1 %7099  ;;  %v10044_v43 = vadd.f32 %v5274_v44, %v5054_v6  ;;  %v7136_v59 = vunpack.i.l.bf16 %v7135_v24 }
 0x55f   : > { %v7102_v3 = vunpack.i.h.bf16 %v7100_v18  ;;  %v7101_v42 = vunpack.i.l.bf16 %v7100_v18  ;;  %v4307_v29 = vsel %vm4280_vm10, %v4274_v53, %v7096_v35  ;;  %v4308_v9 = vsel %vm4280_vm10, %v4275_v7, %v7097_v5 }
 0x561   : > { %v4339_v34 = vsel %vm2092_vm7, %v4307_v29, %v7101_v42  ;;  %v4340_v55 = vsel %vm2092_vm7, %v4308_v9, %v7102_v3 }
 0x562   : > { %v10040_v28 = vpop.f32.mrf.mxu1  ;;  %v4372_v17 = vsel %vm4345_vm11, %v4339_v34, %v7106_v63  ;;  %v4373_v25 = vsel %vm4345_vm11, %v4340_v55, %v7107_v50 }
 0x563   : > { %v5276_v14 = vpop.f32.mrf.mxu3 }
 0x564   : > { %v7110_v12 = vpop.permute.xlu0 %7109 }
 0x565   : > { %v7112_v21 = vunpack.i.h.bf16 %v7110_v12  ;;  %v7111_v51 = vunpack.i.l.bf16 %v7110_v12  ;;  %v5056_v20 = vpop.f32.mrf.mxu2  ;;  %v7150_v34 = vpop.permute.xlu2 %7149  ;;  %v7137_v12 = vunpack.i.h.bf16 %v7135_v24 }
 0x566   : > { %v7115_v19 = vpop.permute.xlu1 %7114  ;;  %v10058_v22 = vadd.f32 %v5276_v14, %v5056_v20 }
 0x567   : > { %v10049_v15 = vsel %vm2125_vm9, %v4372_v17, %v7111_v51  ;;  %v10052_v0 = vsel %vm2125_vm9, %v4373_v25, %v7112_v21  ;;  %v7117_v4 = vunpack.i.h.bf16 %v7115_v19  ;;  %v7116_v54 = vunpack.i.l.bf16 %v7115_v19 }
 0x568   : > { %v4423_v40 = vpack.c.bf16 %v10052_v0, %v10049_v15  ;;  %5653 = vmatmul.msk.bf16.gmra.mxu2 %vm346_vm0, %v5770_v61  ;;  %5733 = vmatmul.msk.bf16.gmra.mxu3 %vm346_vm0, %v5754_v33  ;;  %v7152_v21 = vunpack.i.h.bf16 %v7150_v34  ;;  %v7151_v51 = vunpack.i.l.bf16 %v7150_v34  ;;  %v5773_v0 = vld [vmem:[%s7270_s29 + $0x70] sm:$0xff] }
 0x569   : > { %v4276_v38 = vsel %vm2059_vm6, %v9660_v32, %v7116_v54  ;;  %v4277_v31 = vsel %vm2059_vm6, %v9656_v49, %v7117_v4 }
 0x56a   : > { %v10056_v60 = vpop.f32.mrf.mxu1  ;;  %v4309_v35 = vsel %vm4280_vm10, %v4276_v38, %v7121_v37  ;;  %v4310_v18 = vsel %vm4280_vm10, %v4277_v31, %v7122_v8  ;;  %v5771_v31 = vld [vmem:[%s7270_s29 + $0x60] sm:$0xff] }
 0x56b   : > { %v5279_v5 = vpop.f32.mrf.mxu3  ;;  %v5755_v8 = vld [vmem:[%s7307_s10 + $0x60] sm:$0xff] }
 0x56c   : > { %v7125_v1 = vpop.permute.xlu0 %7124 }
 0x56d   : > { %5573 = vmatmul.msk.bf16.gmra.mxu1 %vm4446_vm12, %v4421_v58  ;;  %v7127_v52 = vunpack.i.h.bf16 %v7125_v1  ;;  %v7126_v46 = vunpack.i.l.bf16 %v7125_v1  ;;  %v5059_v58 = vpop.f32.mrf.mxu2 }
 0x56e   : > { %v7130_v13 = vpop.permute.xlu1 %7129  ;;  %v10076_v11 = vadd.f32 %v5279_v5, %v5059_v58 }
 0x56f   : > { %v7132_v53 = vunpack.i.h.bf16 %v7130_v13  ;;  %v7131_v32 = vunpack.i.l.bf16 %v7130_v13  ;;  %v4341_v49 = vsel %vm2092_vm7, %v4309_v35, %v7126_v46  ;;  %v4342_v42 = vsel %vm2092_vm7, %v4310_v18, %v7127_v52 }
 0x571   : > { %v4374_v50 = vsel %vm4345_vm11, %v4341_v49, %v7131_v32  ;;  %v4375_v63 = vsel %vm4345_vm11, %v4342_v42, %v7132_v53  ;;  %v5772_v49 = vld [vmem:[%s7270_s29 + $0x68] sm:$0xff] }
 0x572   : > { %v10072_v27 = vpop.f32.mrf.mxu1  ;;  %v4406_v1 = vsel %vm2125_vm9, %v4374_v50, %v7136_v59  ;;  %v4407_v4 = vsel %vm2125_vm9, %v4375_v63, %v7137_v12  ;;  %v5756_v42 = vld [vmem:[%s7307_s10 + $0x68] sm:$0xff] }
 0x573   : > { %v5281_v20 = vpop.f32.mrf.mxu3  ;;  %v4424_v61 = vpack.c.bf16 %v4407_v4, %v4406_v1 }
 0x574   : > { %v7140_v36 = vpop.permute.xlu0 %7139 }
 0x575   : > { %v7142_v7 = vunpack.i.h.bf16 %v7140_v36  ;;  %v7141_v3 = vunpack.i.l.bf16 %v7140_v36  ;;  %v5061_v25 = vpop.f32.mrf.mxu2 }
 0x576   : > { %v7145_v29 = vpop.permute.xlu1 %7144 }
 0x577   : > { %v7147_v9 = vunpack.i.h.bf16 %v7145_v29  ;;  %v7146_v6 = vunpack.i.l.bf16 %v7145_v29  ;;  %v4278_v55 = vsel %vm2059_vm6, %v9599_v26, %v7141_v3  ;;  %v4279_v44 = vsel %vm2059_vm6, %v9602_v2, %v7142_v7 }
 0x578   : > { %v10090_v2 = vadd.f32 %v5281_v20, %v5061_v25  ;;  %5654 = vmatmul.msk.bf16.gmra.mxu2 %vm346_vm0, %v5771_v31  ;;  %5734 = vmatmul.msk.bf16.gmra.mxu3 %vm346_vm0, %v5755_v8  ;;  %v5774_v20 = vld [vmem:[%s7270_s29 + $0x78] sm:$0xff] }
 0x579   : > { %v4311_v19 = vsel %vm4280_vm10, %v4278_v55, %v7146_v6  ;;  %v4312_v26 = vsel %vm4280_vm10, %v4279_v44, %v7147_v9 }
 0x57a   : > { %v10086_v17 = vpop.f32.mrf.mxu1  ;;  %v4343_v33 = vsel %vm2092_vm7, %v4311_v19, %v7151_v51  ;;  %v4344_v24 = vsel %vm2092_vm7, %v4312_v26, %v7152_v21 }
 0x57b   : > { %11040 = vst [vmem:[#allocation52_spill] sm:$0xff] %v10086_v17  ;;  %v5284_v18 = vpop.f32.mrf.mxu3 }
 0x57c   : > { %v7155_v14 = vpop.permute.xlu0 %7154 }
 0x57d   : > { %v7157_v54 = vunpack.i.h.bf16 %v7155_v14  ;;  %v7156_v13 = vunpack.i.l.bf16 %v7155_v14  ;;  %5574 = vmatmul.msk.bf16.gmra.mxu1 %vm4446_vm12, %v4422_v10  ;;  %v5064_v35 = vpop.f32.mrf.mxu2  ;;  %v5758_v14 = vld [vmem:[%s7307_s10 + $0x78] sm:$0xff] }
 0x57e   : > { %v7160_v38 = vpop.permute.xlu1 %7159  ;;  %v10110_v36 = vadd.f32 %v5284_v18, %v5064_v35 }
 0x57f   : > { %v4376_v37 = vsel %vm4345_vm11, %v4343_v33, %v7156_v13  ;;  %v4377_v52 = vsel %vm4345_vm11, %v4344_v24, %v7157_v54  ;;  %v7162_v46 = vunpack.i.h.bf16 %v7160_v38  ;;  %v7161_v58 = vunpack.i.l.bf16 %v7160_v38 }
 0x581   : > { %v4408_v16 = vsel %vm2125_vm9, %v4376_v37, %v7161_v58  ;;  %v4409_v47 = vsel %vm2125_vm9, %v4377_v52, %v7162_v46 }
 0x582   : > { %v4425_v10 = vpack.c.bf16 %v4409_v47, %v4408_v16  ;;  %v10108_v5 = vpop.f32.mrf.mxu1 }
 0x583   : > { %v5286_v7 = vpop.f32.mrf.mxu3 }
 0x585   : > { %v5066_v32 = vpop.f32.mrf.mxu2 }
 0x586   : > { %v10114_v3 = vadd.f32 %v5286_v7, %v5066_v32 }
 0x588   : > { %5655 = vmatmul.msk.bf16.gmra.mxu2 %vm346_vm0, %v5772_v49  ;;  %5735 = vmatmul.msk.bf16.gmra.mxu3 %vm346_vm0, %v5756_v42 }
 0x58a   : > { %v10112_v53 = vpop.f32.mrf.mxu1 }
 0x58b   : > { %v5289_v6 = vpop.f32.mrf.mxu3 }
 0x58d   : > { %5575 = vmatmul.msk.bf16.gmra.mxu1 %vm4446_vm12, %v4423_v40  ;;  %v5069_v9 = vpop.f32.mrf.mxu2  ;;  %v5757_v40 = vld [vmem:[%s7307_s10 + $0x70] sm:$0xff] }
 0x58e   : > { %v10126_v34 = vadd.f32 %v5289_v6, %v5069_v9 }
 0x592   : > { %v10124_v29 = vpop.f32.mrf.mxu1 }
 0x593   : > { %v5291_v50 = vpop.f32.mrf.mxu3 }
 0x595   : > { %v5071_v44 = vpop.f32.mrf.mxu2 }
 0x596   : > { %v10130_v15 = vadd.f32 %v5291_v50, %v5071_v44 }
 0x598   : > { %5656 = vmatmul.msk.bf16.gmra.mxu2 %vm346_vm0, %v5773_v0  ;;  %5736 = vmatmul.msk.bf16.gmra.mxu3 %vm346_vm0, %v5757_v40 }
 0x59a   : > { %v10128_v55 = vpop.f32.mrf.mxu1 }
 0x59b   : > { %11041 = vst [vmem:[#allocation7_spill] sm:$0xff] %v10128_v55  ;;  %v5294_v59 = vpop.f32.mrf.mxu3 }
 0x59d   : > { %5576 = vmatmul.msk.bf16.gmra.mxu1 %vm4446_vm12, %v4424_v61  ;;  %v5074_v12 = vpop.f32.mrf.mxu2 }
 0x59e   : > { %v10139_v21 = vadd.f32 %v5294_v59, %v5074_v12 }
 0x5a2   : > { %v10137_v63 = vpop.f32.mrf.mxu1 }
 0x5a3   : > { %v5296_v19 = vpop.f32.mrf.mxu3 }
 0x5a5   : > { %v5076_v25 = vpop.f32.mrf.mxu2 }
 0x5a6   : > { %v10143_v26 = vadd.f32 %v5296_v19, %v5076_v25 }
 0x5a8   : > { %5657 = vmatmul.msk.bf16.gmra.mxu2 %vm346_vm0, %v5774_v20  ;;  %5737 = vmatmul.msk.bf16.gmra.mxu3 %vm346_vm0, %v5758_v14  ;;  %v4659_v20 = vmul.f32 %v9959_v41, %v9959_v41  ;;  %v4658_v14 = vmul.f32 %v9944_v56, %v9944_v56 }
 0x5aa   : > { %v10141_v51 = vpop.f32.mrf.mxu1 }
 0x5ab   : > { %v5299_v54 = vpop.f32.mrf.mxu3 }
 0x5ad   : > { %5577 = vmatmul.msk.bf16.gmra.mxu1 %vm4446_vm12, %v4425_v10  ;;  %v5079_v4 = vpop.f32.mrf.mxu2 }
 0x5ae   : > { %v10152_v13 = vadd.f32 %v5299_v54, %v5079_v4  ;;  %v4589_v4 = vsel %vm346_vm0, %v9959_v41, 0.0  ;;  %v4660_v54 = vmul.f32 %v9977_v57, %v9977_v57 }
 0x5b2   : > { %v10150_v1 = vpop.f32.mrf.mxu1 }
 0x5b3   : > { %v5301_v24 = vpop.f32.mrf.mxu3 }
 0x5b5   : > { %v5081_v33 = vpop.f32.mrf.mxu2 }
 0x5b6   : > { %v10156_v38 = vadd.f32 %v5301_v24, %v5081_v33  ;;  %v4588_v33 = vsel %vm346_vm0, %v9944_v56, 0.0  ;;  %v4691_v24 = vsel %vm346_vm0, %v4659_v20, 0.0  ;;  %v4663_v20 = vmul.f32 %v10040_v28, %v10040_v28 }
 0x5ba   : > { %v10154_v61 = vpop.f32.mrf.mxu1 }
 0x5bb   : > { %11042 = vst [vmem:[#allocation13_spill] sm:$0xff] %v10154_v61  ;;  %v5304_v37 = vpop.f32.mrf.mxu3 }
 0x5bd   : > { %v5084_v8 = vpop.f32.mrf.mxu2 }
 0x5be   : > { %v10160_v52 = vadd.f32 %v5304_v37, %v5084_v8  ;;  %v4591_v8 = vsel %vm346_vm0, %v9977_v57, 0.0  ;;  %v4661_v37 = vmul.f32 %v10002_v62, %v10002_v62 }
 0x5c2   : > { %v10158_v31 = vpop.f32.mrf.mxu1 }
 0x5c3   : > { %v5306_v16 = vpop.f32.mrf.mxu3 }
 0x5c5   : > { %v5086_v58 = vpop.f32.mrf.mxu2 }
 0x5c6   : > { %v10164_v47 = vadd.f32 %v5306_v16, %v5086_v58  ;;  %v4590_v58 = vadd.f32 %v4589_v4, %v4588_v33  ;;  %v4690_v16 = vsel %vm346_vm0, %v4658_v14, 0.0  ;;  %v4597_v33 = vsel %vm346_vm0, %v10040_v28, 0.0 }
 0x5ca   : > { %v10162_v46 = vpop.f32.mrf.mxu1 }
 0x5cb   : > { %v5309_v18 = vpop.f32.mrf.mxu3 }
 0x5cd   : > { %v5089_v35 = vpop.f32.mrf.mxu2 }
 0x5ce   : > { %v10168_v32 = vadd.f32 %v5309_v18, %v5089_v35  ;;  %v4693_v35 = vsel %vm346_vm0, %v4660_v54, 0.0  ;;  %v4593_v18 = vsel %vm346_vm0, %v10002_v62, 0.0 }
 0x5d2   : > { %v10166_v10 = vpop.f32.mrf.mxu1 }
 0x5d3   : > { %v5311_v42 = vpop.f32.mrf.mxu3 }
 0x5d5   : > { %v5091_v49 = vpop.f32.mrf.mxu2 }
 0x5d6   : > { %v10172_v9 = vadd.f32 %v5311_v42, %v5091_v49  ;;  %v4662_v49 = vmul.f32 %v10022_v48, %v10022_v48  ;;  %v4592_v42 = vadd.f32 %v4591_v8, %v4590_v58 }
 0x5d8   : > { %v4594_v4 = vadd.f32 %v4593_v18, %v4592_v42  ;;  %v4697_v54 = vsel %vm346_vm0, %v4662_v49, 0.0  ;;  %v4601_v42 = vsel %vm346_vm0, %v10072_v27, 0.0 }
 0x5da   : > { %v10170_v7 = vpop.f32.mrf.mxu1 }
 0x5db   : > { %11043 = vst [vmem:[#allocation29_spill] sm:$0xff] %v10170_v7  ;;  %v5314_v50 = vpop.f32.mrf.mxu3 }
 0x5dd   : > { %v5094_v44 = vpop.f32.mrf.mxu2 }
 0x5de   : > { %v10176_v0 = vadd.f32 %v5314_v50, %v5094_v44  ;;  %v4692_v44 = vadd.f32 %v4691_v24, %v4690_v16  ;;  %v4664_v24 = vmul.f32 %v10056_v60, %v10056_v60  ;;  %v4599_v16 = vsel %vm346_vm0, %v10056_v60, 0.0 }
 0x5e0   : > { %v4694_v14 = vadd.f32 %v4693_v35, %v4692_v44  ;;  %v4701_v49 = vsel %vm346_vm0, %v4664_v24, 0.0  ;;  %v4666_v44 = vmul.f32 %v10086_v17, %v10086_v17 }
 0x5e2   : > { %v10174_v6 = vpop.f32.mrf.mxu1 }
 0x5e3   : > { %11044 = vst [vmem:[#allocation34_spill] sm:$0xff] %v10174_v6  ;;  %v5316_v59 = vpop.f32.mrf.mxu3 }
 0x5e5   : > { %v5096_v12 = vpop.f32.mrf.mxu2 }
 0x5e6   : > { %v10180_v25 = vadd.f32 %v5316_v59, %v5096_v12  ;;  %v4695_v12 = vsel %vm346_vm0, %v4661_v37, 0.0  ;;  %v4595_v59 = vsel %vm346_vm0, %v10022_v48, 0.0  ;;  %v4699_v37 = vsel %vm346_vm0, %v4663_v20, 0.0 }
 0x5e7   : > { %v4596_v8 = vadd.f32 %v4595_v59, %v4594_v4  ;;  %v4696_v58 = vadd.f32 %v4695_v12, %v4694_v14  ;;  %v4665_v48 = vmul.f32 %v10072_v27, %v10072_v27  ;;  %v4603_v4 = vsel %vm346_vm0, %v10086_v17, 0.0 }
 0x5e8   : > { %v4669_v17 = vmul.f32 %v10124_v29, %v10124_v29 }
 0x5e9   : > { %v4698_v35 = vadd.f32 %v4697_v54, %v4696_v58  ;;  %v4598_v18 = vadd.f32 %v4597_v33, %v4596_v8  ;;  %v4703_v20 = vsel %vm346_vm0, %v4665_v48, 0.0  ;;  %v4667_v54 = vmul.f32 %v10108_v5, %v10108_v5 }
 0x5ea   : > { %v10178_v40 = vpop.f32.mrf.mxu1  ;;  %v4705_v8 = vsel %vm346_vm0, %v4666_v44, 0.0  ;;  %v4605_v58 = vsel %vm346_vm0, %v10108_v5, 0.0 }
 0x5eb   : > { %11045 = vst [vmem:[#allocation42_spill] sm:$0xff] %v10178_v40  ;;  %v4600_v59 = vadd.f32 %v4599_v16, %v4598_v18  ;;  %v4700_v12 = vadd.f32 %v4699_v37, %v4698_v35  ;;  %v4668_v37 = vmul.f32 %v10112_v53, %v10112_v53  ;;  %v4707_v48 = vsel %vm346_vm0, %v4667_v54, 0.0 }
 0x5ec   : > { %v4607_v18 = vsel %vm346_vm0, %v10112_v53, 0.0  ;;  %v4711_v54 = vsel %vm346_vm0, %v4669_v17, 0.0 }
 0x5ed   : > { %v4702_v33 = vadd.f32 %v4701_v49, %v4700_v12  ;;  %v4602_v24 = vadd.f32 %v4601_v42, %v4600_v59  ;;  %v4709_v44 = vsel %vm346_vm0, %v4668_v37, 0.0  ;;  %v4609_v59 = vsel %vm346_vm0, %v10124_v29, 0.0 }
 0x5ee   : > { %v4670_v12 = vmul.f32 %v10128_v55, %v10128_v55 }
 0x5ef   : > { %v4604_v16 = vadd.f32 %v4603_v4, %v4602_v24  ;;  %v4704_v35 = vadd.f32 %v4703_v20, %v4702_v33  ;;  %v4611_v24 = vsel %vm346_vm0, %v10128_v55, 0.0  ;;  %v4673_v55 = vmul.f32 %v10150_v1, %v10150_v1 }
 0x5f1   : > { %v4706_v49 = vadd.f32 %v4705_v8, %v4704_v35  ;;  %v4606_v42 = vadd.f32 %v4605_v58, %v4604_v16  ;;  %v4671_v8 = vmul.f32 %v10137_v63, %v10137_v63  ;;  %v4713_v16 = vsel %vm346_vm0, %v4670_v12, 0.0 }
 0x5f2   : > { %v10182_v19 = vpop.f32.mrf.mxu1  ;;  %v4613_v35 = vsel %vm346_vm0, %v10137_v63, 0.0 }
 0x5f3   : > { %11046 = vst [vmem:[#allocation54_spill] sm:$0xff] %v10182_v19  ;;  %v4708_v4 = vadd.f32 %v4707_v48, %v4706_v49  ;;  %v4608_v20 = vadd.f32 %v4607_v18, %v4606_v42  ;;  %v4672_v48 = vmul.f32 %v10141_v51, %v10141_v51  ;;  %v4715_v17 = vsel %vm346_vm0, %v4671_v8, 0.0 }
 0x5f4   : > { %v4615_v42 = vsel %vm346_vm0, %v10141_v51, 0.0  ;;  %v4719_v8 = vsel %vm346_vm0, %v4673_v55, 0.0 }
 0x5f5   : > { %v4710_v58 = vadd.f32 %v4709_v44, %v4708_v4  ;;  %v4610_v37 = vadd.f32 %v4609_v59, %v4608_v20  ;;  %v4717_v12 = vsel %vm346_vm0, %v4672_v48, 0.0  ;;  %v4617_v4 = vsel %vm346_vm0, %v10150_v1, 0.0 }
 0x5f6   : > { %v4674_v20 = vmul.f32 %v10154_v61, %v10154_v61 }
 0x5f7   : > { %v4712_v18 = vadd.f32 %v4711_v54, %v4710_v58  ;;  %v4612_v49 = vadd.f32 %v4611_v24, %v4610_v37  ;;  %v4619_v37 = vsel %vm346_vm0, %v10154_v61, 0.0  ;;  %v4677_v61 = vmul.f32 %v10166_v10, %v10166_v10 }
 0x5f9   : > { %v4714_v44 = vadd.f32 %v4713_v16, %v4712_v18  ;;  %v4614_v59 = vadd.f32 %v4613_v35, %v4612_v49  ;;  %v4675_v16 = vmul.f32 %v10158_v31, %v10158_v31  ;;  %v4721_v18 = vsel %vm346_vm0, %v4674_v20, 0.0 }
 0x5fa   : > { %v10205_v50 = vpop.f32.mrf.mxu1  ;;  %v4621_v49 = vsel %vm346_vm0, %v10158_v31, 0.0 }
 0x5fb   : > { %11047 = vst [vmem:[#allocation6_spill] sm:$0xff] %v10205_v50  ;;  %v4716_v54 = vadd.f32 %v4715_v17, %v4714_v44  ;;  %v4616_v24 = vadd.f32 %v4615_v42, %v4614_v59  ;;  %v4676_v17 = vmul.f32 %v10162_v46, %v10162_v46  ;;  %v4723_v55 = vsel %vm346_vm0, %v4675_v16, 0.0 }
 0x5fc   : > { %v4623_v59 = vsel %vm346_vm0, %v10162_v46, 0.0  ;;  %v4727_v16 = vsel %vm346_vm0, %v4677_v61, 0.0 }
 0x5fd   : > { %v4718_v35 = vadd.f32 %v4717_v12, %v4716_v54  ;;  %v4618_v48 = vadd.f32 %v4617_v4, %v4616_v24  ;;  %v4725_v20 = vsel %vm346_vm0, %v4676_v17, 0.0  ;;  %v4625_v54 = vsel %vm346_vm0, %v10166_v10, 0.0 }
 0x5fe   : > { %v4678_v24 = vmul.f32 %v10170_v7, %v10170_v7 }
 0x5ff   : > { %v4720_v42 = vadd.f32 %v4719_v8, %v4718_v35  ;;  %v4620_v44 = vadd.f32 %v4619_v37, %v4618_v48  ;;  %v4627_v48 = vsel %vm346_vm0, %v10170_v7, 0.0  ;;  %v4681_v7 = vmul.f32 %v10182_v19, %v10182_v19 }
 0x601   : > { %v4722_v12 = vadd.f32 %v4721_v18, %v4720_v42  ;;  %v4622_v4 = vadd.f32 %v4621_v49, %v4620_v44  ;;  %v4679_v18 = vmul.f32 %v10174_v6, %v10174_v6  ;;  %v4729_v42 = vsel %vm346_vm0, %v4678_v24, 0.0 }
 0x602   : > { %v10227_v14 = vpop.f32.mrf.mxu1  ;;  %v4629_v44 = vsel %vm346_vm0, %v10174_v6, 0.0  ;;  %v11055_v6 = vld [vmem:[#allocation5_spill] sm:$0xff] }
 0x603   : > { %11048 = vst [vmem:[#allocation21_spill] sm:$0xff] %v10227_v14  ;;  %v4724_v8 = vadd.f32 %v4723_v55, %v4722_v12  ;;  %v4624_v37 = vadd.f32 %v4623_v59, %v4622_v4  ;;  %v4680_v55 = vmul.f32 %v10178_v40, %v10178_v40  ;;  %v4731_v61 = vsel %vm346_vm0, %v4679_v18, 0.0 }
 0x604   : > { %v4631_v4 = vsel %vm346_vm0, %v10178_v40, 0.0  ;;  %v4735_v18 = vsel %vm346_vm0, %v4681_v7, 0.0 }
 0x605   : > { %v4726_v49 = vadd.f32 %v4725_v20, %v4724_v8  ;;  %v4626_v17 = vadd.f32 %v4625_v54, %v4624_v37  ;;  %v4733_v24 = vsel %vm346_vm0, %v4680_v55, 0.0  ;;  %v4633_v8 = vsel %vm346_vm0, %v10182_v19, 0.0 }
 0x606   : > { %v4682_v37 = vmul.f32 %v10205_v50, %v10205_v50 }
 0x607   : > { %v4728_v59 = vadd.f32 %v4727_v16, %v4726_v49  ;;  %v4628_v12 = vadd.f32 %v4627_v48, %v4626_v17  ;;  %v4635_v17 = vsel %vm346_vm0, %v10205_v50, 0.0 }
 0x609   : > { %v4730_v20 = vadd.f32 %v4729_v42, %v4728_v59  ;;  %v4630_v54 = vadd.f32 %v4629_v44, %v4628_v12  ;;  %v4683_v42 = vmul.f32 %v10227_v14, %v10227_v14  ;;  %v4737_v59 = vsel %vm346_vm0, %v4682_v37, 0.0 }
 0x60a   : > { %v10249_v33 = vpop.f32.mrf.mxu1  ;;  %v4637_v12 = vsel %vm346_vm0, %v10227_v14, 0.0 }
 0x60b   : > { %11049 = vst [vmem:[#allocation27_spill] sm:$0xff] %v10249_v33  ;;  %v4732_v16 = vadd.f32 %v4731_v61, %v4730_v20  ;;  %v4632_v48 = vadd.f32 %v4631_v4, %v4630_v54  ;;  %v4684_v61 = vmul.f32 %v10249_v33, %v10249_v33  ;;  %v4739_v7 = vsel %vm346_vm0, %v4683_v42, 0.0 }
 0x60c   : > { %v4639_v54 = vsel %vm346_vm0, %v10249_v33, 0.0 }
 0x60d   : > { %v4734_v44 = vadd.f32 %v4733_v24, %v4732_v16  ;;  %v4634_v55 = vadd.f32 %v4633_v8, %v4632_v48  ;;  %v4741_v37 = vsel %vm346_vm0, %v4684_v61, 0.0 }
 0x60f   : > { %v4736_v4 = vadd.f32 %v4735_v18, %v4734_v44  ;;  %v4636_v20 = vadd.f32 %v4635_v17, %v4634_v55 }
 0x611   : > { %v4738_v24 = vadd.f32 %v4737_v59, %v4736_v4  ;;  %v4638_v8 = vadd.f32 %v4637_v12, %v4636_v20 }
 0x612   : > { %v10271_v58 = vpop.f32.mrf.mxu1 }
 0x613   : > { %11050 = vst [vmem:[#allocation33_spill] sm:$0xff] %v10271_v58  ;;  %v4685_v50 = vmul.f32 %v10271_v58, %v10271_v58  ;;  %v4641_v16 = vsel %vm346_vm0, %v10271_v58, 0.0  ;;  %v4740_v18 = vadd.f32 %v4739_v7, %v4738_v24  ;;  %v4640_v17 = vadd.f32 %v4639_v54, %v4638_v8  ;;  %v5099_v8 = vpop.f32.mrf.mxu2 }
 0x615   : > { %v4743_v42 = vsel %vm346_vm0, %v4685_v50, 0.0  ;;  %v4742_v12 = vadd.f32 %v4741_v37, %v4740_v18  ;;  %v4642_v61 = vadd.f32 %v4641_v16, %v4640_v17  ;;  %v5319_v50 = vpop.f32.mrf.mxu3 }
 0x617   : > { %v4744_v54 = vadd.f32 %v4743_v42, %v4742_v12 }
 0x61a   : > { %v10293_v35 = vpop.f32.mrf.mxu1 }
 0x61b   : > { %11051 = vst [vmem:[#allocation47_spill] sm:$0xff] %v10293_v35  ;;  %v4686_v48 = vmul.f32 %v10293_v35, %v10293_v35  ;;  %v4643_v55 = vsel %vm346_vm0, %v10293_v35, 0.0 }
 0x61c   : > { %v4644_v24 = vadd.f32 %v4643_v55, %v4642_v61 }
 0x61d   : > { %v4745_v4 = vsel %vm346_vm0, %v4686_v48, 0.0 }
 0x61e   : > { %v4746_v33 = vadd.f32 %v4745_v4, %v4744_v54  ;;  %v5101_v54 = vpop.f32.mrf.mxu2 }
 0x622   : > { %v10315_v49 = vpop.f32.mrf.mxu1 }
 0x623   : > { %11052 = vst [vmem:[#allocation51_spill] sm:$0xff] %v10315_v49  ;;  %v4687_v59 = vmul.f32 %v10315_v49, %v10315_v49  ;;  %v4645_v20 = vsel %vm346_vm0, %v10315_v49, 0.0 }
 0x624   : > { %v4646_v37 = vadd.f32 %v4645_v20, %v4644_v24 }
 0x625   : > { %v4747_v58 = vsel %vm346_vm0, %v4687_v59, 0.0 }
 0x626   : > { %v4748_v48 = vadd.f32 %v4747_v58, %v4746_v33 }
 0x62a   : > { %v10337_v44 = vpop.f32.mrf.mxu1 }
 0x62b   : > { %11053 = vst [vmem:[#allocation12_spill] sm:$0xff] %v10337_v44  ;;  %v4688_v7 = vmul.f32 %v10337_v44, %v10337_v44  ;;  %v4647_v35 = vsel %vm346_vm0, %v10337_v44, 0.0 }
 0x62c   : > { %v4648_v18 = vadd.f32 %v4647_v35, %v4646_v37 }
 0x62d   : > { %v4749_v16 = vsel %vm346_vm0, %v4688_v7, 0.0  ;;  %v5321_v7 = vpop.f32.mrf.mxu3 }
 0x62e   : > { %v4750_v55 = vadd.f32 %v4749_v16, %v4748_v48  ;;  %v5104_v16 = vpop.f32.mrf.mxu2 }
 0x632   : > { %v10353_v17 = vpop.f32.mrf.mxu1 }
 0x633   : > { %11054 = vst [vmem:[#allocation18_spill] sm:$0xff] %v10353_v17  ;;  %v4649_v49 = vsel %vm346_vm0, %v10353_v17, 0.0  ;;  %v4689_v42 = vmul.f32 %v10353_v17, %v10353_v17 }
 0x634   : > { %v4650_v12 = vadd.f32 %v4649_v49, %v4648_v18 }
 0x635   : > { %v4751_v59 = vsel %vm346_vm0, %v4689_v42, 0.0  ;;  %v5324_v48 = vpop.f32.mrf.mxu3 }
 0x636   : > { %v4651_v61 = vrot.slane %v4650_v12, 4  ;;  %v4752_v44 = vadd.f32 %v4751_v59, %v4750_v55  ;;  %v5106_v59 = vpop.f32.mrf.mxu2 }
 0x638   : > { %v4652_v4 = vadd.f32 %v4651_v61, %v4650_v12  ;;  %v4753_v20 = vrot.slane %v4752_v44, 4 }
 0x63a   : > { %v4653_v33 = vrot.slane %v4652_v4, 2  ;;  %v4754_v58 = vadd.f32 %v4753_v20, %v4752_v44 }
 0x63c   : > { %v4654_v35 = vadd.f32 %v4653_v33, %v4652_v4  ;;  %v4755_v24 = vrot.slane %v4754_v58, 2 }
 0x63d   : > { %v5326_v61 = vpop.f32.mrf.mxu3 }
 0x63e   : > { %v4655_v37 = vrot.slane %v4654_v35, 1  ;;  %v4756_v14 = vadd.f32 %v4755_v24, %v4754_v58  ;;  %v10366_v33 = vpop.f32.mrf.mxu2 }
 0x63f   : > { %11056 = vst [vmem:[#allocation24_spill] sm:$0xff] %v10366_v33 }
 0x640   : > { %v4656_v19 = vadd.f32 %v4655_v37, %v4654_v35  ;;  %v4757_v40 = vrot.slane %v4756_v14, 1 }
 0x642   : > { %v10361_v17 = vmul.f32 %v4656_v19, %v11055_v6  ;;  %v4758_v49 = vadd.f32 %v4757_v40, %v4756_v14 }
 0x644   : > { %v4759_v18 = vmul.f32 %v4758_v49, %v11055_v6  ;;  %v4760_v42 = vmul.f32 %v10361_v17, %v10361_v17  ;;  %v10373_v6 = vld [vmem:[%s10812_s6] ss:$0 sm:$0xff] }
 0x645   : > { %v10368_v19 = vpop.f32.mrf.mxu3  ;;  %11058 = vst [vmem:[#allocation43_spill] sm:$0xff] %v10373_v6  ;;  %v10377_v58 = vadd.f32 %v10373_v6, %v9969_v39  ;;  %v10381_v35 = vadd.f32 %v10373_v6, %v9979_v45  ;;  %v10385_v24 = vadd.f32 %v10373_v6, %v10006_v30  ;;  %v10389_v37 = vadd.f32 %v10373_v6, %v10024_v23 }
 0x646   : > { %v4761_v55 = vsub.f32 %v4759_v18, %v4760_v42  ;;  %11057 = vst [vmem:[#allocation39_spill] sm:$0xff] %v10368_v19  ;;  %v10393_v49 = vadd.f32 %v10373_v6, %v10044_v43  ;;  %v10397_v39 = vadd.f32 %v10373_v6, %v10058_v22  ;;  %v10401_v45 = vadd.f32 %v10373_v6, %v10076_v11 }
 0x647   : > { %v10405_v30 = vadd.f32 %v10373_v6, %v10090_v2  ;;  %v10409_v23 = vadd.f32 %v10373_v6, %v10110_v36  ;;  %v10413_v43 = vadd.f32 %v10373_v6, %v10114_v3  ;;  %v10417_v22 = vadd.f32 %v10373_v6, %v10126_v34 }
 0x648   : > { %v4762_v12 = vmax.f32 %v4761_v55, 0.0  ;;  %v10421_v11 = vadd.f32 %v10373_v6, %v10130_v15  ;;  %v5320_v42 = vadd.f32 %v5319_v50, %v5099_v8  ;;  %v5322_v2 = vadd.f32 %v5321_v7, %v5101_v54 }
 0x649   : > { %v10425_v55 = vadd.f32 %v10373_v6, %v10139_v21  ;;  %v10429_v36 = vadd.f32 %v10373_v6, %v10143_v26  ;;  %v5325_v3 = vadd.f32 %v5324_v48, %v5104_v16  ;;  %v10433_v34 = vadd.f32 %v10373_v6, %v10152_v13  ;;  %v10447_v26 = vpop.f32.mrf.mxu2 }
 0x64a   : > { %v4795_v44 = vadd.f32 1e-05, %v4762_v12  ;;  %v5327_v12 = vadd.f32 %v5326_v61, %v5106_v59  ;;  %v10437_v15 = vadd.f32 %v10373_v6, %v10156_v38  ;;  %v10441_v8 = vadd.f32 %v10373_v6, %v10160_v52  ;;  %11062 = vst [vmem:[#allocation30_spill] sm:$0xff] %v10447_v26  ;;  %v11072_v61 = vld [vmem:[#allocation41_spill] sm:$0xff] }
 0x64b   : > { %v10445_v21 = vadd.f32 %v10373_v6, %v10164_v47  ;;  %v10453_v13 = vadd.f32 %v10373_v6, %v10168_v32  ;;  %v10457_v38 = vadd.f32 %v10373_v6, %v10172_v9  ;;  %v10461_v52 = vadd.f32 %v10373_v6, %v10176_v0 }
 0x64c   : > { %7168 = vrsqrt.f32 %v4795_v44  ;;  %11059 = vst [vmem:[#allocation55_spill] sm:$0xff] %v10437_v15  ;;  %v10465_v47 = vadd.f32 %v10373_v6, %v10180_v25  ;;  %v10468_v7 = vadd.f32 %v10373_v6, %v5320_v42  ;;  %v10471_v32 = vadd.f32 %v10373_v6, %v5322_v2  ;;  %v11074_v42 = vld [vmem:[#allocation7_spill] sm:$0xff] }
 0x64d   : > { %11060 = vst [vmem:[#allocation9_spill] sm:$0xff] %v10441_v8  ;;  %v10449_v50 = vpop.f32.mrf.mxu3  ;;  %v10474_v16 = vadd.f32 %v10373_v6, %v5325_v3  ;;  %v10477_v9 = vadd.f32 %v10373_v6, %v5327_v12  ;;  %v4763_v0 = vsub.f32 %v9944_v56, %v10361_v17  ;;  %vm4802_vm7 = vweird.f32 %v4795_v44 }
 0x64e   : > { %11061 = vst [vmem:[#allocation15_spill] sm:$0xff] %v10445_v21  ;;  %v4764_v25 = vsub.f32 %v9959_v41, %v10361_v17  ;;  %v4765_v48 = vsub.f32 %v9977_v57, %v10361_v17  ;;  %v4766_v59 = vsub.f32 %v10002_v62, %v10361_v17  ;;  %v4769_v56 = vsub.f32 %v10056_v60, %v10361_v17  ;;  %v11073_v57 = vld [vmem:[#allocation52_spill] sm:$0xff] }
 0x64f   : > { %11063 = vst [vmem:[#allocation36_spill] sm:$0xff] %v10449_v50  ;;  %v4772_v62 = vsub.f32 %v10108_v5, %v10361_v17  ;;  %v4775_v60 = vsub.f32 %v11074_v42, %v10361_v17  ;;  %v4778_v2 = vsub.f32 %v10150_v1, %v10361_v17  ;;  %v11075_v5 = vld [vmem:[#allocation13_spill] sm:$0xff]  ;;  %v11077_v42 = vld [vmem:[#allocation34_spill] sm:$0xff] }
 0x650   : > { %11064 = vst [vmem:[#allocation44_spill] sm:$0xff] %v10453_v13  ;;  %v4779_v3 = vsub.f32 %v11075_v5, %v10361_v17 }
 0x651   : > { %11065 = vst [vmem:[#allocation56_spill] sm:$0xff] %v10457_v38 }
 0x652   : > { %v7169_v4 = vpop.eup %7168  ;;  %11066 = vst [vmem:[#allocation8_spill] sm:$0xff] %v10461_v52 }
 0x653   : > { %v4797_v20 = vmul.f32 %v7169_v4, %v4795_v44  ;;  %vm4803_vm6 = vweird.f32 %v7169_v4  ;;  %11067 = vst [vmem:[#allocation23_spill] sm:$0xff] %v10465_v47  ;;  %v4770_v44 = vsub.f32 %v10072_v27, %v10361_v17  ;;  %v4776_v27 = vsub.f32 %v10137_v63, %v10361_v17  ;;  %v11081_v63 = vld [vmem:[#allocation54_spill] sm:$0xff] }
 0x654   : > { %11068 = vst [vmem:[#allocation28_spill] sm:$0xff] %v10468_v7  ;;  %vm4804_vm9 = vmor %vm4802_vm7, %vm4803_vm6 }
 0x655   : > { %v4798_v40 = vmul.f32 %v7169_v4, %v4797_v20  ;;  %11069 = vst [vmem:[#allocation35_spill] sm:$0xff] %v10471_v32  ;;  %v4767_v20 = vsub.f32 %v11072_v61, %v10361_v17  ;;  %v11076_v61 = vld [vmem:[#allocation29_spill] sm:$0xff]  ;;  %v11084_v32 = vld [vmem:[#allocation27_spill] sm:$0xff] }
 0x656   : > { %11070 = vst [vmem:[#allocation49_spill] sm:$0xff] %v10474_v16 }
 0x657   : > { %v4799_v14 = vmul.f32 0.5, %v4798_v40  ;;  %11071 = vst [vmem:[#allocation53_spill] sm:$0xff] %v10477_v9  ;;  %v4768_v40 = vsub.f32 %v10040_v28, %v10361_v17  ;;  %v4774_v28 = vsub.f32 %v10124_v29, %v10361_v17  ;;  %v10532_v9 = vpop.f32.mrf.mxu2 }
 0x658   : > { %11079 = vst [vmem:[#allocation14_spill] sm:$0xff] %v10532_v9 }
 0x659   : > { %v4800_v18 = vsub.f32 1.5, %v4799_v14  ;;  %v4771_v14 = vsub.f32 %v11073_v57, %v10361_v17  ;;  %v11083_v57 = vld [vmem:[#allocation21_spill] sm:$0xff] }
 0x65b   : > { %v4801_v54 = vmul.f32 %v7169_v4, %v4800_v18  ;;  %v4773_v18 = vsub.f32 %v10112_v53, %v10361_v17 }
 0x65d   : > { %v10495_v41 = vsel %vm4804_vm9, %v7169_v4, %v4801_v54  ;;  %v4777_v4 = vsub.f32 %v10141_v51, %v10361_v17  ;;  %v10534_v54 = vpop.f32.mrf.mxu3 }
 0x65e   : > { %v4806_v29 = vmul.f32 %v10495_v41, %v4763_v0  ;;  %v4807_v12 = vmul.f32 %v10495_v41, %v4764_v25  ;;  %v4808_v51 = vmul.f32 %v10495_v41, %v4765_v48  ;;  %v4809_v1 = vmul.f32 %v10495_v41, %v4766_v59  ;;  %v11078_v0 = vld [vmem:[#allocation42_spill] sm:$0xff]  ;;  %11080 = vst [vmem:[#allocation20_spill] sm:$0xff] %v10534_v54  ;;  %v11089_v54 = vld [vmem:[#allocation12_spill] sm:$0xff] }
 0x65f   : > { %v4810_v25 = vmul.f32 %v10495_v41, %v4767_v20  ;;  %v11082_v59 = vld [vmem:[#allocation6_spill] sm:$0xff]  ;;  %v4811_v5 = vmul.f32 %v10495_v41, %v4768_v40  ;;  %v4812_v20 = vmul.f32 %v10495_v41, %v4769_v56  ;;  %v4813_v48 = vmul.f32 %v10495_v41, %v4770_v44 }
 0x660   : > { %v4838_v7 = vmul.f32 0.01, %v4806_v29  ;;  %v4839_v9 = vmul.f32 0.01, %v4807_v12  ;;  %v4840_v26 = vmul.f32 0.01, %v4808_v51  ;;  %v4814_v47 = vmul.f32 %v10495_v41, %v4771_v14 }
 0x661   : > { %v4841_v16 = vmul.f32 0.01, %v4809_v1  ;;  %v4842_v6 = vmul.f32 0.01, %v4810_v25  ;;  %v4815_v56 = vmul.f32 %v10495_v41, %v4772_v62  ;;  %v4843_v33 = vmul.f32 0.01, %v4811_v5 }
 0x662   : > { %v4816_v13 = vmul.f32 %v10495_v41, %v4773_v18  ;;  %v4844_v21 = vmul.f32 0.01, %v4812_v20  ;;  %v4870_v14 = vmax.f32 %v4806_v29, %v4838_v7  ;;  %v4871_v8 = vmax.f32 %v4807_v12, %v4839_v9 }
 0x663   : > { %v4817_v52 = vmul.f32 %v10495_v41, %v4774_v28  ;;  %v4845_v40 = vmul.f32 0.01, %v4813_v48  ;;  %v4872_v15 = vmax.f32 %v4808_v51, %v4840_v26  ;;  %v4873_v19 = vmax.f32 %v4809_v1, %v4841_v16 }
 0x664   : > { %v10563_v62 = vmul.f32 %v10495_v41, %v4775_v60  ;;  %v10566_v53 = vmul.f32 %v10495_v41, %v4776_v27  ;;  %v4846_v50 = vmul.f32 0.01, %v4814_v47  ;;  %v4874_v38 = vmax.f32 %v4810_v25, %v4842_v6  ;;  %v10581_v60 = vpop.f32.mrf.mxu2 }
 0x665   : > { %v10569_v44 = vmul.f32 %v10495_v41, %v4777_v4  ;;  %v10572_v7 = vmul.f32 %v10495_v41, %v4778_v2  ;;  %v4847_v9 = vmul.f32 0.01, %v4815_v56  ;;  %v4875_v18 = vmax.f32 %v4811_v5, %v4843_v33  ;;  %v10583_v27 = vpop.f32.mrf.mxu3 }
 0x666   : > { %v4848_v26 = vmul.f32 0.01, %v4816_v13  ;;  %v4876_v16 = vmax.f32 %v4812_v20, %v4844_v21  ;;  %v5380_v28 = vadd.f32 %v10377_v58, %v4870_v14  ;;  %v5381_v6 = vadd.f32 %v10381_v35, %v4871_v8 }
 0x667   : > { %v4849_v4 = vmul.f32 0.01, %v4817_v52  ;;  %v4877_v2 = vmax.f32 %v4813_v48, %v4845_v40  ;;  %v5382_v33 = vadd.f32 %v10385_v24, %v4872_v15  ;;  %v5383_v29 = vadd.f32 %v10389_v37, %v4873_v19 }
 0x668   : > { %v10588_v12 = vmul.f32 %v10495_v41, %v4779_v3  ;;  %v4850_v21 = vmul.f32 0.01, %v10563_v62  ;;  %v4878_v58 = vmax.f32 %v4814_v47, %v4846_v50  ;;  %v5384_v35 = vadd.f32 %v10393_v49, %v4874_v38  ;;  %5412 = vst.msk [vmem:[%s10577_s14] sm:$0xff] %vm346_vm0, %v5380_v28 }
 0x669   : > { %v11090_v8 = vsub.f32 %v10158_v31, %v10361_v17  ;;  %v4851_v24 = vmul.f32 0.01, %v10566_v53  ;;  %v4879_v19 = vmax.f32 %v4815_v56, %v4847_v9  ;;  %v5385_v37 = vadd.f32 %v10397_v39, %v4875_v18  ;;  %5413 = vst.msk [vmem:[%s10577_s14 + $0x8] sm:$0xff] %vm346_vm0, %v5381_v6 }
 0x66a   : > { %v11091_v49 = vsub.f32 %v10162_v46, %v10361_v17  ;;  %v4852_v50 = vmul.f32 0.01, %v10569_v44  ;;  %v4880_v31 = vmax.f32 %v4816_v13, %v4848_v26  ;;  %v5386_v38 = vadd.f32 %v10401_v45, %v4876_v16  ;;  %5414 = vst.msk [vmem:[%s10577_s14 + $0x10] sm:$0xff] %vm346_vm0, %v5382_v33 }
 0x66b   : > { %v10598_v51 = vmul.f32 %v10495_v41, %v11090_v8  ;;  %v11092_v39 = vsub.f32 %v10166_v10, %v10361_v17  ;;  %v4853_v3 = vmul.f32 0.01, %v10572_v7  ;;  %v4881_v46 = vmax.f32 %v4817_v52, %v4849_v4  ;;  %5415 = vst.msk [vmem:[%s10577_s14 + $0x18] sm:$0xff] %vm346_vm0, %v5383_v29 }
 0x66c   : > { %v10608_v15 = vmul.f32 %v10495_v41, %v11091_v49  ;;  %v5387_v1 = vadd.f32 %v10405_v30, %v4877_v2  ;;  %v11093_v45 = vsub.f32 %v11076_v61, %v10361_v17  ;;  %v4854_v5 = vmul.f32 0.01, %v10588_v12  ;;  %5416 = vst.msk [vmem:[%s10577_s14 + $0x20] sm:$0xff] %vm346_vm0, %v5384_v35  ;;  %v11101_v35 = vld [vmem:[#allocation33_spill] sm:$0xff] }
 0x66d   : > { %v10618_v47 = vmul.f32 %v10495_v41, %v11092_v39  ;;  %v4882_v10 = vmax.f32 %v10563_v62, %v4850_v21  ;;  %v5388_v25 = vadd.f32 %v10409_v23, %v4878_v58  ;;  %v11094_v30 = vsub.f32 %v11077_v42, %v10361_v17  ;;  %5417 = vst.msk [vmem:[%s10577_s14 + $0x28] sm:$0xff] %vm346_vm0, %v5385_v37  ;;  %v11100_v21 = vld [vmem:[#allocation55_spill] sm:$0xff] }
 0x66e   : > { %v10628_v13 = vmul.f32 %v10495_v41, %v11093_v45  ;;  %v4855_v61 = vmul.f32 0.01, %v10598_v51  ;;  %v4883_v48 = vmax.f32 %v10566_v53, %v4851_v24  ;;  %v5389_v20 = vadd.f32 %v10413_v43, %v4879_v19  ;;  %5418 = vst.msk [vmem:[%s10577_s14 + $0x30] sm:$0xff] %vm346_vm0, %v5386_v38  ;;  %v11103_v24 = vld [vmem:[#allocation9_spill] sm:$0xff]  ;;  %v11104_v37 = vld [vmem:[#allocation47_spill] sm:$0xff] }
 0x66f   : > { %v10639_v52 = vmul.f32 %v10495_v41, %v11094_v30  ;;  %v11095_v23 = vsub.f32 %v11078_v0, %v10361_v17  ;;  %v4856_v42 = vmul.f32 0.01, %v10608_v15  ;;  %v4884_v56 = vmax.f32 %v10569_v44, %v4852_v50  ;;  %5419 = vst.msk [vmem:[%s10577_s14 + $0x38] sm:$0xff] %vm346_vm0, %v5387_v1  ;;  %v11106_v38 = vld [vmem:[#allocation15_spill] sm:$0xff]  ;;  %v11111_v30 = vld [vmem:[#allocation18_spill] sm:$0xff] }
 0x670   : > { %v5390_v14 = vadd.f32 %v10417_v22, %v4880_v31  ;;  %v11096_v43 = vsub.f32 %v11081_v63, %v10361_v17  ;;  %v4857_v0 = vmul.f32 0.01, %v10618_v47  ;;  %v4885_v62 = vmax.f32 %v10572_v7, %v4853_v3  ;;  %5420 = vst.msk [vmem:[%s10577_s14 + $0x40] sm:$0xff] %vm346_vm0, %v5388_v25  ;;  %v10679_v7 = vpop.f32.mrf.mxu2 }
 0x671   : > { %v10650_v40 = vmul.f32 %v10495_v41, %v11095_v23  ;;  %v5391_v9 = vadd.f32 %v10421_v11, %v4881_v46  ;;  %v11097_v22 = vsub.f32 %v11082_v59, %v10361_v17  ;;  %v4858_v63 = vmul.f32 0.01, %v10628_v13  ;;  %v5339_v11 = vpop.f32.mrf.mxu3  ;;  %5421 = vst.msk [vmem:[%s10577_s14 + $0x48] sm:$0xff] %vm346_vm0, %v5389_v20  ;;  %v11113_v20 = vld [vmem:[#allocation56_spill] sm:$0xff] }
 0x672   : > { %v10661_v53 = vmul.f32 %v10495_v41, %v11096_v43  ;;  %v4886_v18 = vmax.f32 %v10588_v12, %v4854_v5  ;;  %v5392_v26 = vadd.f32 %v10425_v55, %v4882_v10  ;;  %v11098_v16 = vsub.f32 %v11083_v57, %v10361_v17  ;;  %5422 = vst.msk [vmem:[%s10577_s14 + $0x50] sm:$0xff] %vm346_vm0, %v5390_v14  ;;  %v11116_v43 = vld [vmem:[#allocation8_spill] sm:$0xff] }
 0x673   : > { %v10672_v44 = vmul.f32 %v10495_v41, %v11097_v22  ;;  %v4859_v28 = vmul.f32 0.01, %v10639_v52  ;;  %v4887_v6 = vmax.f32 %v10598_v51, %v4855_v61  ;;  %v5393_v4 = vadd.f32 %v10429_v36, %v4883_v48  ;;  %5423 = vst.msk [vmem:[%s10577_s14 + $0x58] sm:$0xff] %vm346_vm0, %v5391_v9  ;;  %v11118_v9 = vld [vmem:[#allocation30_spill] sm:$0xff]  ;;  %v11119_v22 = vld [vmem:[#allocation36_spill] sm:$0xff] }
 0x674   : > { %v10685_v59 = vmul.f32 %v10495_v41, %v11098_v16  ;;  %v11099_v55 = vsub.f32 %v11084_v32, %v10361_v17  ;;  %v4860_v57 = vmul.f32 0.01, %v10650_v40  ;;  %v4888_v33 = vmax.f32 %v10608_v15, %v4856_v42  ;;  %5424 = vst.msk [vmem:[%s10577_s14 + $0x60] sm:$0xff] %vm346_vm0, %v5392_v26  ;;  %v11114_v42 = vld [vmem:[#allocation24_spill] sm:$0xff] }
 0x675   : > { %v5394_v29 = vadd.f32 %v10433_v34, %v4884_v56  ;;  %v4861_v12 = vmul.f32 0.01, %v10661_v53  ;;  %v4889_v36 = vmax.f32 %v10618_v47, %v4857_v0  ;;  %v5395_v58 = vadd.f32 %v11100_v21, %v4885_v62  ;;  %5425 = vst.msk [vmem:[%s10577_s14 + $0x68] sm:$0xff] %vm346_vm0, %v5393_v4  ;;  %v11107_v47 = vld [vmem:[#allocation51_spill] sm:$0xff] }
 0x676   : > { %v10696_v2 = vmul.f32 %v10495_v41, %v11099_v55  ;;  %v11102_v32 = vsub.f32 %v11101_v35, %v10361_v17  ;;  %v4862_v51 = vmul.f32 0.01, %v10672_v44  ;;  %v4890_v34 = vmax.f32 %v10628_v13, %v4858_v63  ;;  %v11109_v13 = vld [vmem:[#allocation44_spill] sm:$0xff]  ;;  %v11115_v56 = vld [vmem:[#allocation39_spill] sm:$0xff]  ;;  %v11125_v35 = vld [vmem:[#allocation49_spill] sm:$0xff] }
 0x677   : > { %v5396_v19 = vadd.f32 %v11103_v24, %v4886_v18  ;;  %v11105_v49 = vsub.f32 %v11104_v37, %v10361_v17  ;;  %v4863_v50 = vmul.f32 0.01, %v10685_v59  ;;  %v4891_v31 = vmax.f32 %v10639_v52, %v4859_v28  ;;  %5426 = vst.msk [vmem:[%s10577_s14 + $0x70] sm:$0xff] %vm346_vm0, %v5394_v29  ;;  %v11121_v28 = vld [vmem:[#allocation14_spill] sm:$0xff]  ;;  %v11123_v29 = vld [vmem:[#allocation35_spill] sm:$0xff]  ;;  %v11126_v24 = vld [vmem:[#allocation53_spill] sm:$0xff] }
 0x678   : > { %v4833_v8 = vmul.f32 %v10495_v41, %v11102_v32  ;;  %v5397_v39 = vadd.f32 %v11106_v38, %v4887_v6  ;;  %v11108_v3 = vsub.f32 %v11107_v47, %v10361_v17  ;;  %v4864_v1 = vmul.f32 0.01, %v10696_v2  ;;  %5427 = vst.msk [vmem:[%s10577_s14 + $0x78] sm:$0xff] %vm346_vm0, %v5395_v58  ;;  %v11122_v6 = vld [vmem:[#allocation20_spill] sm:$0xff]  ;;  %v5121_v55 = vpop.f32.mrf.mxu2  ;;  %v11124_v21 = vld [vmem:[#allocation43_spill] sm:$0xff] }
 0x679   : > { %v4834_v15 = vmul.f32 %v10495_v41, %v11105_v49  ;;  %v4892_v45 = vmax.f32 %v10650_v40, %v4860_v57  ;;  %v5398_v5 = vadd.f32 %v11109_v13, %v4888_v33  ;;  %v11110_v10 = vsub.f32 %v11089_v54, %v10361_v17  ;;  %5428 = vst.msk [vmem:[%s10577_s14 + $0x80] sm:$0xff] %vm346_vm0, %v5396_v19  ;;  %v5341_v57 = vpop.f32.mrf.mxu3 }
 0x67a   : > { %v4835_v46 = vmul.f32 %v10495_v41, %v11108_v3  ;;  %v11112_v52 = vsub.f32 %v11111_v30, %v10361_v17  ;;  %v4893_v48 = vmax.f32 %v10661_v53, %v4861_v12  ;;  %v5399_v23 = vadd.f32 %v11113_v20, %v4889_v36  ;;  %v11117_v53 = vld [vmem:[#allocation23_spill] sm:$0xff]  ;;  %5429 = vst.msk [vmem:[%s10577_s14 + $0x88] sm:$0xff] %vm346_vm0, %v5397_v39 }
 0x67b   : > { %v4836_v25 = vmul.f32 %v10495_v41, %v11110_v10  ;;  %v4865_v40 = vmul.f32 0.01, %v4833_v8  ;;  %v5330_v14 = vadd.f32 %v11115_v56, %v11114_v42  ;;  %v4894_v54 = vmax.f32 %v10672_v44, %v4862_v51  ;;  %v11120_v44 = vld [vmem:[#allocation28_spill] sm:$0xff]  ;;  %5430 = vst.msk [vmem:[%s10577_s14 + $0x90] sm:$0xff] %vm346_vm0, %v5398_v5 }
 0x67c   : > { %v4837_v61 = vmul.f32 %v10495_v41, %v11112_v52  ;;  %v5400_v0 = vadd.f32 %v11116_v43, %v4890_v34  ;;  %v4866_v17 = vmul.f32 0.01, %v4834_v15  ;;  %v4895_v41 = vmax.f32 %v10685_v59, %v4863_v50  ;;  %5431 = vst.msk [vmem:[%s10577_s14 + $0x98] sm:$0xff] %vm346_vm0, %v5399_v23 }
 0x67d   : > { %v5401_v62 = vadd.f32 %v11117_v53, %v4891_v31  ;;  %v5332_v63 = vadd.f32 %v11119_v22, %v11118_v9  ;;  %v4867_v18 = vmul.f32 0.01, %v4835_v46  ;;  %v4896_v26 = vmax.f32 %v10696_v2, %v4864_v1 }
 0x67e   : > { %v5402_v16 = vadd.f32 %v11120_v44, %v4892_v45  ;;  %v5335_v4 = vadd.f32 %v11122_v6, %v11121_v28  ;;  %v4868_v59 = vmul.f32 0.01, %v4836_v25  ;;  %v4869_v33 = vmul.f32 0.01, %v4837_v61  ;;  %5432 = vst.msk [vmem:[%s10577_s14 + $0xa0] sm:$0xff] %vm346_vm0, %v5400_v0 }
 0x67f   : > { %v5403_v12 = vadd.f32 %v11123_v29, %v4893_v48  ;;  %v4897_v36 = vmax.f32 %v4833_v8, %v4865_v40  ;;  %v5337_v2 = vadd.f32 %v10583_v27, %v10581_v60  ;;  %v5374_v58 = vadd.f32 %v11124_v21, %v5330_v14  ;;  %5433 = vst.msk [vmem:[%s10577_s14 + $0xa8] sm:$0xff] %vm346_vm0, %v5401_v62 }
 0x680   : > { %v5404_v32 = vadd.f32 %v11125_v35, %v4894_v54  ;;  %v4898_v51 = vmax.f32 %v4834_v15, %v4866_v17  ;;  %v5340_v34 = vadd.f32 %v5339_v11, %v10679_v7  ;;  %v5405_v19 = vadd.f32 %v11126_v24, %v4895_v41  ;;  %5434 = vst.msk [vmem:[%s10577_s14 + $0xb0] sm:$0xff] %vm346_vm0, %v5402_v16 }
 0x681   : > { %v5375_v8 = vadd.f32 %v11124_v21, %v5332_v63  ;;  %v4899_v37 = vmax.f32 %v4835_v46, %v4867_v18  ;;  %v5342_v60 = vadd.f32 %v5341_v57, %v5121_v55  ;;  %v5406_v27 = vadd.f32 %v5374_v58, %v4896_v26  ;;  %5435 = vst.msk [vmem:[%s10577_s14 + $0xb8] sm:$0xff] %vm346_vm0, %v5403_v12 }
 0x682   : > { %v5376_v49 = vadd.f32 %v11124_v21, %v5335_v4  ;;  %v4900_v15 = vmax.f32 %v4836_v25, %v4868_v59  ;;  %v4901_v7 = vmax.f32 %v4837_v61, %v4869_v33  ;;  %v5377_v50 = vadd.f32 %v11124_v21, %v5337_v2  ;;  %5436 = vst.msk [vmem:[%s10577_s14 + $0xc0] sm:$0xff] %vm346_vm0, %v5404_v32 }
 0x683   : > { %v5407_v11 = vadd.f32 %v5375_v8, %v4897_v36  ;;  %v5378_v38 = vadd.f32 %v11124_v21, %v5340_v34  ;;  %5437 = vst.msk [vmem:[%s10577_s14 + $0xc8] sm:$0xff] %vm346_vm0, %v5405_v19  ;;  %v5379_v47 = vadd.f32 %v11124_v21, %v5342_v60 }
 0x684   : > { %v5408_v31 = vadd.f32 %v5376_v49, %v4898_v51  ;;  %v5409_v39 = vadd.f32 %v5377_v50, %v4899_v37  ;;  %5438 = vst.msk [vmem:[%s10577_s14 + $0xd0] sm:$0xff] %vm346_vm0, %v5406_v27 }
 0x685   : > { %v5410_v3 = vadd.f32 %v5378_v38, %v4900_v15  ;;  %5439 = vst.msk [vmem:[%s10577_s14 + $0xd8] sm:$0xff] %vm346_vm0, %v5407_v11  ;;  %v5411_v46 = vadd.f32 %v5379_v47, %v4901_v7 }
 0x686   : > { %5440 = vst.msk [vmem:[%s10577_s14 + $0xe0] sm:$0xff] %vm346_vm0, %v5408_v31 }
 0x687   : > { %5441 = vst.msk [vmem:[%s10577_s14 + $0xe8] sm:$0xff] %vm346_vm0, %v5409_v39 }
 0x688   : > { %5442 = vst.msk [vmem:[%s10577_s14 + $0xf0] sm:$0xff] %vm346_vm0, %v5410_v3 }
 0x689   : > { %5443 = vst.msk [vmem:[%s10577_s14 + $0xf8] sm:$0xff] %vm346_vm0, %v5411_v46 }
 0x68a PF: > { %s17_s24 = sadd.s32 1, %s7198_s24  }
 0x68b   : > { %p14_p4 = scmp.ge.s32.totalorder %s17_s24, 4  }
 0x68d   :  { %16 = sbr.rel (!%p14_p4) target bundleno = 1 (0x1), region = 87 }

</bundles_post_ra>
